<compile_context>
chip_gen: v7x
topology: tpu7x:2x2x1
jax: 0.10.0
libtpu: 0.0.40
codegen_flags: <defaults>
</compile_context>

<pallas_src>
import functools

import jax
import jax.numpy as jnp
from jax import lax
from jax.experimental import pallas as pl
from jax.experimental.pallas import tpu as pltpu


def _convlstm_kernel(*refs, ch, pack, th, w_img, ksize, c_tot, kkc,
                     use_peephole):
    """One (batch, image-row-block) grid step.

    refs (with peephole): xh, c, w_ci, w_co, weights, h_out, c_out, patch
    refs (no peephole):   xh, c, weights, h_out, c_out, patch

      xh_ref    : (1, Hp, Wp, C)        padded NHWC x||h (mm dtype)
      c/wci/wco : (1, PR, pack*Ch)      lane-packed f32 state
      w_ref     : (KKCpad, 4*Ch)        stacked conv_x|conv_h weights + bias row
      h_out     : (1, PR, pack*Ch)      lane-packed h output (input dtype)
      c_out     : (1, PR, pack*Ch)      lane-packed c output (float32)
      patch_ref : (TH, W, KKCpad)       VMEM scratch for the im2col patch
    """
    if use_peephole:
        (xh_ref, c_ref, wci_ref, wco_ref, w_ref,
         h_out_ref, c_out_ref, patch_ref) = refs
    else:
        xh_ref, c_ref, w_ref, h_out_ref, c_out_ref, patch_ref = refs
        wci_ref = wco_ref = None

    K, W, C = ksize, w_img, c_tot
    tm = th * W
    pr = tm // pack
    kkcpad = patch_ref.shape[-1]

    # Top padded-image row of this row block.
    row0 = pl.program_id(1) * th

    # ---- in-VMEM im2col: K*K tap slabs stored at static lane offsets -------
    for dy in range(K):
        for dx in range(K):
            tap = dy * K + dx
            slab = xh_ref[0, pl.ds(row0 + dy, th), pl.ds(dx, W), :]  # (TH,W,C)
            patch_ref[:, :, tap * C:(tap + 1) * C] = slab

    # Pad block: column `kkc` carries 1.0 so the matmul picks up the fused
    # bias row of w_ref; the remaining pad columns stay 0.
    lane = lax.broadcasted_iota(jnp.int32, (th, W, kkcpad - kkc), 2)
    patch_ref[:, :, kkc:] = jnp.where(lane == 0, 1.0, 0.0).astype(
        patch_ref.dtype)

    # ---- one MXU matmul: both convs, all four gates, biases (f32 accum) ----
    gates = jnp.dot(patch_ref[...].reshape(tm, kkcpad), w_ref[...],
                    preferred_element_type=jnp.float32)          # (tm, 4*Ch)

    def gate(k):
        g = gates[:, k * ch:(k + 1) * ch]                        # (tm, Ch)
        # Re-pack row-quarters into lane groups -> (PR, pack*Ch): lane-dense
        # values for the VPU/EUP gating math and unmasked output stores.
        return jnp.concatenate(
            [g[q * pr:(q + 1) * pr] for q in range(pack)], axis=-1)

    i_g, f_g, g_g, o_g = gate(0), gate(1), gate(2), gate(3)

    def sigmoid(v):               # one EUP tanh, no divide (v5e friendly)
        return 0.5 * (jnp.tanh(0.5 * v) + 1.0)

    c_prev = c_ref[0]
    if use_peephole:
        i = sigmoid(i_g + wci_ref[0] * c_prev)
    else:
        i = sigmoid(i_g)
    f = sigmoid(f_g)              # forget_bias already folded into bias row
    c_new = f * c_prev + i * jnp.tanh(g_g)
    if use_peephole:
        o = sigmoid(o_g + wco_ref[0] * c_new)
    else:
        o = sigmoid(o_g)
    h_new = o * jnp.tanh(c_new)

    h_out_ref[0] = h_new.astype(h_out_ref.dtype)
    c_out_ref[0] = c_new.astype(c_out_ref.dtype)


@functools.partial(
    jax.jit,
    static_argnames=("kernel_size", "forget_bias", "use_peephole", "mm_dtype",
                     "target_rows"))
def conv_lstm_cell(x_nchw, h_nchw, c_nchw, wx_hwio, wh_hwio, bx, bh,
                   w_ci_nchw=None, w_co_nchw=None, *, kernel_size,
                   forget_bias=0.01, use_peephole=False,
                   mm_dtype=jnp.bfloat16, target_rows=2048):
    """ConvLSTMCell.forward.  NCHW interface like the PyTorch module.

    Notes:
      * kernel_size must be odd (matches the module's padding = K // 2).
      * With the default mm_dtype=bfloat16, x, h and the conv weights are cast
        to bf16 for the MXU matmul (f32 accumulation, f32 gate math); this is
        the dominant error source vs. an f32 reference (~1e-2).  Pass
        mm_dtype=jnp.float32 for an exact path.
      * h_new is returned in x.dtype; c_new is always returned in float32 so a
        recurrent bf16 run does not truncate the cell state every step.
      * use_peephole=False corresponds to the module's default zero-initialized
        w_ci / w_co (w_cf is unused by forward()).
    """
    B, Cin, H, W = x_nchw.shape
    Ch = h_nchw.shape[1]
    K = kernel_size
    if K % 2 != 1:
        raise ValueError("kernel_size must be odd (module uses padding=K//2).")
    if W % 8 != 0:
        # TODO(synk): general W needs a padded / re-tiled patch layout.
        raise ValueError("image width must be a multiple of 8 for this kernel.")
    pad = K // 2
    Hp, Wp = H + 2 * pad, W + 2 * pad
    HW = H * W
    C = Cin + Ch
    KKC = K * K * C
    KKCpad = ((KKC + 1 + 127) // 128) * 128   # room for the fused bias column

    bytes_mm = jnp.dtype(mm_dtype).itemsize
    h_bytes = jnp.dtype(x_nchw.dtype).itemsize
    n_state = 3 if use_peephole else 1

    # --- row-block size: biggest divisor of H that fits the VMEM budget -----
    def est_vmem(th_):
        tm_ = th_ * W
        return (2 * Hp * Wp * C * bytes_mm          # x||h image (double-buffered)
                + 2 * KKCpad * 4 * Ch * bytes_mm    # stacked weights
                + tm_ * KKCpad * bytes_mm           # patch scratch
                + n_state * 2 * tm_ * Ch * 4        # packed f32 state blocks
                + 2 * tm_ * Ch * h_bytes            # h output blocks
                + 2 * tm_ * Ch * 4)                 # c output blocks (f32)

    budget = 40 * 1024 * 1024                       # safe inside v7x's 64 MiB
    divisors = [d for d in range(H, 0, -1) if H % d == 0]

    def ok(cand, need_two_steps):
        return (cand * W <= max(target_rows, W)
                and est_vmem(cand) <= budget
                and (not need_two_steps or B * (H // cand) >= 2))

    th = next((d for d in divisors if ok(d, True)),
              next((d for d in divisors if ok(d, False)), 1))
    tm = th * W
    nm = H // th

    # --- lane-packing factor: `pack` pixels share one 128-lane row ----------
    if Ch <= 128 and 128 % Ch == 0 and tm % (128 // Ch) == 0:
        pack = 128 // Ch
    else:
        pack = 1
    pr = tm // pack
    if nm > 1 and pr % 8 != 0:                      # keep blocks sublane-aligned
        pack, pr = 1, tm

    to_nhwc = lambda t: jnp.transpose(t, (0, 2, 3, 1))

    # --- padded NHWC x||h: the ONLY conv input stream (no HBM im2col) -------
    xh = jnp.concatenate([to_nhwc(x_nchw), to_nhwc(h_nchw)], axis=-1)
    xh = jnp.pad(xh, ((0, 0), (pad, pad), (pad, pad), (0, 0))).astype(mm_dtype)

    # --- stacked conv weights with the combined bias folded into a row ------
    w = jnp.concatenate([wx_hwio, wh_hwio], axis=2).reshape(KKC, 4 * Ch)
    b = (bx + bh).astype(jnp.float32)
    b = b.at[Ch:2 * Ch].add(forget_bias)            # fold forget_bias (f gate)
    w_full = jnp.zeros((KKCpad, 4 * Ch), jnp.float32)
    w_full = w_full.at[:KKC].set(w.astype(jnp.float32))
    w_full = w_full.at[KKC].set(b)                  # picked up by the 1.0 column
    w_full = w_full.astype(mm_dtype)

    # --- lane-pack the f32 state: (B, HW, Ch) -> (B, HW//pack, pack*Ch) -----
    def pack_state(t_nchw):
        v = to_nhwc(t_nchw).astype(jnp.float32).reshape(B, nm, pack, pr, Ch)
        return jnp.transpose(v, (0, 1, 3, 2, 4)).reshape(B, nm * pr, pack * Ch)

    state_spec = pl.BlockSpec((1, pr, pack * Ch), lambda bi, ri: (bi, ri, 0))
    in_specs = [
        pl.BlockSpec((1, Hp, Wp, C), lambda bi, ri: (bi, 0, 0, 0)),  # x||h
        state_spec,                                                   # c
    ]
    inputs = [xh, pack_state(c_nchw)]
    if use_peephole:
        in_specs += [state_spec, state_spec]
        inputs += [pack_state(w_ci_nchw), pack_state(w_co_nchw)]
    in_specs.append(pl.BlockSpec((KKCpad, 4 * Ch), lambda bi, ri: (0, 0)))
    inputs.append(w_full)

    kernel = functools.partial(
        _convlstm_kernel, ch=Ch, pack=pack, th=th, w_img=W, ksize=K,
        c_tot=C, kkc=KKC, use_peephole=use_peephole)

    vmem_limit = int(min(max(2 * est_vmem(th) + (2 << 20), 16 << 20), 48 << 20))

    h_p, c_p = pl.pallas_call(
        kernel,
        grid=(B, nm),
        in_specs=in_specs,
        out_specs=[state_spec, state_spec],
        out_shape=[
            jax.ShapeDtypeStruct((B, nm * pr, pack * Ch), x_nchw.dtype),
            jax.ShapeDtypeStruct((B, nm * pr, pack * Ch), jnp.float32),
        ],
        scratch_shapes=[pltpu.VMEM((th, W, KKCpad), mm_dtype)],
        compiler_params=pltpu.CompilerParams(
            dimension_semantics=("parallel", "parallel"),
            vmem_limit_bytes=vmem_limit),
    )(*inputs)

    # --- un-pack outputs back to NCHW ---------------------------------------
    def unpack_state(v):
        v = v.reshape(B, nm, pr, pack, Ch)
        v = jnp.transpose(v, (0, 1, 3, 2, 4)).reshape(B, H, W, Ch)
        return jnp.transpose(v, (0, 3, 1, 2))

    return unpack_state(h_p), unpack_state(c_p)


def _reference_forward(x_nchw, h_nchw, c_nchw, wx_hwio, wh_hwio, bx, bh,
                       w_ci_nchw, w_co_nchw, forget_bias):
    """Pure-JAX reference replicating the PyTorch forward (for validation)."""
    to_nhwc = lambda t: jnp.transpose(t, (0, 2, 3, 1))
    x, h, c = to_nhwc(x_nchw), to_nhwc(h_nchw), to_nhwc(c_nchw)
    w_ci, w_co = to_nhwc(w_ci_nchw), to_nhwc(w_co_nchw)

    dn_x = lax.conv_dimension_numbers(x.shape, wx_hwio.shape,
                                      ('NHWC', 'HWIO', 'NHWC'))
    dn_h = lax.conv_dimension_numbers(h.shape, wh_hwio.shape,
                                      ('NHWC', 'HWIO', 'NHWC'))
    x_concat = lax.conv_general_dilated(x, wx_hwio, (1, 1), 'SAME',
                                        dimension_numbers=dn_x) + bx
    h_concat = lax.conv_general_dilated(h, wh_hwio, (1, 1), 'SAME',
                                        dimension_numbers=dn_h) + bh
    i_x, f_x, c_x, o_x = jnp.split(x_concat, 4, axis=-1)
    i_h, f_h, c_h, o_h = jnp.split(h_concat, 4, axis=-1)
    i = jax.nn.sigmoid(i_x + i_h + w_ci * c)
    f = jax.nn.sigmoid(f_x + f_h + forget_bias)
    c_new = f * c + i * jnp.tanh(c_x + c_h)
    o = jax.nn.sigmoid(o_x + o_h + w_co * c_new)
    h_new = o * jnp.tanh(c_new)
    back = lambda t: jnp.transpose(t, (0, 3, 1, 2))
    return back(h_new), back(c_new)


if __name__ == "__main__":
    B, Cin, Ch, H, W, K = 2, 4, 32, 16, 16, 3
    forget_bias = 0.01

    key = jax.random.PRNGKey(0)
    ks = jax.random.split(key, 9)

    # inputs (NCHW, like the PyTorch module)
    x = jax.random.normal(ks[0], (B, Cin, H, W), jnp.float32)
    h = jax.random.normal(ks[1], (B, Ch, H, W), jnp.float32)
    c = jax.random.normal(ks[2], (B, Ch, H, W), jnp.float32)

    # synthetic conv params (HWIO). conv_x: Cin -> 4*Ch ; conv_h: Ch -> 4*Ch
    wx = 0.1 * jax.random.normal(ks[3], (K, K, Cin, 4 * Ch), jnp.float32)
    wh = 0.1 * jax.random.normal(ks[4], (K, K, Ch, 4 * Ch), jnp.float32)
    bx = 0.1 * jax.random.normal(ks[5], (4 * Ch,), jnp.float32)
    bh = 0.1 * jax.random.normal(ks[6], (4 * Ch,), jnp.float32)

    # 1) Module default: zero peephole weights -> use_peephole=False fast path
    #    (checked with the exact f32 matmul path).
    h_np, c_np = conv_lstm_cell(x, h, c, wx, wh, bx, bh, kernel_size=K,
                                forget_bias=forget_bias, use_peephole=False,
                                mm_dtype=jnp.float32)
    jax.block_until_ready((h_np, c_np))
    zeros = jnp.zeros_like(c)
    h_r0, c_r0 = _reference_forward(x, h, c, wx, wh, bx, bh, zeros, zeros,
                                    forget_bias)
    assert h_np.shape == (B, Ch, H, W) and c_np.shape == (B, Ch, H, W)
    assert jnp.allclose(h_np, h_r0, rtol=1e-4, atol=1e-4)
    assert jnp.allclose(c_np, c_r0, rtol=1e-4, atol=1e-4)

    # 2) Non-zero peephole weights exercise the full gate math; f32 matmul for
    #    a tight check and bf16 matmul as the production fast path.
    w_ci = 0.1 * jax.random.normal(ks[7], (B, Ch, H, W), jnp.float32)
    w_co = 0.1 * jax.random.normal(ks[8], (B, Ch, H, W), jnp.float32)

    h_f32, c_f32 = conv_lstm_cell(x, h, c, wx, wh, bx, bh, w_ci, w_co,
                                  kernel_size=K, forget_bias=forget_bias,
                                  use_peephole=True, mm_dtype=jnp.float32)
    h_bf, c_bf = conv_lstm_cell(x, h, c, wx, wh, bx, bh, w_ci, w_co,
                                kernel_size=K, forget_bias=forget_bias,
                                use_peephole=True)
    jax.block_until_ready((h_f32, c_f32, h_bf, c_bf))

    h_exp, c_exp = _reference_forward(x, h, c, wx, wh, bx, bh, w_ci, w_co,
                                      forget_bias)
    assert jnp.allclose(h_f32, h_exp, rtol=1e-4, atol=1e-4)
    assert jnp.allclose(c_f32, c_exp, rtol=1e-4, atol=1e-4)
    # bf16 matmul operands -> looser tolerance (f32 accum keeps gating exact)
    assert jnp.allclose(h_bf, h_exp, rtol=5e-2, atol=5e-2)
    assert jnp.allclose(c_bf, c_exp, rtol=5e-2, atol=5e-2)

    print("KERNEL_OK")
</pallas_src>

<mosaic_0001>
module attributes {stable_mosaic.version = 11 : i64} {
  func.func @_convlstm_kernel(%arg0: i32, %arg1: i32, %arg2: memref<1x18x18x36xf32, #tpu.memory_space<vmem>>, %arg3: memref<1x64x128xf32, #tpu.memory_space<vmem>>, %arg4: memref<384x128xf32, #tpu.memory_space<vmem>>, %arg5: memref<1x64x128xf32, #tpu.memory_space<vmem>>, %arg6: memref<1x64x128xf32, #tpu.memory_space<vmem>>, %arg7: memref<16x16x384xf32, #tpu.memory_space<vmem>>) attributes {dimension_semantics = [#tpu.dimension_semantics<parallel>, #tpu.dimension_semantics<parallel>], iteration_bounds = array<i64: 2, 1>, scalar_prefetch = 0 : i64, scratch_operands = 1 : i64, tpu.core_type = #tpu.core_type<tc>, window_params = [{transform_indices = @transform_0, window_bounds = array<i64: 1, 18, 18, 36>}, {transform_indices = @transform_1, window_bounds = array<i64: 1, 64, 128>}, {pipeline_mode = #tpu.pipeline_mode<synchronous>, transform_indices = @transform_2, window_bounds = array<i64: 384, 128>}, {transform_indices = @transform_3, window_bounds = array<i64: 1, 64, 128>}, {transform_indices = @transform_4, window_bounds = array<i64: 1, 64, 128>}]} {
    %c16_i32 = arith.constant 16 : i32
    %0 = arith.muli %arg1, %c16_i32 : i32
    %c0_i32 = arith.constant 0 : i32
    %1 = arith.addi %0, %c0_i32 : i32
    %c0 = arith.constant 0 : index
    %2 = arith.index_cast %1 : i32 to index
    %c0_0 = arith.constant 0 : index
    %c0_1 = arith.constant 0 : index
    %3 = vector.load %arg2[%c0, %2, %c0_0, %c0_1] : memref<1x18x18x36xf32, #tpu.memory_space<vmem>>, vector<1x16x16x36xf32>
    %4 = vector.shape_cast %3 : vector<1x16x16x36xf32> to vector<16x16x36xf32>
    %c0_2 = arith.constant 0 : index
    %c0_3 = arith.constant 0 : index
    %c0_4 = arith.constant 0 : index
    %5 = vector.load %arg7[%c0_2, %c0_3, %c0_4] : memref<16x16x384xf32, #tpu.memory_space<vmem>>, vector<16x16x36xf32>
    tpu.vector_store %arg7[%c0_2, %c0_3, %c0_4], %4 {strides = array<i32>} : memref<16x16x384xf32, #tpu.memory_space<vmem>>, vector<16x16x36xf32>,
    %c0_i32_5 = arith.constant 0 : i32
    %6 = arith.addi %0, %c0_i32_5 : i32
    %c0_6 = arith.constant 0 : index
    %7 = arith.index_cast %6 : i32 to index
    %c1 = arith.constant 1 : index
    %c0_7 = arith.constant 0 : index
    %8 = vector.load %arg2[%c0_6, %7, %c1, %c0_7] : memref<1x18x18x36xf32, #tpu.memory_space<vmem>>, vector<1x16x16x36xf32>
    %9 = vector.shape_cast %8 : vector<1x16x16x36xf32> to vector<16x16x36xf32>
    %c0_8 = arith.constant 0 : index
    %c0_9 = arith.constant 0 : index
    %c36 = arith.constant 36 : index
    %10 = vector.load %arg7[%c0_8, %c0_9, %c36] : memref<16x16x384xf32, #tpu.memory_space<vmem>>, vector<16x16x36xf32>
    tpu.vector_store %arg7[%c0_8, %c0_9, %c36], %9 {strides = array<i32>} : memref<16x16x384xf32, #tpu.memory_space<vmem>>, vector<16x16x36xf32>,
    %c0_i32_10 = arith.constant 0 : i32
    %11 = arith.addi %0, %c0_i32_10 : i32
    %c0_11 = arith.constant 0 : index
    %12 = arith.index_cast %11 : i32 to index
    %c2 = arith.constant 2 : index
    %c0_12 = arith.constant 0 : index
    %13 = vector.load %arg2[%c0_11, %12, %c2, %c0_12] : memref<1x18x18x36xf32, #tpu.memory_space<vmem>>, vector<1x16x16x36xf32>
    %14 = vector.shape_cast %13 : vector<1x16x16x36xf32> to vector<16x16x36xf32>
    %c0_13 = arith.constant 0 : index
    %c0_14 = arith.constant 0 : index
    %c72 = arith.constant 72 : index
    %15 = vector.load %arg7[%c0_13, %c0_14, %c72] : memref<16x16x384xf32, #tpu.memory_space<vmem>>, vector<16x16x36xf32>
    tpu.vector_store %arg7[%c0_13, %c0_14, %c72], %14 {strides = array<i32>} : memref<16x16x384xf32, #tpu.memory_space<vmem>>, vector<16x16x36xf32>,
    %c1_i32 = arith.constant 1 : i32
    %16 = arith.addi %0, %c1_i32 : i32
    %c0_15 = arith.constant 0 : index
    %17 = arith.index_cast %16 : i32 to index
    %c0_16 = arith.constant 0 : index
    %c0_17 = arith.constant 0 : index
    %18 = vector.load %arg2[%c0_15, %17, %c0_16, %c0_17] : memref<1x18x18x36xf32, #tpu.memory_space<vmem>>, vector<1x16x16x36xf32>
    %19 = vector.shape_cast %18 : vector<1x16x16x36xf32> to vector<16x16x36xf32>
    %c0_18 = arith.constant 0 : index
    %c0_19 = arith.constant 0 : index
    %c108 = arith.constant 108 : index
    %20 = vector.load %arg7[%c0_18, %c0_19, %c108] : memref<16x16x384xf32, #tpu.memory_space<vmem>>, vector<16x16x36xf32>
    tpu.vector_store %arg7[%c0_18, %c0_19, %c108], %19 {strides = array<i32>} : memref<16x16x384xf32, #tpu.memory_space<vmem>>, vector<16x16x36xf32>,
    %c1_i32_20 = arith.constant 1 : i32
    %21 = arith.addi %0, %c1_i32_20 : i32
    %c0_21 = arith.constant 0 : index
    %22 = arith.index_cast %21 : i32 to index
    %c1_22 = arith.constant 1 : index
    %c0_23 = arith.constant 0 : index
    %23 = vector.load %arg2[%c0_21, %22, %c1_22, %c0_23] : memref<1x18x18x36xf32, #tpu.memory_space<vmem>>, vector<1x16x16x36xf32>
    %24 = vector.shape_cast %23 : vector<1x16x16x36xf32> to vector<16x16x36xf32>
    %c0_24 = arith.constant 0 : index
    %c0_25 = arith.constant 0 : index
    %c144 = arith.constant 144 : index
    %25 = vector.load %arg7[%c0_24, %c0_25, %c144] : memref<16x16x384xf32, #tpu.memory_space<vmem>>, vector<16x16x36xf32>
    tpu.vector_store %arg7[%c0_24, %c0_25, %c144], %24 {strides = array<i32>} : memref<16x16x384xf32, #tpu.memory_space<vmem>>, vector<16x16x36xf32>,
    %c1_i32_26 = arith.constant 1 : i32
    %26 = arith.addi %0, %c1_i32_26 : i32
    %c0_27 = arith.constant 0 : index
    %27 = arith.index_cast %26 : i32 to index
    %c2_28 = arith.constant 2 : index
    %c0_29 = arith.constant 0 : index
    %28 = vector.load %arg2[%c0_27, %27, %c2_28, %c0_29] : memref<1x18x18x36xf32, #tpu.memory_space<vmem>>, vector<1x16x16x36xf32>
    %29 = vector.shape_cast %28 : vector<1x16x16x36xf32> to vector<16x16x36xf32>
    %c0_30 = arith.constant 0 : index
    %c0_31 = arith.constant 0 : index
    %c180 = arith.constant 180 : index
    %30 = vector.load %arg7[%c0_30, %c0_31, %c180] : memref<16x16x384xf32, #tpu.memory_space<vmem>>, vector<16x16x36xf32>
    tpu.vector_store %arg7[%c0_30, %c0_31, %c180], %29 {strides = array<i32>} : memref<16x16x384xf32, #tpu.memory_space<vmem>>, vector<16x16x36xf32>,
    %c2_i32 = arith.constant 2 : i32
    %31 = arith.addi %0, %c2_i32 : i32
    %c0_32 = arith.constant 0 : index
    %32 = arith.index_cast %31 : i32 to index
    %c0_33 = arith.constant 0 : index
    %c0_34 = arith.constant 0 : index
    %33 = vector.load %arg2[%c0_32, %32, %c0_33, %c0_34] : memref<1x18x18x36xf32, #tpu.memory_space<vmem>>, vector<1x16x16x36xf32>
    %34 = vector.shape_cast %33 : vector<1x16x16x36xf32> to vector<16x16x36xf32>
    %c0_35 = arith.constant 0 : index
    %c0_36 = arith.constant 0 : index
    %c216 = arith.constant 216 : index
    %35 = vector.load %arg7[%c0_35, %c0_36, %c216] : memref<16x16x384xf32, #tpu.memory_space<vmem>>, vector<16x16x36xf32>
    tpu.vector_store %arg7[%c0_35, %c0_36, %c216], %34 {strides = array<i32>} : memref<16x16x384xf32, #tpu.memory_space<vmem>>, vector<16x16x36xf32>,
    %c2_i32_37 = arith.constant 2 : i32
    %36 = arith.addi %0, %c2_i32_37 : i32
    %c0_38 = arith.constant 0 : index
    %37 = arith.index_cast %36 : i32 to index
    %c1_39 = arith.constant 1 : index
    %c0_40 = arith.constant 0 : index
    %38 = vector.load %arg2[%c0_38, %37, %c1_39, %c0_40] : memref<1x18x18x36xf32, #tpu.memory_space<vmem>>, vector<1x16x16x36xf32>
    %39 = vector.shape_cast %38 : vector<1x16x16x36xf32> to vector<16x16x36xf32>
    %c0_41 = arith.constant 0 : index
    %c0_42 = arith.constant 0 : index
    %c252 = arith.constant 252 : index
    %40 = vector.load %arg7[%c0_41, %c0_42, %c252] : memref<16x16x384xf32, #tpu.memory_space<vmem>>, vector<16x16x36xf32>
    tpu.vector_store %arg7[%c0_41, %c0_42, %c252], %39 {strides = array<i32>} : memref<16x16x384xf32, #tpu.memory_space<vmem>>, vector<16x16x36xf32>,
    %c2_i32_43 = arith.constant 2 : i32
    %41 = arith.addi %0, %c2_i32_43 : i32
    %c0_44 = arith.constant 0 : index
    %42 = arith.index_cast %41 : i32 to index
    %c2_45 = arith.constant 2 : index
    %c0_46 = arith.constant 0 : index
    %43 = vector.load %arg2[%c0_44, %42, %c2_45, %c0_46] : memref<1x18x18x36xf32, #tpu.memory_space<vmem>>, vector<1x16x16x36xf32>
    %44 = vector.shape_cast %43 : vector<1x16x16x36xf32> to vector<16x16x36xf32>
    %c0_47 = arith.constant 0 : index
    %c0_48 = arith.constant 0 : index
    %c288 = arith.constant 288 : index
    %45 = vector.load %arg7[%c0_47, %c0_48, %c288] : memref<16x16x384xf32, #tpu.memory_space<vmem>>, vector<16x16x36xf32>
    tpu.vector_store %arg7[%c0_47, %c0_48, %c288], %44 {strides = array<i32>} : memref<16x16x384xf32, #tpu.memory_space<vmem>>, vector<16x16x36xf32>,
    %46 = tpu.iota {dimensions = array<i32: 2>} : vector<16x16x60xi32>
    %c0_i32_49 = arith.constant 0 : i32
    %47 = vector.broadcast %c0_i32_49 : i32 to vector<16x16x60xi32>
    %48 = arith.cmpi eq, %46, %47 : vector<16x16x60xi32>
    %cst = arith.constant 1.000000e+00 : f32
    %cst_50 = arith.constant 0.000000e+00 : f32
    %49 = vector.broadcast %cst : f32 to vector<16x16x60xf32>
    %50 = vector.broadcast %cst_50 : f32 to vector<16x16x60xf32>
    %51 = arith.select %48, %49, %50 : vector<16x16x60xi1>, vector<16x16x60xf32>
    %c0_51 = arith.constant 0 : index
    %c0_52 = arith.constant 0 : index
    %c324 = arith.constant 324 : index
    %52 = vector.load %arg7[%c0_51, %c0_52, %c324] : memref<16x16x384xf32, #tpu.memory_space<vmem>>, vector<16x16x60xf32>
    tpu.vector_store %arg7[%c0_51, %c0_52, %c324], %51 {strides = array<i32>} : memref<16x16x384xf32, #tpu.memory_space<vmem>>, vector<16x16x60xf32>,
    %c0_53 = arith.constant 0 : index
    %c0_54 = arith.constant 0 : index
    %c0_55 = arith.constant 0 : index
    %53 = vector.load %arg7[%c0_53, %c0_54, %c0_55] : memref<16x16x384xf32, #tpu.memory_space<vmem>>, vector<16x16x384xf32>
    %54 = vector.shape_cast %53 : vector<16x16x384xf32> to vector<256x384xf32>
    %c0_56 = arith.constant 0 : index
    %c0_57 = arith.constant 0 : index
    %55 = vector.load %arg4[%c0_56, %c0_57] : memref<384x128xf32, #tpu.memory_space<vmem>>, vector<384x128xf32>
    %cst_58 = arith.constant dense<0.000000e+00> : vector<256x128xf32>
    %56 = tpu.matmul %54, %55, %cst_58 {dimension_numbers = #tpu.dot_dimension_numbers<[1], [0], [0], [1], [0, 0, 1, 1], [], []>} : vector<256x384xf32>, vector<384x128xf32>, vector<256x128xf32> -> vector<256x128xf32>
    %57 = vector.extract_strided_slice %56 {offsets = [0, 0], sizes = [256, 32], strides = [1, 1]} : vector<256x128xf32> to vector<256x32xf32>
    %58 = vector.extract_strided_slice %57 {offsets = [0, 0], sizes = [64, 32], strides = [1, 1]} : vector<256x32xf32> to vector<64x32xf32>
    %59 = vector.extract_strided_slice %57 {offsets = [64, 0], sizes = [64, 32], strides = [1, 1]} : vector<256x32xf32> to vector<64x32xf32>
    %60 = vector.extract_strided_slice %57 {offsets = [128, 0], sizes = [64, 32], strides = [1, 1]} : vector<256x32xf32> to vector<64x32xf32>
    %61 = vector.extract_strided_slice %57 {offsets = [192, 0], sizes = [64, 32], strides = [1, 1]} : vector<256x32xf32> to vector<64x32xf32>
    %62 = tpu.concatenate %58, %59, %60, %61 in 1 : vector<64x32xf32>, vector<64x32xf32>, vector<64x32xf32>, vector<64x32xf32> -> vector<64x128xf32>
    %63 = vector.extract_strided_slice %56 {offsets = [0, 32], sizes = [256, 32], strides = [1, 1]} : vector<256x128xf32> to vector<256x32xf32>
    %64 = vector.extract_strided_slice %63 {offsets = [0, 0], sizes = [64, 32], strides = [1, 1]} : vector<256x32xf32> to vector<64x32xf32>
    %65 = vector.extract_strided_slice %63 {offsets = [64, 0], sizes = [64, 32], strides = [1, 1]} : vector<256x32xf32> to vector<64x32xf32>
    %66 = vector.extract_strided_slice %63 {offsets = [128, 0], sizes = [64, 32], strides = [1, 1]} : vector<256x32xf32> to vector<64x32xf32>
    %67 = vector.extract_strided_slice %63 {offsets = [192, 0], sizes = [64, 32], strides = [1, 1]} : vector<256x32xf32> to vector<64x32xf32>
    %68 = tpu.concatenate %64, %65, %66, %67 in 1 : vector<64x32xf32>, vector<64x32xf32>, vector<64x32xf32>, vector<64x32xf32> -> vector<64x128xf32>
    %69 = vector.extract_strided_slice %56 {offsets = [0, 64], sizes = [256, 32], strides = [1, 1]} : vector<256x128xf32> to vector<256x32xf32>
    %70 = vector.extract_strided_slice %69 {offsets = [0, 0], sizes = [64, 32], strides = [1, 1]} : vector<256x32xf32> to vector<64x32xf32>
    %71 = vector.extract_strided_slice %69 {offsets = [64, 0], sizes = [64, 32], strides = [1, 1]} : vector<256x32xf32> to vector<64x32xf32>
    %72 = vector.extract_strided_slice %69 {offsets = [128, 0], sizes = [64, 32], strides = [1, 1]} : vector<256x32xf32> to vector<64x32xf32>
    %73 = vector.extract_strided_slice %69 {offsets = [192, 0], sizes = [64, 32], strides = [1, 1]} : vector<256x32xf32> to vector<64x32xf32>
    %74 = tpu.concatenate %70, %71, %72, %73 in 1 : vector<64x32xf32>, vector<64x32xf32>, vector<64x32xf32>, vector<64x32xf32> -> vector<64x128xf32>
    %75 = vector.extract_strided_slice %56 {offsets = [0, 96], sizes = [256, 32], strides = [1, 1]} : vector<256x128xf32> to vector<256x32xf32>
    %76 = vector.extract_strided_slice %75 {offsets = [0, 0], sizes = [64, 32], strides = [1, 1]} : vector<256x32xf32> to vector<64x32xf32>
    %77 = vector.extract_strided_slice %75 {offsets = [64, 0], sizes = [64, 32], strides = [1, 1]} : vector<256x32xf32> to vector<64x32xf32>
    %78 = vector.extract_strided_slice %75 {offsets = [128, 0], sizes = [64, 32], strides = [1, 1]} : vector<256x32xf32> to vector<64x32xf32>
    %79 = vector.extract_strided_slice %75 {offsets = [192, 0], sizes = [64, 32], strides = [1, 1]} : vector<256x32xf32> to vector<64x32xf32>
    %80 = tpu.concatenate %76, %77, %78, %79 in 1 : vector<64x32xf32>, vector<64x32xf32>, vector<64x32xf32>, vector<64x32xf32> -> vector<64x128xf32>
    %c0_59 = arith.constant 0 : index
    %c0_60 = arith.constant 0 : index
    %c0_61 = arith.constant 0 : index
    %81 = vector.load %arg3[%c0_59, %c0_60, %c0_61] : memref<1x64x128xf32, #tpu.memory_space<vmem>>, vector<1x64x128xf32>
    %82 = vector.shape_cast %81 : vector<1x64x128xf32> to vector<64x128xf32>
    %cst_62 = arith.constant 5.000000e-01 : f32
    %83 = vector.broadcast %cst_62 : f32 to vector<64x128xf32>
    %84 = arith.mulf %83, %62 : vector<64x128xf32>
    %85 = math.tanh %84 : vector<64x128xf32>
    %cst_63 = arith.constant 1.000000e+00 : f32
    %86 = vector.broadcast %cst_63 : f32 to vector<64x128xf32>
    %87 = arith.addf %85, %86 : vector<64x128xf32>
    %cst_64 = arith.constant 5.000000e-01 : f32
    %88 = vector.broadcast %cst_64 : f32 to vector<64x128xf32>
    %89 = arith.mulf %88, %87 : vector<64x128xf32>
    %cst_65 = arith.constant 5.000000e-01 : f32
    %90 = vector.broadcast %cst_65 : f32 to vector<64x128xf32>
    %91 = arith.mulf %90, %68 : vector<64x128xf32>
    %92 = math.tanh %91 : vector<64x128xf32>
    %cst_66 = arith.constant 1.000000e+00 : f32
    %93 = vector.broadcast %cst_66 : f32 to vector<64x128xf32>
    %94 = arith.addf %92, %93 : vector<64x128xf32>
    %cst_67 = arith.constant 5.000000e-01 : f32
    %95 = vector.broadcast %cst_67 : f32 to vector<64x128xf32>
    %96 = arith.mulf %95, %94 : vector<64x128xf32>
    %97 = arith.mulf %96, %82 : vector<64x128xf32>
    %98 = math.tanh %74 : vector<64x128xf32>
    %99 = arith.mulf %89, %98 : vector<64x128xf32>
    %100 = arith.addf %97, %99 : vector<64x128xf32>
    %cst_68 = arith.constant 5.000000e-01 : f32
    %101 = vector.broadcast %cst_68 : f32 to vector<64x128xf32>
    %102 = arith.mulf %101, %80 : vector<64x128xf32>
    %103 = math.tanh %102 : vector<64x128xf32>
    %cst_69 = arith.constant 1.000000e+00 : f32
    %104 = vector.broadcast %cst_69 : f32 to vector<64x128xf32>
    %105 = arith.addf %103, %104 : vector<64x128xf32>
    %cst_70 = arith.constant 5.000000e-01 : f32
    %106 = vector.broadcast %cst_70 : f32 to vector<64x128xf32>
    %107 = arith.mulf %106, %105 : vector<64x128xf32>
    %108 = math.tanh %100 : vector<64x128xf32>
    %109 = arith.mulf %107, %108 : vector<64x128xf32>
    %c0_71 = arith.constant 0 : index
    %c0_72 = arith.constant 0 : index
    %c0_73 = arith.constant 0 : index
    %110 = vector.load %arg5[%c0_71, %c0_72, %c0_73] : memref<1x64x128xf32, #tpu.memory_space<vmem>>, vector<1x64x128xf32>
    %111 = vector.shape_cast %110 : vector<1x64x128xf32> to vector<64x128xf32>
    %112 = vector.shape_cast %109 : vector<64x128xf32> to vector<1x64x128xf32>
    tpu.vector_store %arg5[%c0_71, %c0_72, %c0_73], %112 {strides = array<i32>} : memref<1x64x128xf32, #tpu.memory_space<vmem>>, vector<1x64x128xf32>,
    %c0_74 = arith.constant 0 : index
    %c0_75 = arith.constant 0 : index
    %c0_76 = arith.constant 0 : index
    %113 = vector.load %arg6[%c0_74, %c0_75, %c0_76] : memref<1x64x128xf32, #tpu.memory_space<vmem>>, vector<1x64x128xf32>
    %114 = vector.shape_cast %113 : vector<1x64x128xf32> to vector<64x128xf32>
    %115 = vector.shape_cast %100 : vector<64x128xf32> to vector<1x64x128xf32>
    tpu.vector_store %arg6[%c0_74, %c0_75, %c0_76], %115 {strides = array<i32>} : memref<1x64x128xf32, #tpu.memory_space<vmem>>, vector<1x64x128xf32>,
    return
  }
  func.func @transform_0(%arg0: i32, %arg1: i32) -> (i32, i32, i32, i32) {
    %c0_i32 = arith.constant 0 : i32
    %c0_i32_0 = arith.constant 0 : i32
    %c0_i32_1 = arith.constant 0 : i32
    %c0_i32_2 = arith.constant 0 : i32
    return %arg0, %c0_i32, %c0_i32_0, %c0_i32_1 : i32, i32, i32, i32
  }
  func.func @transform_1(%arg0: i32, %arg1: i32) -> (i32, i32, i32) {
    %c0_i32 = arith.constant 0 : i32
    %c0_i32_0 = arith.constant 0 : i32
    return %arg0, %arg1, %c0_i32 : i32, i32, i32
  }
  func.func @transform_2(%arg0: i32, %arg1: i32) -> (i32, i32) {
    %c0_i32 = arith.constant 0 : i32
    %c0_i32_0 = arith.constant 0 : i32
    %c0_i32_1 = arith.constant 0 : i32
    return %c0_i32, %c0_i32_0 : i32, i32
  }
  func.func @transform_3(%arg0: i32, %arg1: i32) -> (i32, i32, i32) {
    %c0_i32 = arith.constant 0 : i32
    %c0_i32_0 = arith.constant 0 : i32
    return %arg0, %arg1, %c0_i32 : i32, i32, i32
  }
  func.func @transform_4(%arg0: i32, %arg1: i32) -> (i32, i32, i32) {
    %c0_i32 = arith.constant 0 : i32
    %c0_i32_0 = arith.constant 0 : i32
    return %arg0, %arg1, %c0_i32 : i32, i32, i32
  }
}

</mosaic_0001>

<bundles_post_ra>
// kernel: conv_lstm_cell.1
= control target key start
LH: loop header
LB: loop body
LE: loop exit
PB: predicated region body
PF: predicated region fallthrough
CT: control target
= control target key end

     0   :  { %s3976_s15 = smov 0   ;;  %s3978_s16 = smov 0   ;;  %s5996_s0 = inlined_call_operand.vmem [shape: f32[2,18,18,36], index: 0, kind: input, shape index: {}]   ;;  %s5997_s1 = inlined_call_operand.vmem [shape: f32[2,64,128], index: 1, kind: input, shape index: {}]   ;;  %s5998_s2 = inlined_call_operand.vmem [shape: f32[384,128], index: 2, kind: input, shape index: {}]   ;;  %s5999_s3 = inlined_call_operand.vmem [shape: f32[2,64,128], index: 3, kind: output, shape index: {0}]   ;;  %s6000_s4 = inlined_call_operand.vmem [shape: f32[2,64,128], index: 4, kind: output, shape index: {1}]  }
   0x1   :  { %s3980_s17 = smov 0  }
   0x2 LB: > { %s27_s18 = sadd.s32 1, %s3932_s16  ;;  %p3349_p0 = scmp.ge.s32.totalorder %s3936_s17, 1  ;;  %s3936_s17 = sphi %s3980_s17, %s15_s17   ;;  %s3932_s16 = sphi %s3978_s16, %s6055_s16   ;;  %s3928_s15 = sphi %s3976_s15, %s6054_s15  }
   0x3   : > { %p29_p1 = scmp.ge.s32.totalorder %s27_s18, 2  ;;  %p198_p2 = scmp.lt.s32.totalorder %s3936_s17, 3 }
   0x5   : > { %s6057_s18 = smov (%p29_p1, %s27_s18), 0  ;;  %p199_p3 = pnand %p3349_p0, %p198_p2 }
   0x7   : > { %202 = sbr.rel (%p199_p3) target bundleno = 1167 (0x48f), region = 32 }
   0xe   : > { %p246_p4 = scmp.lt.s32.totalorder %s3928_s15, 1  ;;  %s3938_s23 = smov 36   ;;  %vm316_vm0 = vcmask 293888   ;;  %vm509_vm1 = vcmask 589088   ;;  %vm702_vm2 = vcmask 884288   ;;  %vm898_vm3 = vcmask 1048416  }
   0xf   : > { %s3939_s24 = smov 72   ;;  %s3940_s25 = smov 108   ;;  %vm900_vm4 = vcmask 130048   ;;  %vm1124_vm5 = vcmask 425088   ;;  %vm1317_vm6 = vcmask 720288   ;;  %vm1513_vm8 = vcmask 1015488  }
  0x10   : > { %s6059_s15 = smov (!%p246_p4, %s3928_s15), 1  ;;  %s3943_s30 = smov 52   ;;  %vm1706_vm9 = vcmask 1048544   ;;  %vm1708_vm10 = vcmask 261120   ;;  %vm1932_vm11 = vcmask 556288   ;;  %vm1973_vm12 = vcmask 1048096  }
  0x11   : > { %s3794_s19 = smul.u32 432, %s6059_s15  ;;  %s3944_s5 = smov 88   ;;  %vm2704_vm13 = vcmask 523264   ;;  %vm2713_vm14 = vcmask 785408  }
  0x12   : > { %s3945_s6 = smov 124   ;;  %s3946_s11 = smov 32  }
  0x13   : > { %s4000_s22 = scalar_lea.vmem %s5996_s0, %s3794_s19  ;;  %s3948_s12 = smov 68  }
  0x14   : > { %v4003_v0 = vld [vmem:[%s4000_s22 + $0x19] sm:$0xff]  ;;  %v349_v1 = vld [vmem:[%s4000_s22 + $0x1] sm:$0xff]  ;;  %v350_v3 = vld [vmem:[%s4000_s22 + $0x9] sm:$0xff] }
  0x15   : > { %417 = vrot.lane.b32.xlu1 %v4003_v0, %s3938_s23  ;;  %413 = vrot.lane.b32.xlu0 %v349_v1, %s3938_s23  ;;  %v4010_v2 = vld [vmem:[%s4000_s22 + $0x21] sm:$0xff]  ;;  %v4017_v4 = vld [vmem:[%s4000_s22 + $0x39] sm:$0xff] }
  0x16   : > { %v4020_v5 = vld [vmem:[%s4000_s22 + $0x31] sm:$0xff]  ;;  %v4030_v7 = vld [vmem:[%s4000_s22 + $0x49] sm:$0xff]  ;;  %v4040_v9 = vld [vmem:[%s4000_s22 + $0x61] sm:$0xff] }
  0x17   : > { %v4027_v6 = vld [vmem:[%s4000_s22 + $0x51] sm:$0xff]  ;;  %v4037_v8 = vld [vmem:[%s4000_s22 + $0x69] sm:$0xff]  ;;  %v4047_v10 = vld [vmem:[%s4000_s22 + $0x81] sm:$0xff] }
  0x18   : > { %v4050_v11 = vld [vmem:[%s4000_s22 + $0x79] sm:$0xff]  ;;  %v4064_v15 = vld [vmem:[%s4000_s22 + $0x91] sm:$0xff]  ;;  %v285_v17 = vld [vmem:[%s4000_s22 + $0x8] sm:$0xff] }
  0x19   : > { %419 = vrot.lane.b32.xlu1 %v4010_v2, %s3938_s23  ;;  %415 = vrot.lane.b32.xlu0 %v350_v3, %s3938_s23  ;;  %v4057_v12 = vld [vmem:[%s4000_s22 + $0x18] sm:$0xff]  ;;  %v284_v13 = vld [vmem:[%s4000_s22] sm:$0xff]  ;;  %318 = vst.msk [vmem:[#allocation2 + $0x18] sm:$0xff] %vm316_vm0, %v285_v17 }
  0x1a   : > { %v4061_v14 = vld [vmem:[%s4000_s22 + $0x99] sm:$0xff]  ;;  %319 = vst.msk [vmem:[#allocation2 + $0x30] sm:$0xff] %vm316_vm0, %v4057_v12  ;;  %317 = vst.msk [vmem:[#allocation2] sm:$0xff] %vm316_vm0, %v284_v13  ;;  %v4076_v18 = vld [vmem:[%s4000_s22 + $0xb1] sm:$0xff] }
  0x1b   : > { %v4070_v16 = vld [vmem:[%s4000_s22 + $0x20] sm:$0xff]  ;;  %v4080_v19 = vld [vmem:[%s4000_s22 + $0x38] sm:$0xff]  ;;  %v4083_v20 = vld [vmem:[%s4000_s22 + $0x30] sm:$0xff] }
  0x1c   : > { %320 = vst.msk [vmem:[#allocation2 + $0x48] sm:$0xff] %vm316_vm0, %v4070_v16  ;;  %v4090_v21 = vld [vmem:[%s4000_s22 + $0xa9] sm:$0xff]  ;;  %322 = vst.msk [vmem:[#allocation2 + $0x78] sm:$0xff] %vm316_vm0, %v4080_v19  ;;  %v4108_v25 = vld [vmem:[%s4000_s22 + $0x60] sm:$0xff] }
  0x1d   : > { %423 = vrot.lane.b32.xlu1 %v4017_v4, %s3938_s23  ;;  %421 = vrot.lane.b32.xlu0 %v4020_v5, %s3938_s23  ;;  %321 = vst.msk [vmem:[#allocation2 + $0x60] sm:$0xff] %vm316_vm0, %v4083_v20  ;;  %v4097_v22 = vld [vmem:[%s4000_s22 + $0x50] sm:$0xff]  ;;  %v4102_v23 = vld [vmem:[%s4000_s22 + $0x48] sm:$0xff]  ;;  %325 = vst.msk [vmem:[#allocation2 + $0xc0] sm:$0xff] %vm316_vm0, %v4108_v25 }
  0x1e   : > { %324 = vst.msk [vmem:[#allocation2 + $0xa8] sm:$0xff] %vm316_vm0, %v4097_v22  ;;  %v4105_v24 = vld [vmem:[%s4000_s22 + $0x68] sm:$0xff]  ;;  %323 = vst.msk [vmem:[#allocation2 + $0x90] sm:$0xff] %vm316_vm0, %v4102_v23  ;;  %v4117_v26 = vld [vmem:[%s4000_s22 + $0x80] sm:$0xff] }
  0x1f   : > { %326 = vst.msk [vmem:[#allocation2 + $0xd8] sm:$0xff] %vm316_vm0, %v4105_v24  ;;  %v4120_v27 = vld [vmem:[%s4000_s22 + $0x78] sm:$0xff]  ;;  %v4126_v29 = vld [vmem:[%s4000_s22 + $0xc9] sm:$0xff]  ;;  %v4129_v30 = vld [vmem:[%s4000_s22 + $0xc1] sm:$0xff] }
  0x20   : > { %v4123_v28 = vld [vmem:[%s4000_s22 + $0x98] sm:$0xff]  ;;  %328 = vst.msk [vmem:[#allocation2 + $0x108] sm:$0xff] %vm316_vm0, %v4117_v26  ;;  %327 = vst.msk [vmem:[#allocation2 + $0xf0] sm:$0xff] %vm316_vm0, %v4120_v27  ;;  %v4138_v31 = vld [vmem:[%s4000_s22 + $0x90] sm:$0xff] }
  0x21   : > { %427 = vrot.lane.b32.xlu1 %v4027_v6, %s3938_s23  ;;  %425 = vrot.lane.b32.xlu0 %v4030_v7, %s3938_s23  ;;  %330 = vst.msk [vmem:[#allocation2 + $0x138] sm:$0xff] %vm316_vm0, %v4123_v28  ;;  %v4141_v32 = vld [vmem:[%s4000_s22 + $0xb0] sm:$0xff]  ;;  %v4144_v33 = vld [vmem:[%s4000_s22 + $0xa8] sm:$0xff]  ;;  %329 = vst.msk [vmem:[#allocation2 + $0x120] sm:$0xff] %vm316_vm0, %v4138_v31 }
  0x22   : > { %332 = vst.msk [vmem:[#allocation2 + $0x168] sm:$0xff] %vm316_vm0, %v4141_v32  ;;  %331 = vst.msk [vmem:[#allocation2 + $0x150] sm:$0xff] %vm316_vm0, %v4144_v33  ;;  %v4157_v34 = vld [vmem:[%s4000_s22 + $0xc8] sm:$0xff]  ;;  %v4160_v35 = vld [vmem:[%s4000_s22 + $0xc0] sm:$0xff] }
  0x23   : > { %334 = vst.msk [vmem:[#allocation2 + $0x198] sm:$0xff] %vm316_vm0, %v4157_v34  ;;  %333 = vst.msk [vmem:[#allocation2 + $0x180] sm:$0xff] %vm316_vm0, %v4160_v35  ;;  %v4167_v36 = vld [vmem:[%s4000_s22 + $0xe0] sm:$0xff]  ;;  %v4170_v37 = vld [vmem:[%s4000_s22 + $0xd8] sm:$0xff] }
  0x24   : > { %v4173_v38 = vld [vmem:[%s4000_s22 + $0xf8] sm:$0xff]  ;;  %336 = vst.msk [vmem:[#allocation2 + $0x1c8] sm:$0xff] %vm316_vm0, %v4167_v36  ;;  %335 = vst.msk [vmem:[#allocation2 + $0x1b0] sm:$0xff] %vm316_vm0, %v4170_v37  ;;  %v4182_v39 = vld [vmem:[%s4000_s22 + $0xf0] sm:$0xff] }
  0x25   : > { %431 = vrot.lane.b32.xlu1 %v4037_v8, %s3938_s23  ;;  %429 = vrot.lane.b32.xlu0 %v4040_v9, %s3938_s23  ;;  %338 = vst.msk [vmem:[#allocation2 + $0x1f8] sm:$0xff] %vm316_vm0, %v4173_v38  ;;  %v4185_v40 = vld [vmem:[%s4000_s22 + $0x110] sm:$0xff]  ;;  %v4188_v41 = vld [vmem:[%s4000_s22 + $0x108] sm:$0xff]  ;;  %337 = vst.msk [vmem:[#allocation2 + $0x1e0] sm:$0xff] %vm316_vm0, %v4182_v39 }
  0x26   : > { %340 = vst.msk [vmem:[#allocation2 + $0x228] sm:$0xff] %vm316_vm0, %v4185_v40  ;;  %339 = vst.msk [vmem:[#allocation2 + $0x210] sm:$0xff] %vm316_vm0, %v4188_v41  ;;  %v4201_v42 = vld [vmem:[%s4000_s22 + $0xe1] sm:$0xff]  ;;  %v4204_v43 = vld [vmem:[%s4000_s22 + $0xd9] sm:$0xff] }
  0x27   : > { %v4207_v44 = vld [vmem:[%s4000_s22 + $0x120] sm:$0xff]  ;;  %v4210_v45 = vld [vmem:[%s4000_s22 + $0x128] sm:$0xff]  ;;  %v4224_v47 = vld [vmem:[%s4000_s22 + $0xf1] sm:$0xff] }
  0x28   : > { %341 = vst.msk [vmem:[#allocation2 + $0x240] sm:$0xff] %vm316_vm0, %v4207_v44  ;;  %342 = vst.msk [vmem:[#allocation2 + $0x258] sm:$0xff] %vm316_vm0, %v4210_v45  ;;  %v4221_v46 = vld [vmem:[%s4000_s22 + $0xf9] sm:$0xff]  ;;  %v4241_v50 = vld [vmem:[%s4000_s22 + $0x111] sm:$0xff] }
  0x29   : > { %435 = vrot.lane.b32.xlu1 %v4047_v10, %s3938_s23  ;;  %433 = vrot.lane.b32.xlu0 %v4050_v11, %s3938_s23  ;;  %v4227_v48 = vld [vmem:[%s4000_s22 + $0x138] sm:$0xff]  ;;  %v4230_v49 = vld [vmem:[%s4000_s22 + $0x140] sm:$0xff] }
  0x2a   : > { %343 = vst.msk [vmem:[#allocation2 + $0x270] sm:$0xff] %vm316_vm0, %v4227_v48  ;;  %344 = vst.msk [vmem:[#allocation2 + $0x288] sm:$0xff] %vm316_vm0, %v4230_v49  ;;  %v4244_v51 = vld [vmem:[%s4000_s22 + $0x109] sm:$0xff]  ;;  %v4250_v53 = vld [vmem:[%s4000_s22 + $0x158] sm:$0xff] }
  0x2b   : > { %v4247_v52 = vld [vmem:[%s4000_s22 + $0x150] sm:$0xff]  ;;  %346 = vst.msk [vmem:[#allocation2 + $0x2b8] sm:$0xff] %vm316_vm0, %v4250_v53  ;;  %v373_v55 = vld [vmem:[%s4000_s22 + $0x121] sm:$0xff]  ;;  %v4278_v59 = vld [vmem:[%s4000_s22 + $0x139] sm:$0xff] }
  0x2c   : > { %345 = vst.msk [vmem:[#allocation2 + $0x2a0] sm:$0xff] %vm316_vm0, %v4247_v52  ;;  %v374_v54 = vld [vmem:[%s4000_s22 + $0x129] sm:$0xff]  ;;  %v4275_v58 = vld [vmem:[%s4000_s22 + $0x141] sm:$0xff]  ;;  %v4285_v60 = vld [vmem:[%s4000_s22 + $0x159] sm:$0xff] }
  0x2d   : > { %439 = vrot.lane.b32.xlu1 %v4061_v14, %s3938_s23  ;;  %437 = vrot.lane.b32.xlu0 %v4064_v15, %s3938_s23  ;;  %v4263_v56 = vld [vmem:[%s4000_s22 + $0x168] sm:$0xff]  ;;  %v4266_v57 = vld [vmem:[%s4000_s22 + $0x170] sm:$0xff]  ;;  %6020 = vst [vmem:[#allocation3_spill] sm:$0xff] %v4285_v60 }
  0x2e   : > { %347 = vst.msk [vmem:[#allocation2 + $0x2d0] sm:$0xff] %vm316_vm0, %v4263_v56  ;;  %348 = vst.msk [vmem:[#allocation2 + $0x2e8] sm:$0xff] %vm316_vm0, %v4266_v57  ;;  %v4288_v61 = vld [vmem:[%s4000_s22 + $0x151] sm:$0xff]  ;;  %v4298_v63 = vld [vmem:[%s4000_s22 + $0x169] sm:$0xff] }
  0x2f   : > { %6021 = vst [vmem:[#allocation4_spill] sm:$0xff] %v4288_v61  ;;  %v4295_v62 = vld [vmem:[%s4000_s22 + $0x171] sm:$0xff]  ;;  %6023 = vst [vmem:[#allocation6_spill] sm:$0xff] %v4298_v63  ;;  %v542_v3 = vld [vmem:[%s4000_s22 + $0x2] sm:$0xff] }
  0x30   : > { %6022 = vst [vmem:[#allocation5_spill] sm:$0xff] %v4295_v62  ;;  %v543_v1 = vld [vmem:[%s4000_s22 + $0xa] sm:$0xff]  ;;  %v4309_v13 = vld [vmem:[%s4000_s22 + $0x22] sm:$0xff]  ;;  %v4312_v17 = vld [vmem:[%s4000_s22 + $0x1a] sm:$0xff] }
  0x31   : > { %443 = vrot.lane.b32.xlu1 %v4076_v18, %s3938_s23  ;;  %441 = vrot.lane.b32.xlu0 %v4090_v21, %s3938_s23  ;;  %6024 = vst [vmem:[#allocation7_spill] sm:$0xff] %v4309_v13 }
  0x35   : > { %447 = vrot.lane.b32.xlu1 %v4126_v29, %s3938_s23  ;;  %445 = vrot.lane.b32.xlu0 %v4129_v30, %s3938_s23 }
  0x39   : > { %451 = vrot.lane.b32.xlu1 %v4201_v42, %s3938_s23  ;;  %449 = vrot.lane.b32.xlu0 %v4204_v43, %s3938_s23 }
  0x3d   : > { %455 = vrot.lane.b32.xlu1 %v4221_v46, %s3938_s23  ;;  %453 = vrot.lane.b32.xlu0 %v4224_v47, %s3938_s23 }
  0x41   : > { %459 = vrot.lane.b32.xlu1 %v4241_v50, %s3938_s23  ;;  %457 = vrot.lane.b32.xlu0 %v4244_v51, %s3938_s23 }
  0x45   : > { %463 = vrot.lane.b32.xlu1 %v374_v54, %s3938_s23  ;;  %461 = vrot.lane.b32.xlu0 %v373_v55, %s3938_s23  ;;  %v4319_v54 = vld [vmem:[%s4000_s22 + $0x3a] sm:$0xff]  ;;  %v4322_v55 = vld [vmem:[%s4000_s22 + $0x32] sm:$0xff] }
  0x46   : > { %6025 = vst [vmem:[#allocation8_spill] sm:$0xff] %v4319_v54  ;;  %6026 = vst [vmem:[#allocation9_spill] sm:$0xff] %v4322_v55 }
  0x49   : > { %467 = vrot.lane.b32.xlu1 %v4275_v58, %s3938_s23  ;;  %465 = vrot.lane.b32.xlu0 %v4278_v59, %s3938_s23 }
  0x4d   : > { %471 = vrot.lane.b32.xlu1 %v4285_v60, %s3938_s23  ;;  %469 = vrot.lane.b32.xlu0 %v4288_v61, %s3938_s23  ;;  %v554_v60 = vld [vmem:[%s4000_s22 + $0x92] sm:$0xff] }
  0x51   : > { %475 = vrot.lane.b32.xlu1 %v4295_v62, %s3938_s23  ;;  %473 = vrot.lane.b32.xlu0 %v4298_v63, %s3938_s23  ;;  %v551_v62 = vld [vmem:[%s4000_s22 + $0x6a] sm:$0xff]  ;;  %v550_v63 = vld [vmem:[%s4000_s22 + $0x62] sm:$0xff] }
  0x55   : > { %608 = vrot.lane.b32.xlu1 %v543_v1, %s3939_s24  ;;  %606 = vrot.lane.b32.xlu0 %v542_v3, %s3939_s24  ;;  %v549_v1 = vld [vmem:[%s4000_s22 + $0x52] sm:$0xff]  ;;  %v4330_v3 = vld [vmem:[%s4000_s22 + $0x4a] sm:$0xff] }
  0x56   : > { %6027 = vst [vmem:[#allocation10_spill] sm:$0xff] %v4330_v3 }
  0x59   : > { %612 = vrot.lane.b32.xlu1 %v4309_v13, %s3939_s24  ;;  %610 = vrot.lane.b32.xlu0 %v4312_v17, %s3939_s24  ;;  %v564_v13 = vld [vmem:[%s4000_s22 + $0x10a] sm:$0xff] }
  0x5d   : > { %616 = vrot.lane.b32.xlu1 %v4319_v54, %s3939_s24  ;;  %614 = vrot.lane.b32.xlu0 %v4322_v55, %s3939_s24  ;;  %v553_v54 = vld [vmem:[%s4000_s22 + $0x82] sm:$0xff]  ;;  %v552_v55 = vld [vmem:[%s4000_s22 + $0x7a] sm:$0xff] }
  0x61   : > { %620 = vrot.lane.b32.xlu1 %v549_v1, %s3939_s24  ;;  %618 = vrot.lane.b32.xlu0 %v4330_v3, %s3939_s24  ;;  %v555_v1 = vld [vmem:[%s4000_s22 + $0x9a] sm:$0xff]  ;;  %v557_v3 = vld [vmem:[%s4000_s22 + $0xb2] sm:$0xff] }
  0x65   : > { %624 = vrot.lane.b32.xlu1 %v551_v62, %s3939_s24  ;;  %622 = vrot.lane.b32.xlu0 %v550_v63, %s3939_s24  ;;  %v556_v62 = vld [vmem:[%s4000_s22 + $0xaa] sm:$0xff] }
  0x66   : > { %v559_v63 = vld [vmem:[%s4000_s22 + $0xca] sm:$0xff] }
  0x69   : > { %628 = vrot.lane.b32.xlu1 %v553_v54, %s3939_s24  ;;  %626 = vrot.lane.b32.xlu0 %v552_v55, %s3939_s24  ;;  %v558_v54 = vld [vmem:[%s4000_s22 + $0xc2] sm:$0xff] }
  0x6a   : > { %v561_v55 = vld [vmem:[%s4000_s22 + $0xe2] sm:$0xff] }
  0x6d   : > { %632 = vrot.lane.b32.xlu1 %v555_v1, %s3939_s24  ;;  %630 = vrot.lane.b32.xlu0 %v554_v60, %s3939_s24  ;;  %v560_v1 = vld [vmem:[%s4000_s22 + $0xda] sm:$0xff] }
  0x6e   : > { %v563_v60 = vld [vmem:[%s4000_s22 + $0xfa] sm:$0xff] }
  0x71   : > { %636 = vrot.lane.b32.xlu1 %v557_v3, %s3939_s24  ;;  %634 = vrot.lane.b32.xlu0 %v556_v62, %s3939_s24  ;;  %v562_v3 = vld [vmem:[%s4000_s22 + $0xf2] sm:$0xff] }
  0x72   : > { %v565_v62 = vld [vmem:[%s4000_s22 + $0x112] sm:$0xff] }
  0x75   : > { %640 = vrot.lane.b32.xlu1 %v559_v63, %s3939_s24  ;;  %638 = vrot.lane.b32.xlu0 %v558_v54, %s3939_s24  ;;  %v567_v63 = vld [vmem:[%s4000_s22 + $0x12a] sm:$0xff]  ;;  %v566_v54 = vld [vmem:[%s4000_s22 + $0x122] sm:$0xff] }
  0x79   : > { %644 = vrot.lane.b32.xlu1 %v561_v55, %s3939_s24  ;;  %642 = vrot.lane.b32.xlu0 %v560_v1, %s3939_s24  ;;  %v4372_v55 = vld [vmem:[%s4000_s22 + $0x142] sm:$0xff]  ;;  %v4375_v1 = vld [vmem:[%s4000_s22 + $0x13a] sm:$0xff] }
  0x7a   : > { %6028 = vst [vmem:[#allocation11_spill] sm:$0xff] %v4372_v55 }
  0x7d   : > { %648 = vrot.lane.b32.xlu1 %v563_v60, %s3939_s24  ;;  %646 = vrot.lane.b32.xlu0 %v562_v3, %s3939_s24 }
  0x81   : > { %652 = vrot.lane.b32.xlu1 %v565_v62, %s3939_s24  ;;  %650 = vrot.lane.b32.xlu0 %v564_v13, %s3939_s24  ;;  %v4384_v13 = vld [vmem:[%s4000_s22 + $0x15a] sm:$0xff]  ;;  %v4387_v62 = vld [vmem:[%s4000_s22 + $0x152] sm:$0xff] }
  0x85   : > { %656 = vrot.lane.b32.xlu1 %v567_v63, %s3939_s24  ;;  %654 = vrot.lane.b32.xlu0 %v566_v54, %s3939_s24 }
  0x87   : > { %v418_v60 = vpop.permute.xlu1 %417  ;;  %v414_v3 = vpop.permute.xlu0 %413 }
  0x88   : > { %512 = vst.msk [vmem:[#allocation2 + $0x30] sm:$0xff] %vm509_vm1, %v418_v60  ;;  %510 = vst.msk [vmem:[#allocation2] sm:$0xff] %vm509_vm1, %v414_v3  ;;  %v4396_v60 = vld [vmem:[%s4000_s22 + $0x172] sm:$0xff]  ;;  %v4399_v3 = vld [vmem:[%s4000_s22 + $0x16a] sm:$0xff] }
  0x89   : > { %660 = vrot.lane.b32.xlu1 %v4372_v55, %s3939_s24  ;;  %658 = vrot.lane.b32.xlu0 %v4375_v1, %s3939_s24 }
  0x8b   : > { %v420_v63 = vpop.permute.xlu1 %419  ;;  %v416_v54 = vpop.permute.xlu0 %415 }
  0x8c   : > { %513 = vst.msk [vmem:[#allocation2 + $0x48] sm:$0xff] %vm509_vm1, %v420_v63  ;;  %511 = vst.msk [vmem:[#allocation2 + $0x18] sm:$0xff] %vm509_vm1, %v416_v54 }
  0x8d   : > { %664 = vrot.lane.b32.xlu1 %v4384_v13, %s3939_s24  ;;  %662 = vrot.lane.b32.xlu0 %v4387_v62, %s3939_s24 }
  0x8f   : > { %v424_v55 = vpop.permute.xlu1 %423  ;;  %v422_v61 = vpop.permute.xlu0 %421 }
  0x90   : > { %515 = vst.msk [vmem:[#allocation2 + $0x78] sm:$0xff] %vm509_vm1, %v424_v55  ;;  %514 = vst.msk [vmem:[#allocation2 + $0x60] sm:$0xff] %vm509_vm1, %v422_v61 }
  0x91   : > { %668 = vrot.lane.b32.xlu1 %v4396_v60, %s3939_s24  ;;  %666 = vrot.lane.b32.xlu0 %v4399_v3, %s3939_s24 }
  0x93   : > { %v428_v63 = vpop.permute.xlu1 %427  ;;  %v426_v54 = vpop.permute.xlu0 %425 }
  0x94   : > { %517 = vst.msk [vmem:[#allocation2 + $0xa8] sm:$0xff] %vm509_vm1, %v428_v63  ;;  %516 = vst.msk [vmem:[#allocation2 + $0x90] sm:$0xff] %vm509_vm1, %v426_v54 }
  0x95   : > { %804 = vrot.lane.b32.xlu1 %v4070_v16, %s3940_s25  ;;  %802 = vrot.lane.b32.xlu0 %v4057_v12, %s3940_s25 }
  0x97   : > { %v432_v61 = vpop.permute.xlu1 %431  ;;  %v430_v55 = vpop.permute.xlu0 %429 }
  0x98   : > { %519 = vst.msk [vmem:[#allocation2 + $0xd8] sm:$0xff] %vm509_vm1, %v432_v61  ;;  %518 = vst.msk [vmem:[#allocation2 + $0xc0] sm:$0xff] %vm509_vm1, %v430_v55 }
  0x99   : > { %808 = vrot.lane.b32.xlu1 %v4080_v19, %s3940_s25  ;;  %806 = vrot.lane.b32.xlu0 %v4083_v20, %s3940_s25 }
  0x9b   : > { %v436_v63 = vpop.permute.xlu1 %435  ;;  %v434_v54 = vpop.permute.xlu0 %433 }
  0x9c   : > { %521 = vst.msk [vmem:[#allocation2 + $0x108] sm:$0xff] %vm509_vm1, %v436_v63  ;;  %520 = vst.msk [vmem:[#allocation2 + $0xf0] sm:$0xff] %vm509_vm1, %v434_v54 }
  0x9d   : > { %812 = vrot.lane.b32.xlu1 %v4097_v22, %s3940_s25  ;;  %810 = vrot.lane.b32.xlu0 %v4102_v23, %s3940_s25 }
  0x9f   : > { %v440_v12 = vpop.permute.xlu1 %439  ;;  %v438_v16 = vpop.permute.xlu0 %437 }
  0xa0   : > { %523 = vst.msk [vmem:[#allocation2 + $0x138] sm:$0xff] %vm509_vm1, %v440_v12  ;;  %522 = vst.msk [vmem:[#allocation2 + $0x120] sm:$0xff] %vm509_vm1, %v438_v16 }
  0xa1   : > { %816 = vrot.lane.b32.xlu1 %v4105_v24, %s3940_s25  ;;  %814 = vrot.lane.b32.xlu0 %v4108_v25, %s3940_s25 }
  0xa3   : > { %v444_v61 = vpop.permute.xlu1 %443  ;;  %v442_v55 = vpop.permute.xlu0 %441 }
  0xa4   : > { %525 = vst.msk [vmem:[#allocation2 + $0x168] sm:$0xff] %vm509_vm1, %v444_v61  ;;  %524 = vst.msk [vmem:[#allocation2 + $0x150] sm:$0xff] %vm509_vm1, %v442_v55 }
  0xa5   : > { %820 = vrot.lane.b32.xlu1 %v4117_v26, %s3940_s25  ;;  %818 = vrot.lane.b32.xlu0 %v4120_v27, %s3940_s25 }
  0xa7   : > { %v448_v63 = vpop.permute.xlu1 %447  ;;  %v446_v54 = vpop.permute.xlu0 %445 }
  0xa8   : > { %527 = vst.msk [vmem:[#allocation2 + $0x198] sm:$0xff] %vm509_vm1, %v448_v63  ;;  %526 = vst.msk [vmem:[#allocation2 + $0x180] sm:$0xff] %vm509_vm1, %v446_v54  ;;  %v2104_v54 = vld [vmem:[%s5998_s2 + $0x10] sm:$0xff] }
  0xa9   : > { %824 = vrot.lane.b32.xlu1 %v4123_v28, %s3940_s25  ;;  %822 = vrot.lane.b32.xlu0 %v4138_v31, %s3940_s25 }
  0xab   : > { %v452_v12 = vpop.permute.xlu1 %451  ;;  %v450_v16 = vpop.permute.xlu0 %449 }
  0xac   : > { %529 = vst.msk [vmem:[#allocation2 + $0x1c8] sm:$0xff] %vm509_vm1, %v452_v12  ;;  %528 = vst.msk [vmem:[#allocation2 + $0x1b0] sm:$0xff] %vm509_vm1, %v450_v16 }
  0xad   : > { %828 = vrot.lane.b32.xlu1 %v4141_v32, %s3940_s25  ;;  %826 = vrot.lane.b32.xlu0 %v4144_v33, %s3940_s25 }
  0xaf   : > { %v456_v26 = vpop.permute.xlu1 %455  ;;  %v454_v61 = vpop.permute.xlu0 %453 }
  0xb0   : > { %531 = vst.msk [vmem:[#allocation2 + $0x1f8] sm:$0xff] %vm509_vm1, %v456_v26  ;;  %530 = vst.msk [vmem:[#allocation2 + $0x1e0] sm:$0xff] %vm509_vm1, %v454_v61  ;;  %v2106_v26 = vld [vmem:[%s5998_s2 + $0x20] sm:$0xff]  ;;  %v2107_v61 = vld [vmem:[%s5998_s2 + $0x28] sm:$0xff] }
  0xb1   : > { %832 = vrot.lane.b32.xlu1 %v4157_v34, %s3940_s25  ;;  %830 = vrot.lane.b32.xlu0 %v4160_v35, %s3940_s25 }
  0xb3   : > { %v460_v28 = vpop.permute.xlu1 %459  ;;  %v458_v31 = vpop.permute.xlu0 %457 }
  0xb4   : > { %533 = vst.msk [vmem:[#allocation2 + $0x228] sm:$0xff] %vm509_vm1, %v460_v28  ;;  %532 = vst.msk [vmem:[#allocation2 + $0x210] sm:$0xff] %vm509_vm1, %v458_v31  ;;  %v3689_v28 = vpack.c.bf16 %v2107_v61, %v2106_v26  ;;  %v4522_v31 = vld [vmem:[%s4000_s22 + $0x188] sm:$0xff] }
  0xb5   : > { %836 = vrot.lane.b32.xlu1 %v4167_v36, %s3940_s25  ;;  %834 = vrot.lane.b32.xlu0 %v4170_v37, %s3940_s25 }
  0xb7   : > { %v464_v32 = vpop.permute.xlu1 %463  ;;  %v462_v33 = vpop.permute.xlu0 %461 }
  0xb8   : > { %535 = vst.msk [vmem:[#allocation2 + $0x258] sm:$0xff] %vm509_vm1, %v464_v32  ;;  %534 = vst.msk [vmem:[#allocation2 + $0x240] sm:$0xff] %vm509_vm1, %v462_v33  ;;  %v4525_v32 = vld [vmem:[%s4000_s22 + $0x180] sm:$0xff] }
  0xb9   : > { %840 = vrot.lane.b32.xlu1 %v4173_v38, %s3940_s25  ;;  %838 = vrot.lane.b32.xlu0 %v4182_v39, %s3940_s25 }
  0xbb   : > { %v468_v34 = vpop.permute.xlu1 %467  ;;  %v466_v35 = vpop.permute.xlu0 %465 }
  0xbc   : > { %537 = vst.msk [vmem:[#allocation2 + $0x288] sm:$0xff] %vm509_vm1, %v468_v34  ;;  %536 = vst.msk [vmem:[#allocation2 + $0x270] sm:$0xff] %vm509_vm1, %v466_v35  ;;  %v2108_v35 = vld [vmem:[%s5998_s2 + $0x30] sm:$0xff] }
  0xbd   : > { %844 = vrot.lane.b32.xlu1 %v4185_v40, %s3940_s25  ;;  %842 = vrot.lane.b32.xlu0 %v4188_v41, %s3940_s25  ;;  %v2102_v40 = vld [vmem:[%s5998_s2] sm:$0xff]  ;;  %v2103_v41 = vld [vmem:[%s5998_s2 + $0x8] sm:$0xff] }
  0xbe   : > { %v3683_v55 = vpack.c.bf16 %v2103_v41, %v2102_v40  ;;  %v2110_v40 = vld [vmem:[%s5998_s2 + $0x40] sm:$0xff]  ;;  %v2111_v41 = vld [vmem:[%s5998_s2 + $0x48] sm:$0xff] }
  0xbf   : > { %v472_v36 = vpop.permute.xlu1 %471  ;;  %v470_v37 = vpop.permute.xlu0 %469 }
  0xc0   : > { %539 = vst.msk [vmem:[#allocation2 + $0x2b8] sm:$0xff] %vm509_vm1, %v472_v36  ;;  %538 = vst.msk [vmem:[#allocation2 + $0x2a0] sm:$0xff] %vm509_vm1, %v470_v37  ;;  %v2109_v36 = vld [vmem:[%s5998_s2 + $0x38] sm:$0xff] }
  0xc1   : > { %848 = vrot.lane.b32.xlu1 %v4210_v45, %s3940_s25  ;;  %846 = vrot.lane.b32.xlu0 %v4207_v44, %s3940_s25  ;;  %v3941_v44 = vmov 0.0|0.0   ;;  %v3692_v37 = vpack.c.bf16 %v2109_v36, %v2108_v35  ;;  %v2118_v35 = vld [vmem:[%s5998_s2 + $0x80] sm:$0xff]  ;;  %v2119_v36 = vld [vmem:[%s5998_s2 + $0x88] sm:$0xff] }
  0xc2   : > { %3682 = vmatprep.subr.bf16.mxu0 %v3941_v44  ;;  %3762 = vmatprep.subr.bf16.mxu1 %v3941_v44 }
  0xc3   : > { %v476_v38 = vpop.permute.xlu1 %475  ;;  %v474_v39 = vpop.permute.xlu0 %473  ;;  %3684 = vmatpush1.bf16.msra.mxu0 %v3683_v55  ;;  %3778 = vmatpush1.bf16.msra.mxu1 %v3683_v55  ;;  %v3695_v55 = vpack.c.bf16 %v2111_v41, %v2110_v40  ;;  %v2122_v41 = vld [vmem:[%s5998_s2 + $0xa0] sm:$0xff] }
  0xc4   : > { %541 = vst.msk [vmem:[#allocation2 + $0x2e8] sm:$0xff] %vm509_vm1, %v476_v38  ;;  %540 = vst.msk [vmem:[#allocation2 + $0x2d0] sm:$0xff] %vm509_vm1, %v474_v39  ;;  %3685 = vmatprep.subr.bf16.mxu0 %v3941_v44  ;;  %3763 = vmatprep.subr.bf16.mxu1 %v3941_v44 }
  0xc5   : > { %852 = vrot.lane.b32.xlu1 %v4230_v49, %s3940_s25  ;;  %850 = vrot.lane.b32.xlu0 %v4227_v48, %s3940_s25  ;;  %v2105_v49 = vld [vmem:[%s5998_s2 + $0x18] sm:$0xff] }
  0xc6   : > { %v3686_v48 = vpack.c.bf16 %v2105_v49, %v2104_v54  ;;  %v2112_v54 = vld [vmem:[%s5998_s2 + $0x50] sm:$0xff]  ;;  %v2113_v49 = vld [vmem:[%s5998_s2 + $0x58] sm:$0xff] }
  0xc7   : > { %v609_v45 = vpop.permute.xlu1 %608  ;;  %v607_v63 = vpop.permute.xlu0 %606 }
  0xc8   : > { %704 = vst.msk [vmem:[#allocation2 + $0x18] sm:$0xff] %vm702_vm2, %v609_v45  ;;  %703 = vst.msk [vmem:[#allocation2] sm:$0xff] %vm702_vm2, %v607_v63  ;;  %3687 = vmatpush1.bf16.msra.mxu0 %v3686_v48  ;;  %3779 = vmatpush1.bf16.msra.mxu1 %v3686_v48 }
  0xc9   : > { %856 = vrot.lane.b32.xlu1 %v4250_v53, %s3940_s25  ;;  %854 = vrot.lane.b32.xlu0 %v4247_v52, %s3940_s25 }
  0xca   : > { %3688 = vmatprep.subr.bf16.mxu0 %v3941_v44  ;;  %3764 = vmatprep.subr.bf16.mxu1 %v3941_v44 }
  0xcb   : > { %v613_v12 = vpop.permute.xlu1 %612  ;;  %v611_v16 = vpop.permute.xlu0 %610 }
  0xcc   : > { %706 = vst.msk [vmem:[#allocation2 + $0x48] sm:$0xff] %vm702_vm2, %v613_v12  ;;  %705 = vst.msk [vmem:[#allocation2 + $0x30] sm:$0xff] %vm702_vm2, %v611_v16  ;;  %3690 = vmatpush1.bf16.msra.mxu0 %v3689_v28  ;;  %3780 = vmatpush1.bf16.msra.mxu1 %v3689_v28  ;;  %v2114_v12 = vld [vmem:[%s5998_s2 + $0x60] sm:$0xff]  ;;  %v2115_v16 = vld [vmem:[%s5998_s2 + $0x68] sm:$0xff] }
  0xcd   : > { %860 = vrot.lane.b32.xlu1 %v4266_v57, %s3940_s25  ;;  %858 = vrot.lane.b32.xlu0 %v4263_v56, %s3940_s25  ;;  %v2116_v28 = vld [vmem:[%s5998_s2 + $0x70] sm:$0xff] }
  0xce   : > { %3691 = vmatprep.subr.bf16.mxu0 %v3941_v44  ;;  %3765 = vmatprep.subr.bf16.mxu1 %v3941_v44 }
  0xcf   : > { %v617_v33 = vpop.permute.xlu1 %616  ;;  %v615_v34 = vpop.permute.xlu0 %614 }
  0xd0   : > { %708 = vst.msk [vmem:[#allocation2 + $0x78] sm:$0xff] %vm702_vm2, %v617_v33  ;;  %707 = vst.msk [vmem:[#allocation2 + $0x60] sm:$0xff] %vm702_vm2, %v615_v34  ;;  %3693 = vmatpush1.bf16.msra.mxu0 %v3692_v37  ;;  %3781 = vmatpush1.bf16.msra.mxu1 %v3692_v37  ;;  %v2117_v33 = vld [vmem:[%s5998_s2 + $0x78] sm:$0xff] }
  0xd1   : > { %864 = vrot.lane.b32.xlu1 %v4522_v31, %s3940_s25  ;;  %862 = vrot.lane.b32.xlu0 %v4525_v32, %s3940_s25  ;;  %s3942_s25 = smov 16  }
  0xd2   : > { %3694 = vmatprep.subr.bf16.mxu0 %v3941_v44  ;;  %3766 = vmatprep.subr.bf16.mxu1 %v3941_v44 }
  0xd3   : > { %v621_v38 = vpop.permute.xlu1 %620  ;;  %v619_v39 = vpop.permute.xlu0 %618 }
  0xd4   : > { %710 = vst.msk [vmem:[#allocation2 + $0xa8] sm:$0xff] %vm702_vm2, %v621_v38  ;;  %709 = vst.msk [vmem:[#allocation2 + $0x90] sm:$0xff] %vm702_vm2, %v619_v39  ;;  %3696 = vmatpush1.bf16.msra.mxu0 %v3695_v55  ;;  %3782 = vmatpush1.bf16.msra.mxu1 %v3695_v55  ;;  %v2120_v38 = vld [vmem:[%s5998_s2 + $0x90] sm:$0xff]  ;;  %v2121_v39 = vld [vmem:[%s5998_s2 + $0x98] sm:$0xff] }
  0xd5   : > { %1030 = vrot.lane.b32.xlu1 %v4010_v2, %s3942_s25  ;;  %1028 = vrot.lane.b32.xlu0 %v4003_v0, %s3942_s25  ;;  %v3698_v2 = vpack.c.bf16 %v2113_v49, %v2112_v54  ;;  %v2123_v55 = vld [vmem:[%s5998_s2 + $0xa8] sm:$0xff]  ;;  %v2125_v54 = vld [vmem:[%s5998_s2 + $0xb8] sm:$0xff] }
  0xd6   : > { %3697 = vmatprep.subr.bf16.mxu0 %v3941_v44  ;;  %3767 = vmatprep.subr.bf16.mxu1 %v3941_v44 }
  0xd7   : > { %v625_v45 = vpop.permute.xlu1 %624  ;;  %v623_v63 = vpop.permute.xlu0 %622 }
  0xd8   : > { %712 = vst.msk [vmem:[#allocation2 + $0xd8] sm:$0xff] %vm702_vm2, %v625_v45  ;;  %711 = vst.msk [vmem:[#allocation2 + $0xc0] sm:$0xff] %vm702_vm2, %v623_v63  ;;  %3699 = vmatpush1.bf16.msra.mxu0 %v3698_v2  ;;  %3783 = vmatpush1.bf16.msra.mxu1 %v3698_v2  ;;  %v2124_v63 = vld [vmem:[%s5998_s2 + $0xb0] sm:$0xff]  ;;  %v2126_v2 = vld [vmem:[%s5998_s2 + $0xc0] sm:$0xff] }
  0xd9   : > { %1034 = vrot.lane.b32.xlu1 %v4017_v4, %s3942_s25  ;;  %1032 = vrot.lane.b32.xlu0 %v4020_v5, %s3942_s25  ;;  %v3701_v4 = vpack.c.bf16 %v2115_v16, %v2114_v12  ;;  %v2128_v12 = vld [vmem:[%s5998_s2 + $0xd0] sm:$0xff]  ;;  %v2129_v16 = vld [vmem:[%s5998_s2 + $0xd8] sm:$0xff] }
  0xda   : > { %3700 = vmatprep.subr.bf16.mxu0 %v3941_v44  ;;  %3768 = vmatprep.subr.bf16.mxu1 %v3941_v44 }
  0xdb   : > { %v629_v0 = vpop.permute.xlu1 %628  ;;  %v627_v48 = vpop.permute.xlu0 %626 }
  0xdc   : > { %714 = vst.msk [vmem:[#allocation2 + $0x108] sm:$0xff] %vm702_vm2, %v629_v0  ;;  %713 = vst.msk [vmem:[#allocation2 + $0xf0] sm:$0xff] %vm702_vm2, %v627_v48  ;;  %3702 = vmatpush1.bf16.msra.mxu0 %v3701_v4  ;;  %3784 = vmatpush1.bf16.msra.mxu1 %v3701_v4  ;;  %v2127_v0 = vld [vmem:[%s5998_s2 + $0xc8] sm:$0xff] }
  0xdd   : > { %1038 = vrot.lane.b32.xlu1 %v4027_v6, %s3942_s25  ;;  %1036 = vrot.lane.b32.xlu0 %v4030_v7, %s3942_s25  ;;  %v3704_v6 = vpack.c.bf16 %v2117_v33, %v2116_v28  ;;  %v2132_v33 = vld [vmem:[%s5998_s2 + $0xf0] sm:$0xff] }
  0xde   : > { %3703 = vmatprep.subr.bf16.mxu0 %v3941_v44  ;;  %3769 = vmatprep.subr.bf16.mxu1 %v3941_v44 }
  0xdf   : > { %v633_v26 = vpop.permute.xlu1 %632  ;;  %v631_v61 = vpop.permute.xlu0 %630 }
  0xe0   : > { %716 = vst.msk [vmem:[#allocation2 + $0x138] sm:$0xff] %vm702_vm2, %v633_v26  ;;  %715 = vst.msk [vmem:[#allocation2 + $0x120] sm:$0xff] %vm702_vm2, %v631_v61  ;;  %3705 = vmatpush1.bf16.msra.mxu0 %v3704_v6  ;;  %3785 = vmatpush1.bf16.msra.mxu1 %v3704_v6  ;;  %v2130_v26 = vld [vmem:[%s5998_s2 + $0xe0] sm:$0xff]  ;;  %v2131_v61 = vld [vmem:[%s5998_s2 + $0xe8] sm:$0xff] }
  0xe1   : > { %1042 = vrot.lane.b32.xlu1 %v4037_v8, %s3942_s25  ;;  %1040 = vrot.lane.b32.xlu0 %v4040_v9, %s3942_s25  ;;  %v3707_v8 = vpack.c.bf16 %v2119_v36, %v2118_v35  ;;  %v2133_v6 = vld [vmem:[%s5998_s2 + $0xf8] sm:$0xff]  ;;  %v6031_v35 = vld [vmem:[#allocation7_spill] sm:$0xff] }
  0xe2   : > { %3706 = vmatprep.subr.bf16.mxu0 %v3941_v44  ;;  %3770 = vmatprep.subr.bf16.mxu1 %v3941_v44 }
  0xe3   : > { %v637_v7 = vpop.permute.xlu1 %636  ;;  %v635_v34 = vpop.permute.xlu0 %634 }
  0xe4   : > { %718 = vst.msk [vmem:[#allocation2 + $0x168] sm:$0xff] %vm702_vm2, %v637_v7  ;;  %717 = vst.msk [vmem:[#allocation2 + $0x150] sm:$0xff] %vm702_vm2, %v635_v34  ;;  %3708 = vmatpush1.bf16.msra.mxu0 %v3707_v8  ;;  %3786 = vmatpush1.bf16.msra.mxu1 %v3707_v8 }
  0xe5   : > { %1046 = vrot.lane.b32.xlu1 %v4047_v10, %s3942_s25  ;;  %1044 = vrot.lane.b32.xlu0 %v4050_v11, %s3942_s25  ;;  %v3710_v10 = vpack.c.bf16 %v2121_v39, %v2120_v38  ;;  %v3912_v38 = vld [vmem:[%s4000_s22 + $0x39] sm:$0xff] }
  0xe6   : > { %3709 = vmatprep.subr.bf16.mxu0 %v3941_v44  ;;  %3771 = vmatprep.subr.bf16.mxu1 %v3941_v44 }
  0xe7   : > { %v641_v9 = vpop.permute.xlu1 %640  ;;  %v639_v37 = vpop.permute.xlu0 %638 }
  0xe8   : > { %720 = vst.msk [vmem:[#allocation2 + $0x198] sm:$0xff] %vm702_vm2, %v641_v9  ;;  %719 = vst.msk [vmem:[#allocation2 + $0x180] sm:$0xff] %vm702_vm2, %v639_v37  ;;  %3711 = vmatpush1.bf16.msra.mxu0 %v3710_v10  ;;  %3787 = vmatpush1.bf16.msra.mxu1 %v3710_v10  ;;  %v6032_v37 = vld [vmem:[#allocation3_spill] sm:$0xff] }
  0xe9   : > { %1050 = vrot.lane.b32.xlu1 %v4061_v14, %s3942_s25  ;;  %1048 = vrot.lane.b32.xlu0 %v4064_v15, %s3942_s25  ;;  %v3713_v14 = vpack.c.bf16 %v2123_v55, %v2122_v41  ;;  %v3913_v55 = vld [vmem:[%s4000_s22 + $0x49] sm:$0xff] }
  0xea   : > { %3712 = vmatprep.subr.bf16.mxu0 %v3941_v44  ;;  %3772 = vmatprep.subr.bf16.mxu1 %v3941_v44 }
  0xeb   : > { %v645_v11 = vpop.permute.xlu1 %644  ;;  %v643_v40 = vpop.permute.xlu0 %642 }
  0xec   : > { %722 = vst.msk [vmem:[#allocation2 + $0x1c8] sm:$0xff] %vm702_vm2, %v645_v11  ;;  %721 = vst.msk [vmem:[#allocation2 + $0x1b0] sm:$0xff] %vm702_vm2, %v643_v40  ;;  %3714 = vmatpush1.bf16.msra.mxu0 %v3713_v14  ;;  %3788 = vmatpush1.bf16.msra.mxu1 %v3713_v14 }
  0xed   : > { %1054 = vrot.lane.b32.xlu1 %v4076_v18, %s3942_s25  ;;  %1052 = vrot.lane.b32.xlu0 %v4090_v21, %s3942_s25  ;;  %v3716_v18 = vpack.c.bf16 %v2125_v54, %v2124_v63 }
  0xee   : > { %3715 = vmatprep.subr.bf16.mxu0 %v3941_v44  ;;  %3773 = vmatprep.subr.bf16.mxu1 %v3941_v44 }
  0xef   : > { %v649_v15 = vpop.permute.xlu1 %648  ;;  %v647_v45 = vpop.permute.xlu0 %646 }
  0xf0   : > { %724 = vst.msk [vmem:[#allocation2 + $0x1f8] sm:$0xff] %vm702_vm2, %v649_v15  ;;  %723 = vst.msk [vmem:[#allocation2 + $0x1e0] sm:$0xff] %vm702_vm2, %v647_v45  ;;  %3717 = vmatpush1.bf16.msra.mxu0 %v3716_v18  ;;  %3789 = vmatpush1.bf16.msra.mxu1 %v3716_v18 }
  0xf1   : > { %1058 = vrot.lane.b32.xlu1 %v4126_v29, %s3942_s25  ;;  %1056 = vrot.lane.b32.xlu0 %v4129_v30, %s3942_s25  ;;  %v3719_v29 = vpack.c.bf16 %v2127_v0, %v2126_v2  ;;  %v6037_v0 = vld [vmem:[#allocation10_spill] sm:$0xff] }
  0xf2   : > { %3718 = vmatprep.subr.bf16.mxu0 %v3941_v44  ;;  %3774 = vmatprep.subr.bf16.mxu1 %v3941_v44 }
  0xf3   : > { %v653_v21 = vpop.permute.xlu1 %652  ;;  %v651_v49 = vpop.permute.xlu0 %650 }
  0xf4   : > { %726 = vst.msk [vmem:[#allocation2 + $0x228] sm:$0xff] %vm702_vm2, %v653_v21  ;;  %725 = vst.msk [vmem:[#allocation2 + $0x210] sm:$0xff] %vm702_vm2, %v651_v49  ;;  %3720 = vmatpush1.bf16.msra.mxu0 %v3719_v29  ;;  %3790 = vmatpush1.bf16.msra.mxu1 %v3719_v29  ;;  %v6036_v49 = vld [vmem:[#allocation5_spill] sm:$0xff] }
  0xf5   : > { %1062 = vrot.lane.b32.xlu1 %v4201_v42, %s3942_s25  ;;  %1060 = vrot.lane.b32.xlu0 %v4204_v43, %s3942_s25  ;;  %v3722_v42 = vpack.c.bf16 %v2129_v16, %v2128_v12 }
  0xf6   : > { %3721 = vmatprep.subr.bf16.mxu0 %v3941_v44  ;;  %3775 = vmatprep.subr.bf16.mxu1 %v3941_v44 }
  0xf7   : > { %v657_v30 = vpop.permute.xlu1 %656  ;;  %v655_v48 = vpop.permute.xlu0 %654 }
  0xf8   : > { %728 = vst.msk [vmem:[#allocation2 + $0x258] sm:$0xff] %vm702_vm2, %v657_v30  ;;  %727 = vst.msk [vmem:[#allocation2 + $0x240] sm:$0xff] %vm702_vm2, %v655_v48  ;;  %3723 = vmatpush1.bf16.msra.mxu0 %v3722_v42  ;;  %3791 = vmatpush1.bf16.msra.mxu1 %v3722_v42  ;;  %v3489_v48 = vld [vmem:[%s4000_s22 + $0x61] sm:$0xff] }
  0xf9   : > { %1066 = vrot.lane.b32.xlu1 %v4221_v46, %s3942_s25  ;;  %1064 = vrot.lane.b32.xlu0 %v4224_v47, %s3942_s25  ;;  %v3725_v46 = vpack.c.bf16 %v2131_v61, %v2130_v26  ;;  %v3513_v42 = vld [vmem:[%s4000_s22 + $0x181] sm:$0xff] }
  0xfa   : > { %3724 = vmatprep.subr.bf16.mxu0 %v3941_v44  ;;  %3776 = vmatprep.subr.bf16.mxu1 %v3941_v44 }
  0xfb   : > { %v661_v43 = vpop.permute.xlu1 %660  ;;  %v659_v4 = vpop.permute.xlu0 %658 }
  0xfc   : > { %730 = vst.msk [vmem:[#allocation2 + $0x288] sm:$0xff] %vm702_vm2, %v661_v43  ;;  %729 = vst.msk [vmem:[#allocation2 + $0x270] sm:$0xff] %vm702_vm2, %v659_v4  ;;  %3726 = vmatpush1.bf16.msra.mxu0 %v3725_v46  ;;  %3792 = vmatpush1.bf16.msra.mxu1 %v3725_v46 }
  0xfd   : > { %1070 = vrot.lane.b32.xlu1 %v4241_v50, %s3942_s25  ;;  %1068 = vrot.lane.b32.xlu0 %v4244_v51, %s3942_s25  ;;  %v3728_v50 = vpack.c.bf16 %v2133_v6, %v2132_v33  ;;  %v4865_v6 = vld [vmem:[%s4000_s22 + $0x62] sm:$0xff] }
  0xfe   : > { %3727 = vmatprep.subr.bf16.mxu0 %v3941_v44  ;;  %3777 = vmatprep.subr.bf16.mxu1 %v3941_v44 }
  0xff   : > { %v665_v47 = vpop.permute.xlu1 %664  ;;  %v663_v28 = vpop.permute.xlu0 %662 }
 0x100   : > { %732 = vst.msk [vmem:[#allocation2 + $0x2b8] sm:$0xff] %vm702_vm2, %v665_v47  ;;  %731 = vst.msk [vmem:[#allocation2 + $0x2a0] sm:$0xff] %vm702_vm2, %v663_v28  ;;  %3729 = vmatpush1.bf16.msra.mxu0 %v3728_v50  ;;  %3793 = vmatpush1.bf16.msra.mxu1 %v3728_v50  ;;  %v3514_v47 = vld [vmem:[%s4000_s22 + $0x189] sm:$0xff] }
 0x101   : > { %1221 = vrot.lane.b32.xlu1 %v4312_v17, %s3943_s30  ;;  %1076 = vrot.lane.b32.xlu0 %v4278_v59, %s3942_s25  ;;  %v3490_v28 = vld [vmem:[%s4000_s22 + $0x69] sm:$0xff] }
 0x103   : > { %v669_v51 = vpop.permute.xlu1 %668  ;;  %v667_v7 = vpop.permute.xlu0 %666 }
 0x104   : > { %734 = vst.msk [vmem:[#allocation2 + $0x2e8] sm:$0xff] %vm702_vm2, %v669_v51  ;;  %733 = vst.msk [vmem:[#allocation2 + $0x2d0] sm:$0xff] %vm702_vm2, %v667_v7  ;;  %v2135_v51 = vld [vmem:[%s5998_s2 + $0x108] sm:$0xff] }
 0x105   : > { %1417 = vrot.lane.b32.xlu1 %v4083_v20, %s3944_s5  ;;  %1269 = vrot.lane.b32.xlu0 %v4375_v1, %s3943_s30  ;;  %v6029_v1 = vld [vmem:[#allocation4_spill] sm:$0xff] }
 0x107   : > { %v805_v17 = vpop.permute.xlu1 %804  ;;  %v803_v44 = vpop.permute.xlu0 %802 }
 0x108   : > { %902 = vst.msk [vmem:[#allocation2 + $0x18] sm:$0xff] %vm898_vm3, %v805_v17  ;;  %899 = vst.msk [vmem:[#allocation2] sm:$0xff] %vm898_vm3, %v803_v44 }
 0x109   : > { %903 = vst.msk [vmem:[#allocation2 + $0x20] sm:$0xff] %vm900_vm4, %v805_v17  ;;  %901 = vst.msk [vmem:[#allocation2 + $0x8] sm:$0xff] %vm900_vm4, %v803_v44  ;;  %1610 = vrot.lane.b32.xlu1 %v4020_v5, %s3945_s6  ;;  %1465 = vrot.lane.b32.xlu0 %v4247_v52, %s3944_s5  ;;  %v6030_v52 = vld [vmem:[#allocation11_spill] sm:$0xff] }
 0x10a   : > { %v3451_v17 = vld [vmem:[%s4000_s22 + $0x182] sm:$0xff] }
 0x10b   : > { %v809_v20 = vpop.permute.xlu1 %808  ;;  %v807_v59 = vpop.permute.xlu0 %806 }
 0x10c   : > { %906 = vst.msk [vmem:[#allocation2 + $0x48] sm:$0xff] %vm898_vm3, %v809_v20  ;;  %904 = vst.msk [vmem:[#allocation2 + $0x30] sm:$0xff] %vm898_vm3, %v807_v59 }
 0x10d   : > { %907 = vst.msk [vmem:[#allocation2 + $0x50] sm:$0xff] %vm900_vm4, %v809_v20  ;;  %905 = vst.msk [vmem:[#allocation2 + $0x38] sm:$0xff] %vm900_vm4, %v807_v59  ;;  %1078 = vrot.lane.b32.xlu1 %v4275_v58, %s3942_s25  ;;  %1658 = vrot.lane.b32.xlu0 %v6029_v1, %s3945_s6  ;;  %v3491_v59 = vld [vmem:[%s4000_s22 + $0x79] sm:$0xff] }
 0x10f   : > { %v813_v5 = vpop.permute.xlu1 %812  ;;  %v811_v34 = vpop.permute.xlu0 %810 }
 0x110   : > { %910 = vst.msk [vmem:[#allocation2 + $0x78] sm:$0xff] %vm898_vm3, %v813_v5  ;;  %908 = vst.msk [vmem:[#allocation2 + $0x60] sm:$0xff] %vm898_vm3, %v811_v34 }
 0x111   : > { %911 = vst.msk [vmem:[#allocation2 + $0x80] sm:$0xff] %vm900_vm4, %v813_v5  ;;  %909 = vst.msk [vmem:[#allocation2 + $0x68] sm:$0xff] %vm900_vm4, %v811_v34  ;;  %1271 = vrot.lane.b32.xlu1 %v6030_v52, %s3943_s30  ;;  %1223 = vrot.lane.b32.xlu0 %v6031_v35, %s3943_s30  ;;  %v3515_v52 = vld [vmem:[%s4000_s22 + $0x199] sm:$0xff] }
 0x113   : > { %v817_v58 = vpop.permute.xlu1 %816  ;;  %v815_v36 = vpop.permute.xlu0 %814 }
 0x114   : > { %914 = vst.msk [vmem:[#allocation2 + $0xa8] sm:$0xff] %vm898_vm3, %v817_v58  ;;  %912 = vst.msk [vmem:[#allocation2 + $0x90] sm:$0xff] %vm898_vm3, %v815_v36 }
 0x115   : > { %915 = vst.msk [vmem:[#allocation2 + $0xb0] sm:$0xff] %vm900_vm4, %v817_v58  ;;  %913 = vst.msk [vmem:[#allocation2 + $0x98] sm:$0xff] %vm900_vm4, %v815_v36  ;;  %1467 = vrot.lane.b32.xlu1 %v4250_v53, %s3944_s5  ;;  %1419 = vrot.lane.b32.xlu0 %v4080_v19, %s3944_s5  ;;  %v6033_v19 = vld [vmem:[#allocation9_spill] sm:$0xff] }
 0x116   : > { %v3452_v58 = vld [vmem:[%s4000_s22 + $0x18a] sm:$0xff] }
 0x117   : > { %v821_v8 = vpop.permute.xlu1 %820  ;;  %v819_v9 = vpop.permute.xlu0 %818  ;;  %v4900_v36 = vld [vmem:[%s4000_s22 + $0x6a] sm:$0xff] }
 0x118   : > { %918 = vst.msk [vmem:[#allocation2 + $0xd8] sm:$0xff] %vm898_vm3, %v821_v8  ;;  %916 = vst.msk [vmem:[#allocation2 + $0xc0] sm:$0xff] %vm898_vm3, %v819_v9 }
 0x119   : > { %919 = vst.msk [vmem:[#allocation2 + $0xe0] sm:$0xff] %vm900_vm4, %v821_v8  ;;  %917 = vst.msk [vmem:[#allocation2 + $0xc8] sm:$0xff] %vm900_vm4, %v819_v9  ;;  %1660 = vrot.lane.b32.xlu1 %v6032_v37, %s3945_s6  ;;  %1612 = vrot.lane.b32.xlu0 %v3912_v38, %s3945_s6  ;;  %v3460_v38 = vld [vmem:[%s4000_s22 + $0x80] sm:$0xff] }
 0x11b   : > { %v825_v53 = vpop.permute.xlu1 %824  ;;  %v823_v39 = vpop.permute.xlu0 %822 }
 0x11c   : > { %922 = vst.msk [vmem:[#allocation2 + $0x108] sm:$0xff] %vm898_vm3, %v825_v53  ;;  %920 = vst.msk [vmem:[#allocation2 + $0xf0] sm:$0xff] %vm898_vm3, %v823_v39 }
 0x11d   : > { %923 = vst.msk [vmem:[#allocation2 + $0x110] sm:$0xff] %vm900_vm4, %v825_v53  ;;  %921 = vst.msk [vmem:[#allocation2 + $0xf8] sm:$0xff] %vm900_vm4, %v823_v39  ;;  %1225 = vrot.lane.b32.xlu1 %v6033_v19, %s3943_s30  ;;  %1080 = vrot.lane.b32.xlu0 %v6029_v1, %s3942_s25  ;;  %v3483_v1 = vld [vmem:[%s4000_s22 + $0x198] sm:$0xff]  ;;  %v3516_v19 = vld [vmem:[%s4000_s22 + $0x1a1] sm:$0xff] }
 0x11f   : > { %v829_v10 = vpop.permute.xlu1 %828  ;;  %v827_v11 = vpop.permute.xlu0 %826 }
 0x120   : > { %926 = vst.msk [vmem:[#allocation2 + $0x138] sm:$0xff] %vm898_vm3, %v829_v10  ;;  %924 = vst.msk [vmem:[#allocation2 + $0x120] sm:$0xff] %vm898_vm3, %v827_v11 }
 0x121   : > { %927 = vst.msk [vmem:[#allocation2 + $0x140] sm:$0xff] %vm900_vm4, %v829_v10  ;;  %925 = vst.msk [vmem:[#allocation2 + $0x128] sm:$0xff] %vm900_vm4, %v827_v11  ;;  %1421 = vrot.lane.b32.xlu1 %v4102_v23, %s3944_s5  ;;  %1273 = vrot.lane.b32.xlu0 %v4387_v62, %s3943_s30  ;;  %v6034_v62 = vld [vmem:[#allocation6_spill] sm:$0xff]  ;;  %v3492_v10 = vld [vmem:[%s4000_s22 + $0x81] sm:$0xff] }
 0x123   : > { %v833_v40 = vpop.permute.xlu1 %832  ;;  %v831_v41 = vpop.permute.xlu0 %830 }
 0x124   : > { %930 = vst.msk [vmem:[#allocation2 + $0x168] sm:$0xff] %vm898_vm3, %v833_v40  ;;  %928 = vst.msk [vmem:[#allocation2 + $0x150] sm:$0xff] %vm898_vm3, %v831_v41 }
 0x125   : > { %931 = vst.msk [vmem:[#allocation2 + $0x170] sm:$0xff] %vm900_vm4, %v833_v40  ;;  %929 = vst.msk [vmem:[#allocation2 + $0x158] sm:$0xff] %vm900_vm4, %v831_v41  ;;  %1614 = vrot.lane.b32.xlu1 %v3913_v55, %s3945_s6  ;;  %1469 = vrot.lane.b32.xlu0 %v4263_v56, %s3944_s5  ;;  %v6035_v56 = vld [vmem:[#allocation8_spill] sm:$0xff]  ;;  %v1965_v41 = vlaneseq  ;;  %v3461_v55 = vld [vmem:[%s4000_s22 + $0x90] sm:$0xff] }
 0x127   : > { %v837_v23 = vpop.permute.xlu1 %836  ;;  %v835_v14 = vpop.permute.xlu0 %834 }
 0x128   : > { %934 = vst.msk [vmem:[#allocation2 + $0x198] sm:$0xff] %vm898_vm3, %v837_v23  ;;  %932 = vst.msk [vmem:[#allocation2 + $0x180] sm:$0xff] %vm898_vm3, %v835_v14 }
 0x129   : > { %935 = vst.msk [vmem:[#allocation2 + $0x1a0] sm:$0xff] %vm900_vm4, %v837_v23  ;;  %933 = vst.msk [vmem:[#allocation2 + $0x188] sm:$0xff] %vm900_vm4, %v835_v14  ;;  %1082 = vrot.lane.b32.xlu1 %v6032_v37, %s3942_s25  ;;  %1662 = vrot.lane.b32.xlu0 %v6034_v62, %s3945_s6  ;;  %v3484_v37 = vld [vmem:[%s4000_s22 + $0x1a0] sm:$0xff] }
 0x12a   : > { %v4921_v23 = vld [vmem:[%s4000_s22 + $0x7a] sm:$0xff] }
 0x12b   : > { %v841_v15 = vpop.permute.xlu1 %840  ;;  %v839_v45 = vpop.permute.xlu0 %838 }
 0x12c   : > { %938 = vst.msk [vmem:[#allocation2 + $0x1c8] sm:$0xff] %vm898_vm3, %v841_v15  ;;  %936 = vst.msk [vmem:[#allocation2 + $0x1b0] sm:$0xff] %vm898_vm3, %v839_v45 }
 0x12d   : > { %939 = vst.msk [vmem:[#allocation2 + $0x1d0] sm:$0xff] %vm900_vm4, %v841_v15  ;;  %937 = vst.msk [vmem:[#allocation2 + $0x1b8] sm:$0xff] %vm900_vm4, %v839_v45  ;;  %1275 = vrot.lane.b32.xlu1 %v4384_v13, %s3943_s30  ;;  %1227 = vrot.lane.b32.xlu0 %v6035_v56, %s3943_s30  ;;  %v3488_v13 = vld [vmem:[%s4000_s22 + $0x51] sm:$0xff]  ;;  %v1966_v15 = vand.u32 127, %v1965_v41  ;;  %v3465_v41 = vld [vmem:[%s4000_s22 + $0xc0] sm:$0xff] }
 0x12e   : > { %v3493_v45 = vld [vmem:[%s4000_s22 + $0x91] sm:$0xff] }
 0x12f   : > { %v845_v63 = vpop.permute.xlu1 %844  ;;  %v843_v54 = vpop.permute.xlu0 %842  ;;  %v3517_v56 = vld [vmem:[%s4000_s22 + $0x32] sm:$0xff]  ;;  %vm1967_vm7 = vcmp.eq.s32.totalorder %v1966_v15, 0  ;;  %v2147_v15 = vld [vmem:[%s5998_s2 + $0x168] sm:$0xff] }
 0x130   : > { %942 = vst.msk [vmem:[#allocation2 + $0x1f8] sm:$0xff] %vm898_vm3, %v845_v63  ;;  %940 = vst.msk [vmem:[#allocation2 + $0x1e0] sm:$0xff] %vm898_vm3, %v843_v54 }
 0x131   : > { %943 = vst.msk [vmem:[#allocation2 + $0x200] sm:$0xff] %vm900_vm4, %v845_v63  ;;  %941 = vst.msk [vmem:[#allocation2 + $0x1e8] sm:$0xff] %vm900_vm4, %v843_v54  ;;  %1471 = vrot.lane.b32.xlu1 %v4266_v57, %s3944_s5  ;;  %1423 = vrot.lane.b32.xlu0 %v4097_v22, %s3944_s5  ;;  %v3417_v57 = vld [vmem:[%s4000_s22 + $0x169] sm:$0xff] }
 0x133   : > { %v849_v18 = vpop.permute.xlu1 %848  ;;  %v847_v21 = vpop.permute.xlu0 %846 }
 0x134   : > { %946 = vst.msk [vmem:[#allocation2 + $0x228] sm:$0xff] %vm898_vm3, %v849_v18  ;;  %944 = vst.msk [vmem:[#allocation2 + $0x210] sm:$0xff] %vm898_vm3, %v847_v21 }
 0x135   : > { %947 = vst.msk [vmem:[#allocation2 + $0x230] sm:$0xff] %vm900_vm4, %v849_v18  ;;  %945 = vst.msk [vmem:[#allocation2 + $0x218] sm:$0xff] %vm900_vm4, %v847_v21  ;;  %1664 = vrot.lane.b32.xlu1 %v6036_v49, %s3945_s6  ;;  %1616 = vrot.lane.b32.xlu0 %v3488_v13, %s3945_s6  ;;  %v3947_v13 = vmov 0.0   ;;  %v3518_v21 = vld [vmem:[%s4000_s22 + $0x3a] sm:$0xff] }
 0x136   : > { %v1968_v18 = vsel %vm1967_vm7, 1.0, %v3947_v13 }
 0x137   : > { %v853_v2 = vpop.permute.xlu1 %852  ;;  %v851_v22 = vpop.permute.xlu0 %850 }
 0x138   : > { %950 = vst.msk [vmem:[#allocation2 + $0x258] sm:$0xff] %vm898_vm3, %v853_v2  ;;  %948 = vst.msk [vmem:[#allocation2 + $0x240] sm:$0xff] %vm898_vm3, %v851_v22 }
 0x139   : > { %951 = vst.msk [vmem:[#allocation2 + $0x260] sm:$0xff] %vm900_vm4, %v853_v2  ;;  %949 = vst.msk [vmem:[#allocation2 + $0x248] sm:$0xff] %vm900_vm4, %v851_v22  ;;  %1229 = vrot.lane.b32.xlu1 %v6037_v0, %s3943_s30  ;;  %1084 = vrot.lane.b32.xlu0 %v3417_v57, %s3942_s25  ;;  %v3462_v2 = vld [vmem:[%s4000_s22 + $0x98] sm:$0xff]  ;;  %v4940_v22 = vld [vmem:[%s4000_s22 + $0x82] sm:$0xff] }
 0x13b   : > { %v857_v29 = vpop.permute.xlu1 %856  ;;  %v855_v30 = vpop.permute.xlu0 %854 }
 0x13c   : > { %954 = vst.msk [vmem:[#allocation2 + $0x288] sm:$0xff] %vm898_vm3, %v857_v29  ;;  %952 = vst.msk [vmem:[#allocation2 + $0x270] sm:$0xff] %vm898_vm3, %v855_v30 }
 0x13d   : > { %955 = vst.msk [vmem:[#allocation2 + $0x290] sm:$0xff] %vm900_vm4, %v857_v29  ;;  %953 = vst.msk [vmem:[#allocation2 + $0x278] sm:$0xff] %vm900_vm4, %v855_v30  ;;  %1425 = vrot.lane.b32.xlu1 %v4108_v25, %s3944_s5  ;;  %1277 = vrot.lane.b32.xlu0 %v4399_v3, %s3943_s30  ;;  %v3418_v25 = vld [vmem:[%s4000_s22 + $0x171] sm:$0xff]  ;;  %v3494_v30 = vld [vmem:[%s4000_s22 + $0x99] sm:$0xff] }
 0x13f   : > { %v861_v12 = vpop.permute.xlu1 %860  ;;  %v859_v16 = vpop.permute.xlu0 %858 }
 0x140   : > { %958 = vst.msk [vmem:[#allocation2 + $0x2b8] sm:$0xff] %vm898_vm3, %v861_v12  ;;  %956 = vst.msk [vmem:[#allocation2 + $0x2a0] sm:$0xff] %vm898_vm3, %v859_v16 }
 0x141   : > { %959 = vst.msk [vmem:[#allocation2 + $0x2c0] sm:$0xff] %vm900_vm4, %v861_v12  ;;  %957 = vst.msk [vmem:[#allocation2 + $0x2a8] sm:$0xff] %vm900_vm4, %v859_v16  ;;  %1618 = vrot.lane.b32.xlu1 %v3489_v48, %s3945_s6  ;;  %1473 = vrot.lane.b32.xlu0 %v4525_v32, %s3944_s5  ;;  %v4844_v32 = vld [vmem:[%s4000_s22 + $0x52] sm:$0xff]  ;;  %v3519_v48 = vld [vmem:[%s4000_s22 + $0x4a] sm:$0xff] }
 0x143   : > { %v865_v3 = vpop.permute.xlu1 %864  ;;  %v863_v43 = vpop.permute.xlu0 %862 }
 0x144   : > { %962 = vst.msk [vmem:[#allocation2 + $0x2e8] sm:$0xff] %vm898_vm3, %v865_v3  ;;  %960 = vst.msk [vmem:[#allocation2 + $0x2d0] sm:$0xff] %vm898_vm3, %v863_v43 }
 0x145   : > { %963 = vst.msk [vmem:[#allocation2 + $0x2f0] sm:$0xff] %vm900_vm4, %v865_v3  ;;  %961 = vst.msk [vmem:[#allocation2 + $0x2d8] sm:$0xff] %vm900_vm4, %v863_v43  ;;  %1086 = vrot.lane.b32.xlu1 %v3418_v25, %s3942_s25  ;;  %1666 = vrot.lane.b32.xlu0 %v3513_v42, %s3945_s6  ;;  %v4956_v25 = vld [vmem:[%s4000_s22 + $0x92] sm:$0xff] }
 0x147   : > { %v1031_v4 = vpop.permute.xlu1 %1030  ;;  %v1029_v26 = vpop.permute.xlu0 %1028 }
 0x148   : > { %1126 = vst.msk [vmem:[#allocation2 + $0x20] sm:$0xff] %vm1124_vm5, %v1031_v4  ;;  %1125 = vst.msk [vmem:[#allocation2 + $0x8] sm:$0xff] %vm1124_vm5, %v1029_v26  ;;  %v2006_v4 = vld [vmem:[#allocation2] sm:$0xff]  ;;  %v2136_v26 = vld [vmem:[%s5998_s2 + $0x110] sm:$0xff] }
 0x149   : > { %1279 = vrot.lane.b32.xlu1 %v4396_v60, %s3943_s30  ;;  %1231 = vrot.lane.b32.xlu0 %v4844_v32, %s3943_s30 }
 0x14b   : > { %v1035_v61 = vpop.permute.xlu1 %1034  ;;  %v1033_v46 = vpop.permute.xlu0 %1032 }
 0x14c   : > { %1128 = vst.msk [vmem:[#allocation2 + $0x50] sm:$0xff] %vm1124_vm5, %v1035_v61  ;;  %1127 = vst.msk [vmem:[#allocation2 + $0x38] sm:$0xff] %vm1124_vm5, %v1033_v46  ;;  %v2137_v61 = vld [vmem:[%s5998_s2 + $0x118] sm:$0xff]  ;;  %v3463_v46 = vld [vmem:[%s4000_s22 + $0xa8] sm:$0xff] }
 0x14d   : > { %1475 = vrot.lane.b32.xlu1 %v4522_v31, %s3944_s5  ;;  %1427 = vrot.lane.b32.xlu0 %v4105_v24, %s3944_s5  ;;  %v2134_v24 = vld [vmem:[%s5998_s2 + $0x100] sm:$0xff] }
 0x14e   : > { %v4875_v7 = vpack.c.bf16 %v2135_v51, %v2134_v24  ;;  %v3495_v24 = vld [vmem:[%s4000_s22 + $0xa9] sm:$0xff] }
 0x14f   : > { %v1039_v33 = vpop.permute.xlu1 %1038  ;;  %v1037_v60 = vpop.permute.xlu0 %1036 }
 0x150   : > { %1130 = vst.msk [vmem:[#allocation2 + $0x80] sm:$0xff] %vm1124_vm5, %v1039_v33  ;;  %1129 = vst.msk [vmem:[#allocation2 + $0x68] sm:$0xff] %vm1124_vm5, %v1037_v60  ;;  %3731 = vmatprep.subr.bf16.mxu1 %v4875_v7  ;;  %v2078_v60 = vld [vmem:[#allocation2 + $0x240] sm:$0xff] }
 0x151   : > { %1668 = vrot.lane.b32.xlu1 %v3514_v47, %s3945_s6  ;;  %1620 = vrot.lane.b32.xlu0 %v3490_v28, %s3945_s6 }
 0x153   : > { %v1043_v50 = vpop.permute.xlu1 %1042  ;;  %v1041_v31 = vpop.permute.xlu0 %1040 }
 0x154   : > { %1132 = vst.msk [vmem:[#allocation2 + $0xb0] sm:$0xff] %vm1124_vm5, %v1043_v50  ;;  %1131 = vst.msk [vmem:[#allocation2 + $0x98] sm:$0xff] %vm1124_vm5, %v1041_v31  ;;  %v2138_v50 = vld [vmem:[%s5998_s2 + $0x120] sm:$0xff]  ;;  %v2139_v31 = vld [vmem:[%s5998_s2 + $0x128] sm:$0xff] }
 0x155   : > { %1233 = vrot.lane.b32.xlu1 %v4865_v6, %s3943_s30  ;;  %1088 = vrot.lane.b32.xlu0 %v3513_v42, %s3942_s25 }
 0x157   : > { %v1047_v44 = vpop.permute.xlu1 %1046  ;;  %v1045_v20 = vpop.permute.xlu0 %1044 }
 0x158   : > { %1134 = vst.msk [vmem:[#allocation2 + $0xe0] sm:$0xff] %vm1124_vm5, %v1047_v44  ;;  %1133 = vst.msk [vmem:[#allocation2 + $0xc8] sm:$0xff] %vm1124_vm5, %v1045_v20  ;;  %v3464_v44 = vld [vmem:[%s4000_s22 + $0xb0] sm:$0xff]  ;;  %v4993_v20 = vld [vmem:[%s4000_s22 + $0x9a] sm:$0xff] }
 0x159   : > { %1429 = vrot.lane.b32.xlu1 %v4120_v27, %s3944_s5  ;;  %1281 = vrot.lane.b32.xlu0 %v3451_v17, %s3943_s30 }
 0x15b   : > { %v1051_v5 = vpop.permute.xlu1 %1050  ;;  %v1049_v34 = vpop.permute.xlu0 %1048 }
 0x15c   : > { %1136 = vst.msk [vmem:[#allocation2 + $0x110] sm:$0xff] %vm1124_vm5, %v1051_v5  ;;  %1135 = vst.msk [vmem:[#allocation2 + $0xf8] sm:$0xff] %vm1124_vm5, %v1049_v34  ;;  %v2141_v5 = vld [vmem:[%s5998_s2 + $0x138] sm:$0xff] }
 0x15d   : > { %1622 = vrot.lane.b32.xlu1 %v3491_v59, %s3945_s6  ;;  %1477 = vrot.lane.b32.xlu0 %v3483_v1, %s3944_s5  ;;  %v2140_v1 = vld [vmem:[%s5998_s2 + $0x130] sm:$0xff] }
 0x15e   : > { %v3496_v34 = vld [vmem:[%s4000_s22 + $0xb1] sm:$0xff] }
 0x15f   : > { %v1055_v27 = vpop.permute.xlu1 %1054  ;;  %v1053_v35 = vpop.permute.xlu0 %1052 }
 0x160   : > { %1138 = vst.msk [vmem:[#allocation2 + $0x140] sm:$0xff] %vm1124_vm5, %v1055_v27  ;;  %1137 = vst.msk [vmem:[#allocation2 + $0x128] sm:$0xff] %vm1124_vm5, %v1053_v35 }
 0x161   : > { %1090 = vrot.lane.b32.xlu1 %v3514_v47, %s3942_s25  ;;  %1670 = vrot.lane.b32.xlu0 %v3515_v52, %s3945_s6  ;;  %v2142_v52 = vld [vmem:[%s5998_s2 + $0x140] sm:$0xff] }
 0x163   : > { %v1059_v8 = vpop.permute.xlu1 %1058  ;;  %v1057_v9 = vpop.permute.xlu0 %1056 }
 0x164   : > { %1140 = vst.msk [vmem:[#allocation2 + $0x170] sm:$0xff] %vm1124_vm5, %v1059_v8  ;;  %1139 = vst.msk [vmem:[#allocation2 + $0x158] sm:$0xff] %vm1124_vm5, %v1057_v9  ;;  %v3742_v8 = vpack.c.bf16 %v2141_v5, %v2140_v1  ;;  %v2143_v9 = vld [vmem:[%s5998_s2 + $0x148] sm:$0xff]  ;;  %v2018_v1 = vld [vmem:[#allocation2 + $0x60] sm:$0xff] }
 0x165   : > { %1283 = vrot.lane.b32.xlu1 %v3452_v58, %s3943_s30  ;;  %1235 = vrot.lane.b32.xlu0 %v4900_v36, %s3943_s30  ;;  %v3532_v5 = vld [vmem:[%s4000_s22 + $0xe2] sm:$0xff] }
 0x167   : > { %v1063_v53 = vpop.permute.xlu1 %1062  ;;  %v1061_v39 = vpop.permute.xlu0 %1060 }
 0x168   : > { %1142 = vst.msk [vmem:[#allocation2 + $0x1a0] sm:$0xff] %vm1124_vm5, %v1063_v53  ;;  %1141 = vst.msk [vmem:[#allocation2 + $0x188] sm:$0xff] %vm1124_vm5, %v1061_v39  ;;  %v5019_v53 = vld [vmem:[%s4000_s22 + $0xaa] sm:$0xff]  ;;  %v3746_v39 = vpack.c.bf16 %v2143_v9, %v2142_v52 }
 0x169   : > { %1479 = vrot.lane.b32.xlu1 %v3484_v37, %s3944_s5  ;;  %1431 = vrot.lane.b32.xlu0 %v3460_v38, %s3944_s5  ;;  %v2009_v37 = vld [vmem:[#allocation2 + $0x18] sm:$0xff] }
 0x16a   : > { %v2081_v38 = vld [vmem:[#allocation2 + $0x258] sm:$0xff] }
 0x16b   : > { %v1067_v11 = vpop.permute.xlu1 %1066  ;;  %v1065_v40 = vpop.permute.xlu0 %1064 }
 0x16c   : > { %1144 = vst.msk [vmem:[#allocation2 + $0x1d0] sm:$0xff] %vm1124_vm5, %v1067_v11  ;;  %1143 = vst.msk [vmem:[#allocation2 + $0x1b8] sm:$0xff] %vm1124_vm5, %v1065_v40  ;;  %v2144_v11 = vld [vmem:[%s5998_s2 + $0x150] sm:$0xff]  ;;  %v2145_v40 = vld [vmem:[%s5998_s2 + $0x158] sm:$0xff] }
 0x16d   : > { %1672 = vrot.lane.b32.xlu1 %v3516_v19, %s3945_s6  ;;  %1624 = vrot.lane.b32.xlu0 %v3492_v10, %s3945_s6 }
 0x16f   : > { %v1071_v14 = vpop.permute.xlu1 %1070  ;;  %v1069_v62 = vpop.permute.xlu0 %1068 }
 0x170   : > { %1146 = vst.msk [vmem:[#allocation2 + $0x200] sm:$0xff] %vm1124_vm5, %v1071_v14  ;;  %1145 = vst.msk [vmem:[#allocation2 + $0x1e8] sm:$0xff] %vm1124_vm5, %v1069_v62  ;;  %v2146_v62 = vld [vmem:[%s5998_s2 + $0x160] sm:$0xff] }
 0x171   : > { %1433 = vrot.lane.b32.xlu1 %v3461_v55, %s3944_s5  ;;  %1237 = vrot.lane.b32.xlu0 %v4921_v23, %s3943_s30  ;;  %v3750_v55 = vpack.c.bf16 %v2145_v40, %v2144_v11 }
 0x173   : > { %v1222_v63 = vpop.permute.xlu1 %1221  ;;  %v1077_v54 = vpop.permute.xlu0 %1076 }
 0x174   : > { %1318 = vst.msk [vmem:[#allocation2 + $0x8] sm:$0xff] %vm1317_vm6, %v1222_v63 }
 0x175   : > { %1149 = vst.msk [vmem:[#allocation2 + $0x248] sm:$0xff] %vm1124_vm5, %v1077_v54  ;;  %1626 = vrot.lane.b32.xlu1 %v3493_v45, %s3945_s6  ;;  %1836 = vrot.lane.b32.xlu0 %v3517_v56, %s3946_s11  ;;  %v3497_v45 = vld [vmem:[%s4000_s22 + $0xc1] sm:$0xff]  ;;  %v3754_v56 = vpack.c.bf16 %v2147_v15, %v2146_v62  ;;  %v3503_v62 = vld [vmem:[%s4000_s22 + $0x109] sm:$0xff] }
 0x177   : > { %v1418_v49 = vpop.permute.xlu1 %1417  ;;  %v1270_v57 = vpop.permute.xlu0 %1269 }
 0x178   : > { %1514 = vst.msk [vmem:[#allocation2 + $0x8] sm:$0xff] %vm1513_vm8, %v1418_v49  ;;  %v2012_v49 = vld [vmem:[#allocation2 + $0x30] sm:$0xff] }
 0x179   : > { %1342 = vst.msk [vmem:[#allocation2 + $0x248] sm:$0xff] %vm1317_vm6, %v1270_v57  ;;  %1970 = vrot.lane.b32.xlu1 %v1968_v18, %s3948_s12  ;;  %1838 = vrot.lane.b32.xlu0 %v3518_v21, %s3946_s11  ;;  %v2148_v18 = vld [vmem:[%s5998_s2 + $0x170] sm:$0xff]  ;;  %v2149_v21 = vld [vmem:[%s5998_s2 + $0x178] sm:$0xff] }
 0x17a   : > { %v3466_v57 = vld [vmem:[%s4000_s22 + $0xc8] sm:$0xff] }
 0x17b   : > { %v1611_v0 = vpop.permute.xlu1 %1610  ;;  %v1466_v29 = vpop.permute.xlu0 %1465 }
 0x17c   : > { %1707 = vst.msk [vmem:[#allocation2 + $0x8] sm:$0xff] %vm1706_vm9, %v1611_v0 }
 0x17d   : > { %1709 = vst.msk [vmem:[#allocation2 + $0x10] sm:$0xff] %vm1708_vm10, %v1611_v0  ;;  %1435 = vrot.lane.b32.xlu1 %v3462_v2, %s3944_s5  ;;  %1239 = vrot.lane.b32.xlu0 %v4940_v22, %s3943_s30  ;;  %v3434_v2 = vld [vmem:[%s4000_s22 + $0xb2] sm:$0xff] }
 0x17e   : > { %1538 = vst.msk [vmem:[#allocation2 + $0x248] sm:$0xff] %vm1513_vm8, %v1466_v29 }
 0x17f   : > { %v1079_v12 = vpop.permute.xlu1 %1078  ;;  %v1659_v16 = vpop.permute.xlu0 %1658 }
 0x180   : > { %1150 = vst.msk [vmem:[#allocation2 + $0x260] sm:$0xff] %vm1124_vm5, %v1079_v12  ;;  %v3498_v12 = vld [vmem:[%s4000_s22 + $0xc9] sm:$0xff] }
 0x181   : > { %1756 = vst.msk [vmem:[#allocation2 + $0x248] sm:$0xff] %vm1706_vm9, %v1659_v16  ;;  %1628 = vrot.lane.b32.xlu1 %v3494_v30, %s3945_s6  ;;  %1840 = vrot.lane.b32.xlu0 %v3519_v48, %s3946_s11  ;;  %v2084_v48 = vld [vmem:[#allocation2 + $0x270] sm:$0xff] }
 0x182   : > { %1757 = vst.msk [vmem:[#allocation2 + $0x250] sm:$0xff] %vm1708_vm10, %v1659_v16 }
 0x183   : > { %v1272_v42 = vpop.permute.xlu1 %1271  ;;  %v1224_v3 = vpop.permute.xlu0 %1223  ;;  %v2007_v43 = vld [vmem:[#allocation2 + $0x8] sm:$0xff] }
 0x184   : > { %1343 = vst.msk [vmem:[#allocation2 + $0x260] sm:$0xff] %vm1317_vm6, %v1272_v42  ;;  %1319 = vst.msk [vmem:[#allocation2 + $0x20] sm:$0xff] %vm1317_vm6, %v1224_v3  ;;  %2214 = vmatprep.mubr.f32.mxu0 %v2007_v43  ;;  %v3435_v42 = vld [vmem:[%s4000_s22 + $0xc2] sm:$0xff] }
 0x185   : > { %1241 = vrot.lane.b32.xlu1 %v4956_v25, %s3943_s30  ;;  %1842 = vrot.lane.b32.xlu0 %v4844_v32, %s3946_s11  ;;  %v3734_v32 = vpack.c.bf16 %v2137_v61, %v2136_v26 }
 0x186   : > { %2215 = vmatmul.mubr.f32.vlgmr.msra.gmra.mrb[0].mxu0 %v2006_v4  ;;  %v3467_v4 = vld [vmem:[%s4000_s22 + $0xd8] sm:$0xff] }
 0x187   : > { %v1468_v47 = vpop.permute.xlu1 %1467  ;;  %v1420_v28 = vpop.permute.xlu0 %1419 }
 0x188   : > { %v2079_v33 = vld [vmem:[#allocation2 + $0x248] sm:$0xff]  ;;  %1539 = vst.msk [vmem:[#allocation2 + $0x260] sm:$0xff] %vm1513_vm8, %v1468_v47  ;;  %1515 = vst.msk [vmem:[#allocation2 + $0x20] sm:$0xff] %vm1513_vm8, %v1420_v28 }
 0x189   : > { %2334 = vmatprep.mubr.f32.mxu1 %v2079_v33  ;;  %1844 = vrot.lane.b32.xlu1 %v4865_v6, %s3946_s11  ;;  %v3738_v6 = vpack.c.bf16 %v2139_v31, %v2138_v50  ;;  %v2015_v28 = vld [vmem:[#allocation2 + $0x48] sm:$0xff] }
 0x18a   : > { %1437 = vrot.lane.b32.xlu0 %v3463_v46, %s3944_s5  ;;  %2335 = vmatmul.mubr.f32.vlgmr.msra.gmra.mrb[0].mxu1 %v2078_v60  ;;  %v2087_v33 = vld [vmem:[#allocation2 + $0x288] sm:$0xff]  ;;  %v3499_v60 = vld [vmem:[%s4000_s22 + $0xd9] sm:$0xff] }
 0x18b   : > { %v1661_v51 = vpop.permute.xlu1 %1660  ;;  %v1613_v17 = vpop.permute.xlu0 %1612  ;;  %3733 = vmatpush3.bf16.msra.mxu1 %v4875_v7 }
 0x18c   : > { %1758 = vst.msk [vmem:[#allocation2 + $0x260] sm:$0xff] %vm1706_vm9, %v1661_v51  ;;  %1710 = vst.msk [vmem:[#allocation2 + $0x20] sm:$0xff] %vm1706_vm9, %v1613_v17  ;;  %3735 = vmatprep.subr.bf16.mxu1 %v3734_v32 }
 0x18d   : > { %1759 = vst.msk [vmem:[#allocation2 + $0x268] sm:$0xff] %vm1708_vm10, %v1661_v51  ;;  %1711 = vst.msk [vmem:[#allocation2 + $0x28] sm:$0xff] %vm1708_vm10, %v1613_v17  ;;  %1846 = vrot.lane.b32.xlu1 %v4900_v36, %s3946_s11 }
 0x18e   : > { %1630 = vrot.lane.b32.xlu0 %v3495_v24, %s3945_s6  ;;  %v3468_v24 = vld [vmem:[%s4000_s22 + $0xe0] sm:$0xff] }
 0x18f   : > { %v1226_v7 = vpop.permute.xlu1 %1225  ;;  %v1081_v59 = vpop.permute.xlu0 %1080  ;;  %3737 = vmatpush3.bf16.msra.mxu1 %v3734_v32  ;;  %v3530_v32 = vld [vmem:[%s4000_s22 + $0xca] sm:$0xff] }
 0x190   : > { %1320 = vst.msk [vmem:[#allocation2 + $0x38] sm:$0xff] %vm1317_vm6, %v1226_v7  ;;  %3739 = vmatprep.subr.bf16.mxu1 %v3738_v6 }
 0x191   : > { %1151 = vst.msk [vmem:[#allocation2 + $0x278] sm:$0xff] %vm1124_vm5, %v1081_v59  ;;  %1439 = vrot.lane.b32.xlu1 %v3464_v44, %s3944_s5  ;;  %v3500_v44 = vld [vmem:[%s4000_s22 + $0xe1] sm:$0xff] }
 0x192   : > { %1243 = vrot.lane.b32.xlu0 %v4993_v20, %s3943_s30 }
 0x193   : > { %v1422_v27 = vpop.permute.xlu1 %1421  ;;  %v1274_v35 = vpop.permute.xlu0 %1273  ;;  %v2010_v58 = vld [vmem:[#allocation2 + $0x20] sm:$0xff]  ;;  %3741 = vmatpush3.bf16.msra.mxu1 %v3738_v6 }
 0x194   : > { %v2082_v36 = vld [vmem:[#allocation2 + $0x260] sm:$0xff]  ;;  %1516 = vst.msk [vmem:[#allocation2 + $0x38] sm:$0xff] %vm1513_vm8, %v1422_v27  ;;  %2219 = vmatprep.mubr.f32.mxu0 %v2010_v58  ;;  %3743 = vmatprep.subr.bf16.mxu1 %v3742_v8  ;;  %v3469_v58 = vld [vmem:[%s4000_s22 + $0xf0] sm:$0xff] }
 0x195   : > { %1344 = vst.msk [vmem:[#allocation2 + $0x278] sm:$0xff] %vm1317_vm6, %v1274_v35  ;;  %2339 = vmatprep.mubr.f32.mxu1 %v2082_v36  ;;  %1632 = vrot.lane.b32.xlu1 %v3496_v34, %s3945_s6  ;;  %v3531_v6 = vld [vmem:[%s4000_s22 + $0xda] sm:$0xff]  ;;  %v3501_v36 = vld [vmem:[%s4000_s22 + $0xf1] sm:$0xff] }
 0x196   : > { %1848 = vrot.lane.b32.xlu0 %v4921_v23, %s3946_s11  ;;  %2220 = vmatmul.mubr.f32.gmra.mrb[2].mxu0 %v2009_v37  ;;  %v2090_v35 = vld [vmem:[#allocation2 + $0x2a0] sm:$0xff]  ;;  %v3533_v37 = vld [vmem:[%s4000_s22 + $0xf2] sm:$0xff] }
 0x197   : > { %2340 = vmatmul.mubr.f32.gmra.mrb[2].mxu1 %v2081_v38  ;;  %v1615_v19 = vpop.permute.xlu1 %1614  ;;  %v1470_v10 = vpop.permute.xlu0 %1469  ;;  %v3502_v38 = vld [vmem:[%s4000_s22 + $0xf9] sm:$0xff] }
 0x198   : > { %1712 = vst.msk [vmem:[#allocation2 + $0x38] sm:$0xff] %vm1706_vm9, %v1615_v19  ;;  %3745 = vmatpush3.bf16.msra.mxu1 %v3742_v8 }
 0x199   : > { %1713 = vst.msk [vmem:[#allocation2 + $0x40] sm:$0xff] %vm1708_vm10, %v1615_v19  ;;  %1245 = vrot.lane.b32.xlu1 %v5019_v53, %s3943_s30  ;;  %3747 = vmatprep.subr.bf16.mxu1 %v3746_v39  ;;  %v5122_v19 = vld [vmem:[%s4000_s22 + $0xfa] sm:$0xff] }
 0x19a   : > { %1540 = vst.msk [vmem:[#allocation2 + $0x278] sm:$0xff] %vm1513_vm8, %v1470_v10  ;;  %1850 = vrot.lane.b32.xlu0 %v4940_v22, %s3946_s11  ;;  %v3758_v22 = vpack.c.bf16 %v2149_v21, %v2148_v18  ;;  %v5147_v18 = vld [vmem:[%s4000_s22 + $0x112] sm:$0xff] }
 0x19b   : > { %v1083_v23 = vpop.permute.xlu1 %1082  ;;  %v1663_v14 = vpop.permute.xlu0 %1662 }
 0x19c   : > { %1152 = vst.msk [vmem:[#allocation2 + $0x290] sm:$0xff] %vm1124_vm5, %v1083_v23  ;;  %3749 = vmatpush3.bf16.msra.mxu1 %v3746_v39  ;;  %v2093_v23 = vld [vmem:[#allocation2 + $0x2b8] sm:$0xff] }
 0x19d   : > { %1760 = vst.msk [vmem:[#allocation2 + $0x278] sm:$0xff] %vm1706_vm9, %v1663_v14  ;;  %1852 = vrot.lane.b32.xlu1 %v4956_v25, %s3946_s11  ;;  %3751 = vmatprep.subr.bf16.mxu1 %v3750_v55 }
 0x19e   : > { %1761 = vst.msk [vmem:[#allocation2 + $0x280] sm:$0xff] %vm1708_vm10, %v1663_v14  ;;  %1441 = vrot.lane.b32.xlu0 %v3465_v41, %s3944_s5  ;;  %v3470_v14 = vld [vmem:[%s4000_s22 + $0xf8] sm:$0xff] }
 0x19f   : > { %v1276_v63 = vpop.permute.xlu1 %1275  ;;  %v1228_v54 = vpop.permute.xlu0 %1227  ;;  %v2013_v13 = vld [vmem:[#allocation2 + $0x38] sm:$0xff] }
 0x1a0   : > { %1345 = vst.msk [vmem:[#allocation2 + $0x290] sm:$0xff] %vm1317_vm6, %v1276_v63  ;;  %1321 = vst.msk [vmem:[#allocation2 + $0x50] sm:$0xff] %vm1317_vm6, %v1228_v54  ;;  %2224 = vmatprep.mubr.f32.mxu0 %v2013_v13  ;;  %3753 = vmatpush3.bf16.msra.mxu1 %v3750_v55  ;;  %v2021_v55 = vld [vmem:[#allocation2 + $0x78] sm:$0xff] }
 0x1a1   : > { %1854 = vrot.lane.b32.xlu1 %v4993_v20, %s3946_s11  ;;  %2225 = vmatmul.mubr.f32.gmra.mrb[4].mxu0 %v2012_v49  ;;  %v3504_v63 = vld [vmem:[%s4000_s22 + $0x111] sm:$0xff] }
 0x1a2   : > { %1634 = vrot.lane.b32.xlu0 %v3497_v45, %s3945_s6  ;;  %3755 = vmatprep.subr.bf16.mxu1 %v3754_v56 }
 0x1a3   : > { %v1472_v0 = vpop.permute.xlu1 %1471  ;;  %v1424_v29 = vpop.permute.xlu0 %1423 }
 0x1a4   : > { %v2085_v30 = vld [vmem:[#allocation2 + $0x278] sm:$0xff]  ;;  %1541 = vst.msk [vmem:[#allocation2 + $0x290] sm:$0xff] %vm1513_vm8, %v1472_v0  ;;  %1517 = vst.msk [vmem:[#allocation2 + $0x50] sm:$0xff] %vm1513_vm8, %v1424_v29  ;;  %3757 = vmatpush3.bf16.msra.mxu1 %v3754_v56  ;;  %v5137_v56 = vld [vmem:[%s4000_s22 + $0x10a] sm:$0xff] }
 0x1a5   : > { %2344 = vmatprep.mubr.f32.mxu1 %v2085_v30  ;;  %1443 = vrot.lane.b32.xlu1 %v3466_v57, %s3944_s5  ;;  %v5156_v0 = vld [vmem:[%s4000_s22 + $0x121] sm:$0xff] }
 0x1a6   : > { %1247 = vrot.lane.b32.xlu0 %v3434_v2, %s3943_s30  ;;  %2345 = vmatmul.mubr.f32.gmra.mrb[4].mxu1 %v2084_v48 }
 0x1a7   : > { %3759 = vmatprep.subr.bf16.mxu1 %v3758_v22  ;;  %v1665_v16 = vpop.permute.xlu1 %1664  ;;  %v1617_v25 = vpop.permute.xlu0 %1616 }
 0x1a8   : > { %1762 = vst.msk [vmem:[#allocation2 + $0x290] sm:$0xff] %vm1706_vm9, %v1665_v16  ;;  %1714 = vst.msk [vmem:[#allocation2 + $0x50] sm:$0xff] %vm1706_vm9, %v1617_v25  ;;  %3761 = vmatpush3.bf16.msra.mxu1 %v3758_v22  ;;  %v3471_v22 = vld [vmem:[%s4000_s22 + $0x108] sm:$0xff] }
 0x1a9   : > { %1763 = vst.msk [vmem:[#allocation2 + $0x298] sm:$0xff] %vm1708_vm10, %v1665_v16  ;;  %1715 = vst.msk [vmem:[#allocation2 + $0x58] sm:$0xff] %vm1708_vm10, %v1617_v25  ;;  %1636 = vrot.lane.b32.xlu1 %v3498_v12, %s3945_s6  ;;  %v2096_v12 = vld [vmem:[#allocation2 + $0x2d0] sm:$0xff]  ;;  %v5164_v16 = vld [vmem:[%s4000_s22 + $0x122] sm:$0xff] }
 0x1aa   : > { %1856 = vrot.lane.b32.xlu0 %v5019_v53, %s3946_s11  ;;  %v5167_v25 = vld [vmem:[%s4000_s22 + $0x129] sm:$0xff] }
 0x1ab   : > { %v1230_v3 = vpop.permute.xlu1 %1229  ;;  %v1085_v43 = vpop.permute.xlu0 %1084 }
 0x1ac   : > { %1322 = vst.msk [vmem:[#allocation2 + $0x68] sm:$0xff] %vm1317_vm6, %v1230_v3 }
 0x1ad   : > { %1153 = vst.msk [vmem:[#allocation2 + $0x2a8] sm:$0xff] %vm1124_vm5, %v1085_v43  ;;  %1249 = vrot.lane.b32.xlu1 %v3435_v42, %s3943_s30  ;;  %v5178_v43 = vld [vmem:[%s4000_s22 + $0x12a] sm:$0xff] }
 0x1ae   : > { %1858 = vrot.lane.b32.xlu0 %v3434_v2, %s3946_s11  ;;  %v2024_v2 = vld [vmem:[#allocation2 + $0x90] sm:$0xff] }
 0x1af   : > { %v1426_v26 = vpop.permute.xlu1 %1425  ;;  %v1278_v61 = vpop.permute.xlu0 %1277  ;;  %v2016_v46 = vld [vmem:[#allocation2 + $0x50] sm:$0xff] }
 0x1b0   : > { %v2088_v47 = vld [vmem:[#allocation2 + $0x290] sm:$0xff]  ;;  %1518 = vst.msk [vmem:[#allocation2 + $0x68] sm:$0xff] %vm1513_vm8, %v1426_v26  ;;  %2229 = vmatprep.mubr.f32.mxu0 %v2016_v46  ;;  %v3507_v46 = vld [vmem:[%s4000_s22 + $0x139] sm:$0xff] }
 0x1b1   : > { %1346 = vst.msk [vmem:[#allocation2 + $0x2a8] sm:$0xff] %vm1317_vm6, %v1278_v61  ;;  %2349 = vmatprep.mubr.f32.mxu1 %v2088_v47  ;;  %1860 = vrot.lane.b32.xlu1 %v3435_v42, %s3946_s11  ;;  %v3472_v61 = vld [vmem:[%s4000_s22 + $0x110] sm:$0xff] }
 0x1b2   : > { %1445 = vrot.lane.b32.xlu0 %v3467_v4, %s3944_s5  ;;  %2230 = vmatmul.mubr.f32.gmra.mrb[6].mxu0 %v2015_v28 }
 0x1b3   : > { %2350 = vmatmul.mubr.f32.gmra.mrb[6].mxu1 %v2087_v33  ;;  %v1619_v50 = vpop.permute.xlu1 %1618  ;;  %v1474_v31 = vpop.permute.xlu0 %1473 }
 0x1b4   : > { %1716 = vst.msk [vmem:[#allocation2 + $0x68] sm:$0xff] %vm1706_vm9, %v1619_v50 }
 0x1b5   : > { %1717 = vst.msk [vmem:[#allocation2 + $0x70] sm:$0xff] %vm1708_vm10, %v1619_v50  ;;  %1862 = vrot.lane.b32.xlu1 %v3530_v32, %s3946_s11  ;;  %v2099_v50 = vld [vmem:[#allocation2 + $0x2e8] sm:$0xff] }
 0x1b6   : > { %1542 = vst.msk [vmem:[#allocation2 + $0x2a8] sm:$0xff] %vm1513_vm8, %v1474_v31  ;;  %1638 = vrot.lane.b32.xlu0 %v3499_v60, %s3945_s6  ;;  %v2027_v60 = vld [vmem:[#allocation2 + $0xa8] sm:$0xff]  ;;  %v3539_v31 = vld [vmem:[%s4000_s22 + $0x13a] sm:$0xff] }
 0x1b7   : > { %v1087_v51 = vpop.permute.xlu1 %1086  ;;  %v1667_v17 = vpop.permute.xlu0 %1666 }
 0x1b8   : > { %1154 = vst.msk [vmem:[#allocation2 + $0x2c0] sm:$0xff] %vm1124_vm5, %v1087_v51 }
 0x1b9   : > { %1764 = vst.msk [vmem:[#allocation2 + $0x2a8] sm:$0xff] %vm1706_vm9, %v1667_v17  ;;  %1447 = vrot.lane.b32.xlu1 %v3468_v24, %s3944_s5  ;;  %v3508_v24 = vld [vmem:[%s4000_s22 + $0x141] sm:$0xff] }
 0x1ba   : > { %1765 = vst.msk [vmem:[#allocation2 + $0x2b0] sm:$0xff] %vm1708_vm10, %v1667_v17  ;;  %1251 = vrot.lane.b32.xlu0 %v3530_v32, %s3943_s30 }
 0x1bb   : > { %v1280_v20 = vpop.permute.xlu1 %1279  ;;  %v1232_v7 = vpop.permute.xlu0 %1231  ;;  %v2019_v59 = vld [vmem:[#allocation2 + $0x68] sm:$0xff] }
 0x1bc   : > { %1347 = vst.msk [vmem:[#allocation2 + $0x2c0] sm:$0xff] %vm1317_vm6, %v1280_v20  ;;  %1323 = vst.msk [vmem:[#allocation2 + $0x80] sm:$0xff] %vm1317_vm6, %v1232_v7  ;;  %2234 = vmatprep.mubr.f32.mxu0 %v2019_v59  ;;  %v2030_v59 = vld [vmem:[#allocation2 + $0xc0] sm:$0xff] }
 0x1bd   : > { %1864 = vrot.lane.b32.xlu1 %v3531_v6, %s3946_s11  ;;  %2235 = vmatmul.mubr.f32.gmra.mrb[8].mxu0 %v2018_v1  ;;  %v3541_v1 = vld [vmem:[%s4000_s22 + $0x152] sm:$0xff] }
 0x1be   : > { %1640 = vrot.lane.b32.xlu0 %v3500_v44, %s3945_s6 }
 0x1bf   : > { %v1476_v34 = vpop.permute.xlu1 %1475  ;;  %v1428_v52 = vpop.permute.xlu0 %1427 }
 0x1c0   : > { %v2091_v27 = vld [vmem:[#allocation2 + $0x2a8] sm:$0xff]  ;;  %1543 = vst.msk [vmem:[#allocation2 + $0x2c0] sm:$0xff] %vm1513_vm8, %v1476_v34  ;;  %1519 = vst.msk [vmem:[#allocation2 + $0x80] sm:$0xff] %vm1513_vm8, %v1428_v52 }
 0x1c1   : > { %2354 = vmatprep.mubr.f32.mxu1 %v2091_v27  ;;  %1253 = vrot.lane.b32.xlu1 %v3531_v6, %s3943_s30  ;;  %v3540_v6 = vld [vmem:[%s4000_s22 + $0x142] sm:$0xff] }
 0x1c2   : > { %1866 = vrot.lane.b32.xlu0 %v3532_v5, %s3946_s11  ;;  %2355 = vmatmul.mubr.f32.gmra.mrb[8].mxu1 %v2090_v35 }
 0x1c3   : > { %v1669_v8 = vpop.permute.xlu1 %1668  ;;  %v1621_v9 = vpop.permute.xlu0 %1620 }
 0x1c4   : > { %1766 = vst.msk [vmem:[#allocation2 + $0x2c0] sm:$0xff] %vm1706_vm9, %v1669_v8  ;;  %1718 = vst.msk [vmem:[#allocation2 + $0x80] sm:$0xff] %vm1706_vm9, %v1621_v9 }
 0x1c5   : > { %1767 = vst.msk [vmem:[#allocation2 + $0x2c8] sm:$0xff] %vm1708_vm10, %v1669_v8  ;;  %1719 = vst.msk [vmem:[#allocation2 + $0x88] sm:$0xff] %vm1708_vm10, %v1621_v9  ;;  %1449 = vrot.lane.b32.xlu1 %v3469_v58, %s3944_s5  ;;  %v3542_v58 = vld [vmem:[%s4000_s22 + $0x15a] sm:$0xff]  ;;  %v3543_v9 = vld [vmem:[%s4000_s22 + $0x16a] sm:$0xff] }
 0x1c6   : > { %1642 = vrot.lane.b32.xlu0 %v3501_v36, %s3945_s6 }
 0x1c7   : > { %v1234_v53 = vpop.permute.xlu1 %1233  ;;  %v1089_v39 = vpop.permute.xlu0 %1088 }
 0x1c8   : > { %1324 = vst.msk [vmem:[#allocation2 + $0x98] sm:$0xff] %vm1317_vm6, %v1234_v53 }
 0x1c9   : > { %1155 = vst.msk [vmem:[#allocation2 + $0x2d8] sm:$0xff] %vm1124_vm5, %v1089_v39  ;;  %1868 = vrot.lane.b32.xlu1 %v3533_v37, %s3946_s11 }
 0x1ca   : > { %1644 = vrot.lane.b32.xlu0 %v3502_v38, %s3945_s6 }
 0x1cb   : > { %v1430_v10 = vpop.permute.xlu1 %1429  ;;  %v1282_v11 = vpop.permute.xlu0 %1281  ;;  %v2022_v40 = vld [vmem:[#allocation2 + $0x80] sm:$0xff] }
 0x1cc   : > { %v2094_v41 = vld [vmem:[#allocation2 + $0x2c0] sm:$0xff]  ;;  %1520 = vst.msk [vmem:[#allocation2 + $0x98] sm:$0xff] %vm1513_vm8, %v1430_v10  ;;  %2239 = vmatprep.mubr.f32.mxu0 %v2022_v40  ;;  %v2033_v10 = vld [vmem:[#allocation2 + $0xd8] sm:$0xff] }
 0x1cd   : > { %1348 = vst.msk [vmem:[#allocation2 + $0x2d8] sm:$0xff] %vm1317_vm6, %v1282_v11  ;;  %2359 = vmatprep.mubr.f32.mxu1 %v2094_v41  ;;  %1255 = vrot.lane.b32.xlu1 %v3532_v5, %s3943_s30  ;;  %v3473_v5 = vld [vmem:[%s4000_s22 + $0x120] sm:$0xff]  ;;  %v3544_v11 = vld [vmem:[%s4000_s22 + $0x172] sm:$0xff] }
 0x1ce   : > { %1870 = vrot.lane.b32.xlu0 %v5122_v19, %s3946_s11  ;;  %2240 = vmatmul.mubr.f32.gmra.mrb[10].mxu0 %v2021_v55 }
 0x1cf   : > { %2360 = vmatmul.mubr.f32.gmra.mrb[10].mxu1 %v2093_v23  ;;  %v1623_v15 = vpop.permute.xlu1 %1622  ;;  %v1478_v45 = vpop.permute.xlu0 %1477  ;;  %v3475_v23 = vld [vmem:[%s4000_s22 + $0x138] sm:$0xff] }
 0x1d0   : > { %1720 = vst.msk [vmem:[#allocation2 + $0x98] sm:$0xff] %vm1706_vm9, %v1623_v15 }
 0x1d1   : > { %1721 = vst.msk [vmem:[#allocation2 + $0xa0] sm:$0xff] %vm1708_vm10, %v1623_v15  ;;  %1451 = vrot.lane.b32.xlu1 %v3470_v14, %s3944_s5 }
 0x1d2   : > { %1544 = vst.msk [vmem:[#allocation2 + $0x2d8] sm:$0xff] %vm1513_vm8, %v1478_v45  ;;  %1646 = vrot.lane.b32.xlu0 %v3503_v62, %s3945_s6  ;;  %v3546_v45 = vld [vmem:[%s4000_s22 + $0x18a] sm:$0xff] }
 0x1d3   : > { %v1091_v54 = vpop.permute.xlu1 %1090  ;;  %v1671_v13 = vpop.permute.xlu0 %1670 }
 0x1d4   : > { %1156 = vst.msk [vmem:[#allocation2 + $0x2f0] sm:$0xff] %vm1124_vm5, %v1091_v54 }
 0x1d5   : > { %1768 = vst.msk [vmem:[#allocation2 + $0x2d8] sm:$0xff] %vm1706_vm9, %v1671_v13  ;;  %1872 = vrot.lane.b32.xlu1 %v5137_v56, %s3946_s11 }
 0x1d6   : > { %1769 = vst.msk [vmem:[#allocation2 + $0x2e0] sm:$0xff] %vm1708_vm10, %v1671_v13  ;;  %1648 = vrot.lane.b32.xlu0 %v3504_v63, %s3945_s6 }
 0x1d7   : > { %v1284_v21 = vpop.permute.xlu1 %1283  ;;  %v1236_v49 = vpop.permute.xlu0 %1235  ;;  %v2025_v57 = vld [vmem:[#allocation2 + $0x98] sm:$0xff] }
 0x1d8   : > { %1349 = vst.msk [vmem:[#allocation2 + $0x2f0] sm:$0xff] %vm1317_vm6, %v1284_v21  ;;  %1325 = vst.msk [vmem:[#allocation2 + $0xb0] sm:$0xff] %vm1317_vm6, %v1236_v49  ;;  %2244 = vmatprep.mubr.f32.mxu0 %v2025_v57  ;;  %v2036_v21 = vld [vmem:[#allocation2 + $0xf0] sm:$0xff] }
 0x1d9   : > { %1257 = vrot.lane.b32.xlu1 %v3533_v37, %s3943_s30  ;;  %2245 = vmatmul.mubr.f32.gmra.mrb[12].mxu0 %v2024_v2  ;;  %v3474_v37 = vld [vmem:[%s4000_s22 + $0x128] sm:$0xff]  ;;  %v3547_v2 = vld [vmem:[%s4000_s22 + $0x19a] sm:$0xff] }
 0x1da   : > { %1874 = vrot.lane.b32.xlu0 %v5147_v18, %s3946_s11 }
 0x1db   : > { %v1480_v29 = vpop.permute.xlu1 %1479  ;;  %v1432_v30 = vpop.permute.xlu0 %1431 }
 0x1dc   : > { %v2097_v48 = vld [vmem:[#allocation2 + $0x2d8] sm:$0xff]  ;;  %1545 = vst.msk [vmem:[#allocation2 + $0x2f0] sm:$0xff] %vm1513_vm8, %v1480_v29  ;;  %1521 = vst.msk [vmem:[#allocation2 + $0xb0] sm:$0xff] %vm1513_vm8, %v1432_v30 }
 0x1dd   : > { %2364 = vmatprep.mubr.f32.mxu1 %v2097_v48  ;;  %1453 = vrot.lane.b32.xlu1 %v3471_v22, %s3944_s5  ;;  %v3476_v22 = vld [vmem:[%s4000_s22 + $0x140] sm:$0xff] }
 0x1de   : > { %1650 = vrot.lane.b32.xlu0 %v5156_v0, %s3945_s6  ;;  %2365 = vmatmul.mubr.f32.gmra.mrb[12].mxu1 %v2096_v12  ;;  %v2039_v12 = vld [vmem:[#allocation2 + $0x108] sm:$0xff] }
 0x1df   : > { %v1673_v42 = vpop.permute.xlu1 %1672  ;;  %v1625_v3 = vpop.permute.xlu0 %1624 }
 0x1e0   : > { %1770 = vst.msk [vmem:[#allocation2 + $0x2f0] sm:$0xff] %vm1706_vm9, %v1673_v42  ;;  %1722 = vst.msk [vmem:[#allocation2 + $0xb0] sm:$0xff] %vm1706_vm9, %v1625_v3 }
 0x1e1   : > { %1771 = vst.msk [vmem:[#allocation2 + $0x2f8] sm:$0xff] %vm1708_vm10, %v1673_v42  ;;  %1723 = vst.msk [vmem:[#allocation2 + $0xb8] sm:$0xff] %vm1708_vm10, %v1625_v3  ;;  %1876 = vrot.lane.b32.xlu1 %v5164_v16, %s3946_s11 }
 0x1e2   : > { %1652 = vrot.lane.b32.xlu0 %v5167_v25, %s3945_s6 }
 0x1e3   : > { %v1434_v4 = vpop.permute.xlu1 %1433  ;;  %v1238_v26 = vpop.permute.xlu0 %1237 }
 0x1e4   : > { %1326 = vst.msk [vmem:[#allocation2 + $0xc8] sm:$0xff] %vm1317_vm6, %v1238_v26 }
 0x1e5   : > { %1522 = vst.msk [vmem:[#allocation2 + $0xc8] sm:$0xff] %vm1513_vm8, %v1434_v4  ;;  %1259 = vrot.lane.b32.xlu1 %v5122_v19, %s3943_s30 }
 0x1e6   : > { %1878 = vrot.lane.b32.xlu0 %v5178_v43, %s3946_s11 }
 0x1e7   : > { %v1627_v47 = vpop.permute.xlu1 %1626  ;;  %v1837_v28 = vpop.permute.xlu0 %1836  ;;  %v2028_v33 = vld [vmem:[#allocation2 + $0xb0] sm:$0xff] }
 0x1e8   : > { %v2100_v32 = vld [vmem:[#allocation2 + $0x2f0] sm:$0xff]  ;;  %1724 = vst.msk [vmem:[#allocation2 + $0xc8] sm:$0xff] %vm1706_vm9, %v1627_v47  ;;  %2249 = vmatprep.mubr.f32.mxu0 %v2028_v33 }
 0x1e9   : > { %1725 = vst.msk [vmem:[#allocation2 + $0xd0] sm:$0xff] %vm1708_vm10, %v1627_v47  ;;  %2369 = vmatprep.mubr.f32.mxu1 %v2100_v32  ;;  %1455 = vrot.lane.b32.xlu1 %v3472_v61, %s3944_s5 }
 0x1ea   : > { %1933 = vst.msk [vmem:[#allocation2 + $0x10] sm:$0xff] %vm1932_vm11, %v1837_v28  ;;  %1654 = vrot.lane.b32.xlu0 %v3507_v46, %s3945_s6  ;;  %2250 = vmatmul.mubr.f32.gmra.mrb[14].mxu0 %v2027_v60  ;;  %v2042_v28 = vld [vmem:[#allocation2 + $0x120] sm:$0xff] }
 0x1eb   : > { %2370 = vmatmul.mubr.f32.gmra.mrb[14].mxu1 %v2099_v50  ;;  %v5195_v51 = vpop.permute.xlu1 %1970  ;;  %v1839_v17 = vpop.permute.xlu0 %1838 }
 0x1ec   : > { %1934 = vst.msk [vmem:[#allocation2 + $0x28] sm:$0xff] %vm1932_vm11, %v1839_v17  ;;  %v2045_v17 = vld [vmem:[#allocation2 + $0x138] sm:$0xff] }
 0x1ed   : > { %1974 = vst.msk [vmem:[#allocation2 + $0x10] sm:$0xff] %vm1973_vm12, %v5195_v51  ;;  %1975 = vst.msk [vmem:[#allocation2 + $0x28] sm:$0xff] %vm1973_vm12, %v5195_v51  ;;  %1880 = vrot.lane.b32.xlu1 %v3539_v31, %s3946_s11 }
 0x1ee   : > { %1656 = vrot.lane.b32.xlu0 %v3508_v24, %s3945_s6 }
 0x1ef   : > { %v1436_v44 = vpop.permute.xlu1 %1435  ;;  %v1240_v20 = vpop.permute.xlu0 %1239  ;;  %v2031_v7 = vld [vmem:[#allocation2 + $0xc8] sm:$0xff] }
 0x1f0   : > { %1327 = vst.msk [vmem:[#allocation2 + $0xe0] sm:$0xff] %vm1317_vm6, %v1240_v20  ;;  %2254 = vmatprep.mubr.f32.mxu0 %v2031_v7 }
 0x1f1   : > { %1523 = vst.msk [vmem:[#allocation2 + $0xe0] sm:$0xff] %vm1513_vm8, %v1436_v44  ;;  %1261 = vrot.lane.b32.xlu1 %v5137_v56, %s3943_s30  ;;  %2255 = vmatmul.mubr.f32.gmra.mrb[16].mxu0 %v2030_v59  ;;  %v3545_v56 = vld [vmem:[%s4000_s22 + $0x182] sm:$0xff] }
 0x1f2   : > { %1882 = vrot.lane.b32.xlu0 %v3540_v6, %s3946_s11 }
 0x1f3   : > { %v1629_v34 = vpop.permute.xlu1 %1628  ;;  %v1841_v52 = vpop.permute.xlu0 %1840 }
 0x1f4   : > { %v2008_v27 = vld [vmem:[#allocation2 + $0x10] sm:$0xff]  ;;  %1726 = vst.msk [vmem:[#allocation2 + $0xe0] sm:$0xff] %vm1706_vm9, %v1629_v34  ;;  %v2011_v35 = vld [vmem:[#allocation2 + $0x28] sm:$0xff] }
 0x1f5   : > { %1727 = vst.msk [vmem:[#allocation2 + $0xe8] sm:$0xff] %vm1708_vm10, %v1629_v34  ;;  %3634 = vmatprep.mubr.f32.mxu1 %v2008_v27  ;;  %1884 = vrot.lane.b32.xlu1 %v3541_v1, %s3946_s11 }
 0x1f6   : > { %1935 = vst.msk [vmem:[#allocation2 + $0x40] sm:$0xff] %vm1932_vm11, %v1841_v52  ;;  %1457 = vrot.lane.b32.xlu0 %v3473_v5, %s3944_s5  ;;  %3635 = vmatmul.mubr.f32.vlgmr.msra.gmra.mrb[16].mxu1 %v2011_v35  ;;  %v2048_v35 = vld [vmem:[#allocation2 + $0x150] sm:$0xff] }
 0x1f7   : > { %1976 = vst.msk [vmem:[#allocation2 + $0x40] sm:$0xff] %vm1973_vm12, %v5195_v51  ;;  %v1242_v36 = vpop.permute.xlu1 %1241  ;;  %v1843_v8 = vpop.permute.xlu0 %1842 }
 0x1f8   : > { %1328 = vst.msk [vmem:[#allocation2 + $0xf8] sm:$0xff] %vm1317_vm6, %v1242_v36 }
 0x1f9   : > { %1936 = vst.msk [vmem:[#allocation2 + $0x58] sm:$0xff] %vm1932_vm11, %v1843_v8  ;;  %1263 = vrot.lane.b32.xlu1 %v5147_v18, %s3943_s30 }
 0x1fa   : > { %1977 = vst.msk [vmem:[#allocation2 + $0x58] sm:$0xff] %vm1973_vm12, %v5195_v51  ;;  %1886 = vrot.lane.b32.xlu0 %v3542_v58, %s3946_s11 }
 0x1fb   : > { %v1845_v38 = vpop.permute.xlu1 %1844  ;;  %v2034_v39 = vld [vmem:[#allocation2 + $0xe0] sm:$0xff] }
 0x1fc   : > { %v1438_v53 = vpop.permute.xlu0 %1437  ;;  %1937 = vst.msk [vmem:[#allocation2 + $0x70] sm:$0xff] %vm1932_vm11, %v1845_v38  ;;  %2259 = vmatprep.mubr.f32.mxu0 %v2034_v39 }
 0x1fd   : > { %1524 = vst.msk [vmem:[#allocation2 + $0xf8] sm:$0xff] %vm1513_vm8, %v1438_v53  ;;  %1888 = vrot.lane.b32.xlu1 %v3543_v9, %s3946_s11  ;;  %2260 = vmatmul.mubr.f32.gmra.mrb[18].mxu0 %v2033_v10  ;;  %v2051_v53 = vld [vmem:[#allocation2 + $0x168] sm:$0xff] }
 0x1fe   : > { %v2014_v19 = vld [vmem:[#allocation2 + $0x40] sm:$0xff]  ;;  %1978 = vst.msk [vmem:[#allocation2 + $0x70] sm:$0xff] %vm1973_vm12, %v5195_v51  ;;  %1459 = vrot.lane.b32.xlu0 %v3474_v37, %s3944_s5 }
 0x1ff   : > { %3637 = vmatprep.mubr.f32.mxu1 %v2014_v19  ;;  %v1847_v40 = vpop.permute.xlu1 %1846 }
 0x200   : > { %v1631_v41 = vpop.permute.xlu0 %1630  ;;  %1938 = vst.msk [vmem:[#allocation2 + $0x88] sm:$0xff] %vm1932_vm11, %v1847_v40 }
 0x201   : > { %1728 = vst.msk [vmem:[#allocation2 + $0xf8] sm:$0xff] %vm1706_vm9, %v1631_v41  ;;  %v2017_v55 = vld [vmem:[#allocation2 + $0x58] sm:$0xff]  ;;  %1072 = vrot.lane.b32.xlu1 %v5156_v0, %s3942_s25 }
 0x202   : > { %1729 = vst.msk [vmem:[#allocation2 + $0x100] sm:$0xff] %vm1708_vm10, %v1631_v41  ;;  %1890 = vrot.lane.b32.xlu0 %v3544_v11, %s3946_s11  ;;  %3638 = vmatmul.mubr.f32.gmra.mrb[18].mxu1 %v2017_v55 }
 0x203   : > { %1979 = vst.msk [vmem:[#allocation2 + $0x88] sm:$0xff] %vm1973_vm12, %v5195_v51  ;;  %v1440_v14 = vpop.permute.xlu1 %1439 }
 0x204   : > { %v1244_v62 = vpop.permute.xlu0 %1243 }
 0x205   : > { %1329 = vst.msk [vmem:[#allocation2 + $0x110] sm:$0xff] %vm1317_vm6, %v1244_v62  ;;  %v2020_v15 = vld [vmem:[#allocation2 + $0x70] sm:$0xff]  ;;  %1461 = vrot.lane.b32.xlu1 %v3475_v23, %s3944_s5  ;;  %v2054_v23 = vld [vmem:[#allocation2 + $0x180] sm:$0xff] }
 0x206   : > { %1525 = vst.msk [vmem:[#allocation2 + $0x110] sm:$0xff] %vm1513_vm8, %v1440_v14  ;;  %1265 = vrot.lane.b32.xlu0 %v5164_v16, %s3943_s30  ;;  %3640 = vmatprep.mubr.f32.mxu1 %v2020_v15  ;;  %v3548_v16 = vld [vmem:[%s4000_s22 + $0x1a2] sm:$0xff]  ;;  %s3949_s22 = smov 64  }
 0x207   : > { %v1633_v63 = vpop.permute.xlu1 %1632 }
 0x208   : > { %v1849_v54 = vpop.permute.xlu0 %1848  ;;  %v2037_v13 = vld [vmem:[#allocation2 + $0xf8] sm:$0xff]  ;;  %1730 = vst.msk [vmem:[#allocation2 + $0x110] sm:$0xff] %vm1706_vm9, %v1633_v63 }
 0x209   : > { %1731 = vst.msk [vmem:[#allocation2 + $0x118] sm:$0xff] %vm1708_vm10, %v1633_v63  ;;  %2264 = vmatprep.mubr.f32.mxu0 %v2037_v13  ;;  %1894 = vrot.lane.b32.xlu1 %v3546_v45, %s3946_s11 }
 0x20a   : > { %1939 = vst.msk [vmem:[#allocation2 + $0xa0] sm:$0xff] %vm1932_vm11, %v1849_v54  ;;  %v2023_v18 = vld [vmem:[#allocation2 + $0x88] sm:$0xff]  ;;  %1892 = vrot.lane.b32.xlu0 %v3545_v56, %s3946_s11  ;;  %2265 = vmatmul.mubr.f32.gmra.mrb[20].mxu0 %v2036_v21  ;;  %v2057_v21 = vld [vmem:[#allocation2 + $0x198] sm:$0xff] }
 0x20b   : > { %1980 = vst.msk [vmem:[#allocation2 + $0xa0] sm:$0xff] %vm1973_vm12, %v5195_v51  ;;  %3641 = vmatmul.mubr.f32.gmra.mrb[20].mxu1 %v2023_v18  ;;  %v1246_v49 = vpop.permute.xlu1 %1245 }
 0x20c   : > { %v1851_v57 = vpop.permute.xlu0 %1850  ;;  %1330 = vst.msk [vmem:[#allocation2 + $0x128] sm:$0xff] %vm1317_vm6, %v1246_v49 }
 0x20d   : > { %1940 = vst.msk [vmem:[#allocation2 + $0xb8] sm:$0xff] %vm1932_vm11, %v1851_v57  ;;  %1267 = vrot.lane.b32.xlu1 %v5178_v43, %s3943_s30  ;;  %s5814_s30 = sshll.u32 %s6059_s15, 6 }
 0x20e   : > { %1981 = vst.msk [vmem:[#allocation2 + $0xb8] sm:$0xff] %vm1973_vm12, %v5195_v51  ;;  %1074 = vrot.lane.b32.xlu0 %v5167_v25, %s3942_s25  ;;  %s3950_s25 = smov 96   ;;  %s5829_s6 = scalar_lea.vmem %s5997_s1, %s5814_s30 }
 0x20f   : > { %v1853_v0 = vpop.permute.xlu1 %1852  ;;  %v2040_v30 = vld [vmem:[#allocation2 + $0x110] sm:$0xff]  ;;  %s5865_s9 = scalar_lea.vmem %s6000_s4, %s5814_s30  ;;  %s5964_s13 = scalar_lea.vmem %s5999_s3, %s5814_s30 }
 0x210   : > { %v1442_v29 = vpop.permute.xlu0 %1441  ;;  %1941 = vst.msk [vmem:[#allocation2 + $0xd0] sm:$0xff] %vm1932_vm11, %v1853_v0  ;;  %2269 = vmatprep.mubr.f32.mxu0 %v2040_v30 }
 0x211   : > { %1526 = vst.msk [vmem:[#allocation2 + $0x128] sm:$0xff] %vm1513_vm8, %v1442_v29  ;;  %1896 = vrot.lane.b32.xlu1 %v3547_v2, %s3946_s11  ;;  %2270 = vmatmul.mubr.f32.gmra.mrb[22].mxu0 %v2039_v12 }
 0x212   : > { %v2026_v48 = vld [vmem:[#allocation2 + $0xa0] sm:$0xff]  ;;  %1982 = vst.msk [vmem:[#allocation2 + $0xd0] sm:$0xff] %vm1973_vm12, %v5195_v51  ;;  %1463 = vrot.lane.b32.xlu0 %v3476_v22, %s3944_s5 }
 0x213   : > { %3643 = vmatprep.mubr.f32.mxu1 %v2026_v48  ;;  %v1855_v25 = vpop.permute.xlu1 %1854 }
 0x214   : > { %v1635_v42 = vpop.permute.xlu0 %1634  ;;  %1942 = vst.msk [vmem:[#allocation2 + $0xe8] sm:$0xff] %vm1932_vm11, %v1855_v25  ;;  %v2060_v25 = vld [vmem:[#allocation2 + $0x1b0] sm:$0xff] }
 0x215   : > { %1732 = vst.msk [vmem:[#allocation2 + $0x128] sm:$0xff] %vm1706_vm9, %v1635_v42  ;;  %v2029_v3 = vld [vmem:[#allocation2 + $0xb8] sm:$0xff] }
 0x216   : > { %1733 = vst.msk [vmem:[#allocation2 + $0x130] sm:$0xff] %vm1708_vm10, %v1635_v42  ;;  %1898 = vrot.lane.b32.xlu0 %v3548_v16, %s3946_s11  ;;  %3644 = vmatmul.mubr.f32.gmra.mrb[22].mxu1 %v2029_v3 }
 0x217   : > { %1983 = vst.msk [vmem:[#allocation2 + $0xe8] sm:$0xff] %vm1973_vm12, %v5195_v51  ;;  %v1444_v43 = vpop.permute.xlu1 %1443 }
 0x218   : > { %v1248_v4 = vpop.permute.xlu0 %1247 }
 0x219   : > { %1331 = vst.msk [vmem:[#allocation2 + $0x140] sm:$0xff] %vm1317_vm6, %v1248_v4  ;;  %v2032_v26 = vld [vmem:[#allocation2 + $0xd0] sm:$0xff] }
 0x21a   : > { %1527 = vst.msk [vmem:[#allocation2 + $0x140] sm:$0xff] %vm1513_vm8, %v1444_v43  ;;  %3646 = vmatprep.mubr.f32.mxu1 %v2032_v26 }
 0x21b   : > { %v1637_v61 = vpop.permute.xlu1 %1636 }
 0x21c   : > { %v1857_v46 = vpop.permute.xlu0 %1856  ;;  %v2043_v47 = vld [vmem:[#allocation2 + $0x128] sm:$0xff]  ;;  %1734 = vst.msk [vmem:[#allocation2 + $0x140] sm:$0xff] %vm1706_vm9, %v1637_v61 }
 0x21d   : > { %1735 = vst.msk [vmem:[#allocation2 + $0x148] sm:$0xff] %vm1708_vm10, %v1637_v61  ;;  %2274 = vmatprep.mubr.f32.mxu0 %v2043_v47 }
 0x21e   : > { %1943 = vst.msk [vmem:[#allocation2 + $0x100] sm:$0xff] %vm1932_vm11, %v1857_v46  ;;  %v2035_v33 = vld [vmem:[#allocation2 + $0xe8] sm:$0xff]  ;;  %2275 = vmatmul.mubr.f32.gmra.mrb[24].mxu0 %v2042_v28 }
 0x21f   : > { %1984 = vst.msk [vmem:[#allocation2 + $0x100] sm:$0xff] %vm1973_vm12, %v5195_v51  ;;  %3647 = vmatmul.mubr.f32.gmra.mrb[24].mxu1 %v2035_v33  ;;  %v1250_v32 = vpop.permute.xlu1 %1249 }
 0x220   : > { %v1859_v60 = vpop.permute.xlu0 %1858  ;;  %1332 = vst.msk [vmem:[#allocation2 + $0x158] sm:$0xff] %vm1317_vm6, %v1250_v32 }
 0x221   : > { %1944 = vst.msk [vmem:[#allocation2 + $0x118] sm:$0xff] %vm1932_vm11, %v1859_v60 }
 0x222   : > { %1985 = vst.msk [vmem:[#allocation2 + $0x118] sm:$0xff] %vm1973_vm12, %v5195_v51 }
 0x223   : > { %v1861_v50 = vpop.permute.xlu1 %1860  ;;  %v2046_v24 = vld [vmem:[#allocation2 + $0x140] sm:$0xff] }
 0x224   : > { %v1446_v31 = vpop.permute.xlu0 %1445  ;;  %1945 = vst.msk [vmem:[#allocation2 + $0x130] sm:$0xff] %vm1932_vm11, %v1861_v50  ;;  %2279 = vmatprep.mubr.f32.mxu0 %v2046_v24  ;;  %v2063_v50 = vld [vmem:[#allocation2 + $0x1c8] sm:$0xff] }
 0x225   : > { %1528 = vst.msk [vmem:[#allocation2 + $0x158] sm:$0xff] %vm1513_vm8, %v1446_v31  ;;  %2280 = vmatmul.mubr.f32.gmra.mrb[26].mxu0 %v2045_v17 }
 0x226   : > { %v2038_v6 = vld [vmem:[#allocation2 + $0x100] sm:$0xff]  ;;  %1986 = vst.msk [vmem:[#allocation2 + $0x130] sm:$0xff] %vm1973_vm12, %v5195_v51 }
 0x227   : > { %3649 = vmatprep.mubr.f32.mxu1 %v2038_v6  ;;  %v1863_v44 = vpop.permute.xlu1 %1862 }
 0x228   : > { %v1639_v20 = vpop.permute.xlu0 %1638  ;;  %1946 = vst.msk [vmem:[#allocation2 + $0x148] sm:$0xff] %vm1932_vm11, %v1863_v44 }
 0x229   : > { %1736 = vst.msk [vmem:[#allocation2 + $0x158] sm:$0xff] %vm1706_vm9, %v1639_v20  ;;  %v2041_v7 = vld [vmem:[#allocation2 + $0x118] sm:$0xff] }
 0x22a   : > { %1737 = vst.msk [vmem:[#allocation2 + $0x160] sm:$0xff] %vm1708_vm10, %v1639_v20  ;;  %3650 = vmatmul.mubr.f32.gmra.mrb[26].mxu1 %v2041_v7 }
 0x22b   : > { %1987 = vst.msk [vmem:[#allocation2 + $0x148] sm:$0xff] %vm1973_vm12, %v5195_v51  ;;  %v1448_v59 = vpop.permute.xlu1 %1447 }
 0x22c   : > { %v1252_v1 = vpop.permute.xlu0 %1251 }
 0x22d   : > { %1333 = vst.msk [vmem:[#allocation2 + $0x170] sm:$0xff] %vm1317_vm6, %v1252_v1  ;;  %v2044_v5 = vld [vmem:[#allocation2 + $0x130] sm:$0xff] }
 0x22e   : > { %1529 = vst.msk [vmem:[#allocation2 + $0x170] sm:$0xff] %vm1513_vm8, %v1448_v59  ;;  %3652 = vmatprep.mubr.f32.mxu1 %v2044_v5 }
 0x22f   : > { %v1865_v34 = vpop.permute.xlu1 %1864 }
 0x230   : > { %v1641_v52 = vpop.permute.xlu0 %1640  ;;  %v2049_v27 = vld [vmem:[#allocation2 + $0x158] sm:$0xff]  ;;  %1947 = vst.msk [vmem:[#allocation2 + $0x160] sm:$0xff] %vm1932_vm11, %v1865_v34 }
 0x231   : > { %1738 = vst.msk [vmem:[#allocation2 + $0x170] sm:$0xff] %vm1706_vm9, %v1641_v52  ;;  %2284 = vmatprep.mubr.f32.mxu0 %v2049_v27 }
 0x232   : > { %1739 = vst.msk [vmem:[#allocation2 + $0x178] sm:$0xff] %vm1708_vm10, %v1641_v52  ;;  %v2047_v58 = vld [vmem:[#allocation2 + $0x148] sm:$0xff]  ;;  %2285 = vmatmul.mubr.f32.gmra.mrb[28].mxu0 %v2048_v35 }
 0x233   : > { %1988 = vst.msk [vmem:[#allocation2 + $0x160] sm:$0xff] %vm1973_vm12, %v5195_v51  ;;  %3653 = vmatmul.mubr.f32.gmra.mrb[28].mxu1 %v2047_v58  ;;  %v1254_v36 = vpop.permute.xlu1 %1253  ;;  %v2066_v58 = vld [vmem:[#allocation2 + $0x1e0] sm:$0xff] }
 0x234   : > { %v1867_v8 = vpop.permute.xlu0 %1866  ;;  %1334 = vst.msk [vmem:[#allocation2 + $0x188] sm:$0xff] %vm1317_vm6, %v1254_v36 }
 0x235   : > { %1948 = vst.msk [vmem:[#allocation2 + $0x178] sm:$0xff] %vm1932_vm11, %v1867_v8 }
 0x236   : > { %1989 = vst.msk [vmem:[#allocation2 + $0x178] sm:$0xff] %vm1973_vm12, %v5195_v51 }
 0x237   : > { %v1450_v9 = vpop.permute.xlu1 %1449 }
 0x238   : > { %v1643_v37 = vpop.permute.xlu0 %1642  ;;  %v2052_v38 = vld [vmem:[#allocation2 + $0x170] sm:$0xff]  ;;  %1530 = vst.msk [vmem:[#allocation2 + $0x188] sm:$0xff] %vm1513_vm8, %v1450_v9 }
 0x239   : > { %1741 = vst.msk [vmem:[#allocation2 + $0x190] sm:$0xff] %vm1708_vm10, %v1643_v37  ;;  %2289 = vmatprep.mubr.f32.mxu0 %v2052_v38 }
 0x23a   : > { %v2050_v39 = vld [vmem:[#allocation2 + $0x160] sm:$0xff]  ;;  %1740 = vst.msk [vmem:[#allocation2 + $0x188] sm:$0xff] %vm1706_vm9, %v1643_v37  ;;  %2290 = vmatmul.mubr.f32.gmra.mrb[30].mxu0 %v2051_v53 }
 0x23b   : > { %3655 = vmatprep.mubr.f32.mxu1 %v2050_v39  ;;  %v1869_v19 = vpop.permute.xlu1 %1868 }
 0x23c   : > { %v1645_v10 = vpop.permute.xlu0 %1644  ;;  %1949 = vst.msk [vmem:[#allocation2 + $0x190] sm:$0xff] %vm1932_vm11, %v1869_v19 }
 0x23d   : > { %1743 = vst.msk [vmem:[#allocation2 + $0x1a8] sm:$0xff] %vm1708_vm10, %v1645_v10  ;;  %v2053_v11 = vld [vmem:[#allocation2 + $0x178] sm:$0xff] }
 0x23e   : > { %1990 = vst.msk [vmem:[#allocation2 + $0x190] sm:$0xff] %vm1973_vm12, %v5195_v51  ;;  %3656 = vmatmul.mubr.f32.gmra.mrb[30].mxu1 %v2053_v11 }
 0x23f   : > { %v1256_v40 = vpop.permute.xlu1 %1255 }
 0x240   : > { %v1871_v41 = vpop.permute.xlu0 %1870  ;;  %1335 = vst.msk [vmem:[#allocation2 + $0x1a0] sm:$0xff] %vm1317_vm6, %v1256_v40  ;;  %v2069_v40 = vld [vmem:[#allocation2 + $0x1f8] sm:$0xff] }
 0x241   : > { %1950 = vst.msk [vmem:[#allocation2 + $0x1a8] sm:$0xff] %vm1932_vm11, %v1871_v41  ;;  %v2055_v55 = vld [vmem:[#allocation2 + $0x188] sm:$0xff] }
 0x242   : > { %1991 = vst.msk [vmem:[#allocation2 + $0x1a8] sm:$0xff] %vm1973_vm12, %v5195_v51  ;;  %2294 = vmatprep.mubr.f32.mxu0 %v2055_v55 }
 0x243   : > { %2295 = vmatmul.mubr.f32.gmra.mrb[32].mxu0 %v2054_v23  ;;  %v1452_v14 = vpop.permute.xlu1 %1451 }
 0x244   : > { %v1647_v62 = vpop.permute.xlu0 %1646  ;;  %1531 = vst.msk [vmem:[#allocation2 + $0x1a0] sm:$0xff] %vm1513_vm8, %v1452_v14 }
 0x245   : > { %1745 = vst.msk [vmem:[#allocation2 + $0x1c0] sm:$0xff] %vm1708_vm10, %v1647_v62  ;;  %v2056_v15 = vld [vmem:[#allocation2 + $0x190] sm:$0xff] }
 0x246   : > { %1742 = vst.msk [vmem:[#allocation2 + $0x1a0] sm:$0xff] %vm1706_vm9, %v1645_v10  ;;  %3658 = vmatprep.mubr.f32.mxu1 %v2056_v15 }
 0x247   : > { %v1873_v45 = vpop.permute.xlu1 %1872 }
 0x248   : > { %v1649_v56 = vpop.permute.xlu0 %1648  ;;  %1951 = vst.msk [vmem:[#allocation2 + $0x1c0] sm:$0xff] %vm1932_vm11, %v1873_v45 }
 0x249   : > { %1747 = vst.msk [vmem:[#allocation2 + $0x1d8] sm:$0xff] %vm1708_vm10, %v1649_v56  ;;  %v2059_v63 = vld [vmem:[#allocation2 + $0x1a8] sm:$0xff] }
 0x24a   : > { %1992 = vst.msk [vmem:[#allocation2 + $0x1c0] sm:$0xff] %vm1973_vm12, %v5195_v51  ;;  %3659 = vmatmul.mubr.f32.gmra.mrb[32].mxu1 %v2059_v63 }
 0x24b   : > { %v1258_v54 = vpop.permute.xlu1 %1257 }
 0x24c   : > { %v1875_v13 = vpop.permute.xlu0 %1874  ;;  %1336 = vst.msk [vmem:[#allocation2 + $0x1b8] sm:$0xff] %vm1317_vm6, %v1258_v54 }
 0x24d   : > { %1952 = vst.msk [vmem:[#allocation2 + $0x1d8] sm:$0xff] %vm1932_vm11, %v1875_v13  ;;  %v2058_v18 = vld [vmem:[#allocation2 + $0x1a0] sm:$0xff] }
 0x24e   : > { %1993 = vst.msk [vmem:[#allocation2 + $0x1d8] sm:$0xff] %vm1973_vm12, %v5195_v51  ;;  %2299 = vmatprep.mubr.f32.mxu0 %v2058_v18 }
 0x24f   : > { %2300 = vmatmul.mubr.f32.gmra.mrb[34].mxu0 %v2057_v21  ;;  %v1454_v49 = vpop.permute.xlu1 %1453 }
 0x250   : > { %v1651_v57 = vpop.permute.xlu0 %1650  ;;  %1532 = vst.msk [vmem:[#allocation2 + $0x1b8] sm:$0xff] %vm1513_vm8, %v1454_v49 }
 0x251   : > { %1749 = vst.msk [vmem:[#allocation2 + $0x1f0] sm:$0xff] %vm1708_vm10, %v1651_v57  ;;  %v2062_v2 = vld [vmem:[#allocation2 + $0x1c0] sm:$0xff] }
 0x252   : > { %1744 = vst.msk [vmem:[#allocation2 + $0x1b8] sm:$0xff] %vm1706_vm9, %v1647_v62  ;;  %3661 = vmatprep.mubr.f32.mxu1 %v2062_v2 }
 0x253   : > { %v1877_v22 = vpop.permute.xlu1 %1876 }
 0x254   : > { %v5338_v0 = vpop.permute.xlu0 %1652  ;;  %1953 = vst.msk [vmem:[#allocation2 + $0x1f0] sm:$0xff] %vm1932_vm11, %v1877_v22 }
 0x255   : > { %1751 = vst.msk [vmem:[#allocation2 + $0x208] sm:$0xff] %vm1708_vm10, %v5338_v0  ;;  %v2065_v29 = vld [vmem:[#allocation2 + $0x1d8] sm:$0xff] }
 0x256   : > { %1994 = vst.msk [vmem:[#allocation2 + $0x1f0] sm:$0xff] %vm1973_vm12, %v5195_v51  ;;  %3662 = vmatmul.mubr.f32.gmra.mrb[34].mxu1 %v2065_v29 }
 0x257   : > { %v1260_v30 = vpop.permute.xlu1 %1259 }
 0x258   : > { %v1879_v48 = vpop.permute.xlu0 %1878  ;;  %1337 = vst.msk [vmem:[#allocation2 + $0x1d0] sm:$0xff] %vm1317_vm6, %v1260_v30  ;;  %v2075_v30 = vld [vmem:[#allocation2 + $0x228] sm:$0xff] }
 0x259   : > { %1954 = vst.msk [vmem:[#allocation2 + $0x208] sm:$0xff] %vm1932_vm11, %v1879_v48  ;;  %v2061_v12 = vld [vmem:[#allocation2 + $0x1b8] sm:$0xff]  ;;  %v5349_v16 = vpop.f32.mrb[0].mxu0 }
 0x25a   : > { %1995 = vst.msk [vmem:[#allocation2 + $0x208] sm:$0xff] %vm1973_vm12, %v5195_v51  ;;  %2304 = vmatprep.mubr.f32.mxu0 %v2061_v12  ;;  %v2218_v42 = vpop.f32.mrb[1].mxu0 }
 0x25b   : > { %2305 = vmatmul.mubr.f32.gmra.mrb[36].mxu0 %v2060_v25  ;;  %v1456_v3 = vpop.permute.xlu1 %1455 }
 0x25c   : > { %v5351_v43 = vpop.permute.xlu0 %1654  ;;  %1533 = vst.msk [vmem:[#allocation2 + $0x1d0] sm:$0xff] %vm1513_vm8, %v1456_v3 }
 0x25d   : > { %1753 = vst.msk [vmem:[#allocation2 + $0x220] sm:$0xff] %vm1708_vm10, %v5351_v43  ;;  %v2068_v4 = vld [vmem:[#allocation2 + $0x1f0] sm:$0xff]  ;;  %v5357_v26 = vpop.f32.mrb[0].mxu1 }
 0x25e   : > { %1746 = vst.msk [vmem:[#allocation2 + $0x1d0] sm:$0xff] %vm1706_vm9, %v1649_v56  ;;  %3664 = vmatprep.mubr.f32.mxu1 %v2068_v4  ;;  %v2338_v61 = vpop.f32.mrb[1].mxu1  ;;  %v2072_v56 = vld [vmem:[#allocation2 + $0x210] sm:$0xff] }
 0x25f   : > { %v1881_v46 = vpop.permute.xlu1 %1880 }
 0x260   : > { %v5359_v47 = vpop.permute.xlu0 %1656  ;;  %1955 = vst.msk [vmem:[#allocation2 + $0x220] sm:$0xff] %vm1932_vm11, %v1881_v46 }
 0x261   : > { %1755 = vst.msk [vmem:[#allocation2 + $0x238] sm:$0xff] %vm1708_vm10, %v5359_v47  ;;  %v2071_v28 = vld [vmem:[#allocation2 + $0x208] sm:$0xff] }
 0x262   : > { %1996 = vst.msk [vmem:[#allocation2 + $0x220] sm:$0xff] %vm1973_vm12, %v5195_v51  ;;  %3665 = vmatmul.mubr.f32.gmra.mrb[36].mxu1 %v2071_v28 }
 0x263   : > { %v1262_v33 = vpop.permute.xlu1 %1261 }
 0x264   : > { %v1883_v32 = vpop.permute.xlu0 %1882  ;;  %1338 = vst.msk [vmem:[#allocation2 + $0x1e8] sm:$0xff] %vm1317_vm6, %v1262_v33 }
 0x265   : > { %1956 = vst.msk [vmem:[#allocation2 + $0x238] sm:$0xff] %vm1932_vm11, %v1883_v32  ;;  %v2064_v60 = vld [vmem:[#allocation2 + $0x1d0] sm:$0xff] }
 0x266   : > { %1997 = vst.msk [vmem:[#allocation2 + $0x238] sm:$0xff] %vm1973_vm12, %v5195_v51  ;;  %2309 = vmatprep.mubr.f32.mxu0 %v2064_v60 }
 0x267   : > { %2310 = vmatmul.mubr.f32.gmra.mrb[38].mxu0 %v2063_v50  ;;  %v1885_v31 = vpop.permute.xlu1 %1884 }
 0x268   : > { %v1458_v24 = vpop.permute.xlu0 %1457  ;;  %1957 = vst.msk [vmem:[#allocation2 + $0x250] sm:$0xff] %vm1932_vm11, %v1885_v31 }
 0x269   : > { %1534 = vst.msk [vmem:[#allocation2 + $0x1e8] sm:$0xff] %vm1513_vm8, %v1458_v24  ;;  %v2074_v17 = vld [vmem:[#allocation2 + $0x220] sm:$0xff]  ;;  %v5375_v6 = vpop.f32.mrb[2].mxu0 }
 0x26a   : > { %1998 = vst.msk [vmem:[#allocation2 + $0x250] sm:$0xff] %vm1973_vm12, %v5195_v51  ;;  %v5377_v44 = vpop.f32.mrb[2].mxu1  ;;  %3667 = vmatprep.mubr.f32.mxu1 %v2074_v17  ;;  %v2223_v20 = vpop.f32.mrb[3].mxu0 }
 0x26b   : > { %1748 = vst.msk [vmem:[#allocation2 + $0x1e8] sm:$0xff] %vm1706_vm9, %v1651_v57  ;;  %v2343_v7 = vpop.f32.mrb[3].mxu1  ;;  %v1264_v59 = vpop.permute.xlu1 %1263 }
 0x26c   : > { %v1887_v1 = vpop.permute.xlu0 %1886  ;;  %1339 = vst.msk [vmem:[#allocation2 + $0x200] sm:$0xff] %vm1317_vm6, %v1264_v59 }
 0x26d   : > { %1958 = vst.msk [vmem:[#allocation2 + $0x268] sm:$0xff] %vm1932_vm11, %v1887_v1  ;;  %v2077_v5 = vld [vmem:[#allocation2 + $0x238] sm:$0xff] }
 0x26e   : > { %1999 = vst.msk [vmem:[#allocation2 + $0x268] sm:$0xff] %vm1973_vm12, %v5195_v51  ;;  %3668 = vmatmul.mubr.f32.gmra.mrb[38].mxu1 %v2077_v5 }
 0x26f   : > { %v1889_v34 = vpop.permute.xlu1 %1888 }
 0x270   : > { %v1460_v52 = vpop.permute.xlu0 %1459  ;;  %1959 = vst.msk [vmem:[#allocation2 + $0x280] sm:$0xff] %vm1932_vm11, %v1889_v34 }
 0x271   : > { %1535 = vst.msk [vmem:[#allocation2 + $0x200] sm:$0xff] %vm1513_vm8, %v1460_v52  ;;  %v2080_v35 = vld [vmem:[#allocation2 + $0x250] sm:$0xff] }
 0x272   : > { %v2067_v27 = vld [vmem:[#allocation2 + $0x1e8] sm:$0xff]  ;;  %2000 = vst.msk [vmem:[#allocation2 + $0x280] sm:$0xff] %vm1973_vm12, %v5195_v51  ;;  %3670 = vmatprep.mubr.f32.mxu1 %v2080_v35 }
 0x273   : > { %1750 = vst.msk [vmem:[#allocation2 + $0x200] sm:$0xff] %vm1706_vm9, %v5338_v0  ;;  %2314 = vmatprep.mubr.f32.mxu0 %v2067_v27  ;;  %v1073_v36 = vpop.permute.xlu1 %1072 }
 0x274   : > { %2315 = vmatmul.mubr.f32.gmra.mrb[40].mxu0 %v2066_v58  ;;  %v1891_v8 = vpop.permute.xlu0 %1890  ;;  %1147 = vst.msk [vmem:[#allocation2 + $0x218] sm:$0xff] %vm1124_vm5, %v1073_v36  ;;  %v5393_v37 = vpop.f32.mrb[4].mxu0 }
 0x275   : > { %1960 = vst.msk [vmem:[#allocation2 + $0x298] sm:$0xff] %vm1932_vm11, %v1891_v8  ;;  %v2083_v9 = vld [vmem:[#allocation2 + $0x268] sm:$0xff]  ;;  %v2228_v38 = vpop.f32.mrb[5].mxu0 }
 0x276   : > { %2001 = vst.msk [vmem:[#allocation2 + $0x298] sm:$0xff] %vm1973_vm12, %v5195_v51  ;;  %3671 = vmatmul.mubr.f32.gmra.mrb[40].mxu1 %v2083_v9 }
 0x277   : > { %v1462_v53 = vpop.permute.xlu1 %1461 }
 0x278   : > { %v1266_v39 = vpop.permute.xlu0 %1265 }
 0x279   : > { %1340 = vst.msk [vmem:[#allocation2 + $0x218] sm:$0xff] %vm1317_vm6, %v1266_v39  ;;  %v2086_v10 = vld [vmem:[#allocation2 + $0x280] sm:$0xff]  ;;  %v5397_v11 = vpop.f32.mrb[4].mxu1 }
 0x27a   : > { %v2070_v19 = vld [vmem:[#allocation2 + $0x200] sm:$0xff]  ;;  %1536 = vst.msk [vmem:[#allocation2 + $0x218] sm:$0xff] %vm1513_vm8, %v1462_v53  ;;  %3673 = vmatprep.mubr.f32.mxu1 %v2086_v10  ;;  %v2348_v41 = vpop.f32.mrb[5].mxu1 }
 0x27b   : > { %2319 = vmatprep.mubr.f32.mxu0 %v2070_v19  ;;  %1752 = vst.msk [vmem:[#allocation2 + $0x218] sm:$0xff] %vm1706_vm9, %v5351_v43  ;;  %v1895_v55 = vpop.permute.xlu1 %1894 }
 0x27c   : > { %2320 = vmatmul.mubr.f32.gmra.mrb[42].mxu0 %v2069_v40  ;;  %v1893_v23 = vpop.permute.xlu0 %1892  ;;  %1962 = vst.msk [vmem:[#allocation2 + $0x2c8] sm:$0xff] %vm1932_vm11, %v1895_v55 }
 0x27d   : > { %1961 = vst.msk [vmem:[#allocation2 + $0x2b0] sm:$0xff] %vm1932_vm11, %v1893_v23  ;;  %v2089_v14 = vld [vmem:[#allocation2 + $0x298] sm:$0xff] }
 0x27e   : > { %2003 = vst.msk [vmem:[#allocation2 + $0x2c8] sm:$0xff] %vm1973_vm12, %v5195_v51  ;;  %2002 = vst.msk [vmem:[#allocation2 + $0x2b0] sm:$0xff] %vm1973_vm12, %v5195_v51  ;;  %3674 = vmatmul.mubr.f32.gmra.mrb[42].mxu1 %v2089_v14 }
 0x27f   : > { %v1268_v62 = vpop.permute.xlu1 %1267 }
 0x280   : > { %v1075_v15 = vpop.permute.xlu0 %1074 }
 0x281   : > { %1148 = vst.msk [vmem:[#allocation2 + $0x230] sm:$0xff] %vm1124_vm5, %v1075_v15 }
 0x282   : > { %1341 = vst.msk [vmem:[#allocation2 + $0x230] sm:$0xff] %vm1317_vm6, %v1268_v62  ;;  %v2073_v45 = vld [vmem:[#allocation2 + $0x218] sm:$0xff] }
 0x283   : > { %2324 = vmatprep.mubr.f32.mxu0 %v2073_v45  ;;  %v1897_v63 = vpop.permute.xlu1 %1896 }
 0x284   : > { %v1464_v54 = vpop.permute.xlu0 %1463  ;;  %2325 = vmatmul.mubr.f32.gmra.mrb[44].mxu0 %v2072_v56  ;;  %1963 = vst.msk [vmem:[#allocation2 + $0x2e0] sm:$0xff] %vm1932_vm11, %v1897_v63 }
 0x285   : > { %1537 = vst.msk [vmem:[#allocation2 + $0x230] sm:$0xff] %vm1513_vm8, %v1464_v54  ;;  %v2092_v13 = vld [vmem:[#allocation2 + $0x2b0] sm:$0xff]  ;;  %v2095_v18 = vld [vmem:[#allocation2 + $0x2c8] sm:$0xff]  ;;  %v2231_v21 = vpop.f32.mrb[6].mxu0 }
 0x286   : > { %2004 = vst.msk [vmem:[#allocation2 + $0x2e0] sm:$0xff] %vm1973_vm12, %v5195_v51  ;;  %v5415_v49 = vpop.f32.mrb[6].mxu1  ;;  %3676 = vmatprep.mubr.f32.mxu1 %v2092_v13  ;;  %v2233_v57 = vpop.f32.mrb[7].mxu0 }
 0x287   : > { %1754 = vst.msk [vmem:[#allocation2 + $0x230] sm:$0xff] %vm1706_vm9, %v5359_v47  ;;  %v2353_v2 = vpop.f32.mrb[7].mxu1  ;;  %3677 = vmatmul.mubr.f32.gmra.mrb[44].mxu1 %v2095_v18 }
 0x288   : > { %v1899_v22 = vpop.permute.xlu0 %1898 }
 0x289   : > { %1964 = vst.msk [vmem:[#allocation2 + $0x2f8] sm:$0xff] %vm1932_vm11, %v1899_v22 }
 0x28a   : > { %2005 = vst.msk [vmem:[#allocation2 + $0x2f8] sm:$0xff] %vm1973_vm12, %v5195_v51 }
 0x28d   : > { %v2098_v29 = vld [vmem:[#allocation2 + $0x2e0] sm:$0xff] }
 0x28e   : > { %v2076_v0 = vld [vmem:[#allocation2 + $0x230] sm:$0xff]  ;;  %3679 = vmatprep.mubr.f32.mxu1 %v2098_v29 }
 0x28f   : > { %2329 = vmatprep.mubr.f32.mxu0 %v2076_v0 }
 0x290   : > { %2330 = vmatmul.mubr.f32.gmra.mrb[46].mxu0 %v2075_v30  ;;  %v2236_v12 = vpop.f32.mrb[8].mxu0 }
 0x291   : > { %v2101_v48 = vld [vmem:[#allocation2 + $0x2f8] sm:$0xff]  ;;  %v2238_v25 = vpop.f32.mrb[9].mxu0 }
 0x292   : > { %3680 = vmatmul.mubr.f32.gmra.mrb[46].mxu1 %v2101_v48 }
 0x295   : > { %v5420_v42 = vpop.f32.mrb[8].mxu1 }
 0x296   : > { %v2358_v3 = vpop.f32.mrb[9].mxu1 }
 0x2a1   : > { %v2241_v43 = vpop.f32.mrb[10].mxu0 }
 0x2a2   : > { %v5422_v4 = vpop.f32.mrb[10].mxu1  ;;  %v2243_v61 = vpop.f32.mrb[11].mxu0 }
 0x2a3   : > { %v2363_v46 = vpop.f32.mrb[11].mxu1 }
 0x2ac   : > { %v2246_v47 = vpop.f32.mrb[12].mxu0 }
 0x2ad   : > { %v2248_v51 = vpop.f32.mrb[13].mxu0 }
 0x2b1   : > { %v5424_v28 = vpop.f32.mrb[12].mxu1 }
 0x2b2   : > { %v2368_v33 = vpop.f32.mrb[13].mxu1 }
 0x2bd   : > { %v2251_v32 = vpop.f32.mrb[14].mxu0 }
 0x2be   : > { %v5426_v60 = vpop.f32.mrb[14].mxu1  ;;  %v2253_v50 = vpop.f32.mrb[15].mxu0 }
 0x2bf   : > { %v2373_v31 = vpop.f32.mrb[15].mxu1 }
 0x2c4   : > { %v2256_v24 = vpop.f32.mrb[16].mxu0 }
 0x2c5   : > { %v2258_v17 = vpop.f32.mrb[17].mxu0 }
 0x2c9   : > { %v3636_v20 = vpop.f32.mrb[16].mxu1 }
 0x2ca   : > { %v5429_v7 = vadd.f32 %v3636_v20, %v5375_v6  ;;  %v2441_v59 = vpop.f32.mrb[17].mxu1 }
 0x2cb   : > { %v5432_v1 = vadd.f32 %v2441_v59, %v5349_v16 }
 0x2d0   : > { %v2261_v5 = vpop.f32.mrb[18].mxu0 }
 0x2d1   : > { %v2263_v34 = vpop.f32.mrb[19].mxu0 }
 0x2d5   : > { %v3639_v52 = vpop.f32.mrb[18].mxu1 }
 0x2d6   : > { %v5434_v27 = vadd.f32 %v3639_v52, %v2231_v21  ;;  %v2451_v35 = vpop.f32.mrb[19].mxu1 }
 0x2d7   : > { %v5437_v58 = vadd.f32 %v2451_v35, %v5393_v37 }
 0x2dd   : > { %v2266_v36 = vpop.f32.mrb[20].mxu0 }
 0x2de   : > { %v3642_v8 = vpop.f32.mrb[20].mxu1  ;;  %v2268_v38 = vpop.f32.mrb[21].mxu0 }
 0x2df   : > { %v5439_v9 = vadd.f32 %v3642_v8, %v2241_v43  ;;  %v2461_v6 = vpop.f32.mrb[21].mxu1 }
 0x2e0   : > { %v5441_v53 = vadd.f32 %v2461_v6, %v2236_v12 }
 0x2e4   : > { %v2271_v39 = vpop.f32.mrb[22].mxu0 }
 0x2e5   : > { %v2273_v16 = vpop.f32.mrb[23].mxu0 }
 0x2e9   : > { %v3645_v19 = vpop.f32.mrb[22].mxu1 }
 0x2ea   : > { %v5443_v10 = vadd.f32 %v3645_v19, %v2251_v32  ;;  %v2471_v40 = vpop.f32.mrb[23].mxu1 }
 0x2eb   : > { %v5445_v41 = vadd.f32 %v2471_v40, %v2246_v47 }
 0x2f1   : > { %v2276_v55 = vpop.f32.mrb[24].mxu0 }
 0x2f2   : > { %v3648_v23 = vpop.f32.mrb[24].mxu1  ;;  %v2278_v14 = vpop.f32.mrb[25].mxu0 }
 0x2f3   : > { %v5447_v37 = vadd.f32 %v3648_v23, %v2261_v5  ;;  %v2481_v62 = vpop.f32.mrb[25].mxu1 }
 0x2f4   : > { %v5449_v15 = vadd.f32 %v2481_v62, %v2256_v24 }
 0x2f5   : > { %2610 = vrot.lane.b32.xlu0 %v5447_v37, %s3946_s11 }
 0x2f6   : > { %2608 = vrot.lane.b32.xlu1 %v5449_v15, %s3946_s11 }
 0x2f8   : > { %v2281_v45 = vpop.f32.mrb[26].mxu0 }
 0x2f9   : > { %v2283_v56 = vpop.f32.mrb[27].mxu0 }
 0x2fd   : > { %v3651_v63 = vpop.f32.mrb[26].mxu1 }
 0x2fe   : > { %v5455_v54 = vadd.f32 %v3651_v63, %v2271_v39  ;;  %v2491_v13 = vpop.f32.mrb[27].mxu1 }
 0x2ff   : > { %v5457_v18 = vadd.f32 %v2491_v13, %v2266_v36 }
 0x300   : > { %2614 = vrot.lane.b32.xlu0 %v5455_v54, %s3946_s11 }
 0x301   : > { %2612 = vrot.lane.b32.xlu1 %v5457_v18, %s3946_s11 }
 0x305   : > { %v2286_v21 = vpop.f32.mrb[28].mxu0 }
 0x306   : > { %v3654_v57 = vpop.f32.mrb[28].mxu1  ;;  %v2288_v22 = vpop.f32.mrb[29].mxu0 }
 0x307   : > { %v5463_v2 = vadd.f32 %v3654_v57, %v2281_v45  ;;  %v2501_v0 = vpop.f32.mrb[29].mxu1 }
 0x308   : > { %v5465_v29 = vadd.f32 %v2501_v0, %v2276_v55 }
 0x309   : > { %2618 = vrot.lane.b32.xlu0 %v5463_v2, %s3946_s11 }
 0x30a   : > { %2616 = vrot.lane.b32.xlu1 %v5465_v29, %s3946_s11 }
 0x30d   : > { %v2291_v30 = vpop.f32.mrb[30].mxu0 }
 0x30e   : > { %v2293_v48 = vpop.f32.mrb[31].mxu0 }
 0x311   : > { %v3657_v12 = vpop.f32.mrb[30].mxu1 }
 0x312   : > { %v5471_v25 = vadd.f32 %v3657_v12, %v2291_v30  ;;  %v2511_v3 = vpop.f32.mrb[31].mxu1 }
 0x313   : > { %v5473_v43 = vadd.f32 %v2511_v3, %v2286_v21 }
 0x314   : > { %2622 = vrot.lane.b32.xlu0 %v5471_v25, %s3946_s11 }
 0x315   : > { %2620 = vrot.lane.b32.xlu1 %v5473_v43, %s3946_s11 }
 0x316   : > { %v2296_v61 = vpop.f32.mrb[32].mxu0 }
 0x317   : > { %v2298_v46 = vpop.f32.mrb[33].mxu0 }
 0x31d   : > { %v3660_v47 = vpop.f32.mrb[32].mxu1 }
 0x31e   : > { %v2521_v51 = vpop.f32.mrb[33].mxu1 }
 0x31f   : > { %v5479_v33 = vadd.f32 %v2521_v51, %v2296_v61 }
 0x321   : > { %2640 = vrot.lane.b32.xlu1 %v5479_v33, %s3949_s22 }
 0x322   : > { %v2301_v32 = vpop.f32.mrb[34].mxu0 }
 0x323   : > { %v5483_v50 = vadd.f32 %v3660_v47, %v2301_v32  ;;  %v2303_v31 = vpop.f32.mrb[35].mxu0 }
 0x325   : > { %2642 = vrot.lane.b32.xlu0 %v5483_v50, %s3949_s22 }
 0x329   : > { %v3663_v24 = vpop.f32.mrb[34].mxu1 }
 0x32a   : > { %v2531_v17 = vpop.f32.mrb[35].mxu1 }
 0x32e   : > { %v2306_v20 = vpop.f32.mrb[36].mxu0 }
 0x32f   : > { %v5487_v59 = vadd.f32 %v2531_v17, %v2306_v20  ;;  %v2308_v5 = vpop.f32.mrb[37].mxu0 }
 0x331   : > { %2644 = vrot.lane.b32.xlu1 %v5487_v59, %s3949_s22 }
 0x335   : > { %v3666_v34 = vpop.f32.mrb[36].mxu1 }
 0x336   : > { %v2541_v52 = vpop.f32.mrb[37].mxu1 }
 0x33a   : > { %v2311_v35 = vpop.f32.mrb[38].mxu0 }
 0x33b   : > { %v5491_v36 = vadd.f32 %v3663_v24, %v2311_v35  ;;  %v2313_v8 = vpop.f32.mrb[39].mxu0 }
 0x33d   : > { %2646 = vrot.lane.b32.xlu0 %v5491_v36, %s3949_s22 }
 0x341   : > { %v3669_v38 = vpop.f32.mrb[38].mxu1 }
 0x342   : > { %v2551_v6 = vpop.f32.mrb[39].mxu1 }
 0x347   : > { %v2316_v39 = vpop.f32.mrb[40].mxu0 }
 0x348   : > { %v5495_v16 = vadd.f32 %v2541_v52, %v2316_v39  ;;  %v2318_v19 = vpop.f32.mrb[41].mxu0 }
 0x349   : > { %v3672_v40 = vpop.f32.mrb[40].mxu1 }
 0x34a   : > { %2648 = vrot.lane.b32.xlu1 %v5495_v16, %s3949_s22  ;;  %v5500_v55 = vadd.f32 %v3672_v40, %v5377_v44  ;;  %v2561_v23 = vpop.f32.mrb[41].mxu1 }
 0x34b   : > { %v5503_v14 = vadd.f32 %v2561_v23, %v5357_v26 }
 0x34c   : > { %6038 = vst [vmem:[#allocation4_spill] sm:$0xff] %v5500_v55 }
 0x34d   : > { %6039 = vst [vmem:[#allocation11_spill] sm:$0xff] %v5503_v14 }
 0x34f   : > { %v2321_v62 = vpop.f32.mrb[42].mxu0 }
 0x350   : > { %v5505_v45 = vadd.f32 %v3666_v34, %v2321_v62  ;;  %v2323_v56 = vpop.f32.mrb[43].mxu0 }
 0x351   : > { %v3675_v63 = vpop.f32.mrb[42].mxu1 }
 0x352   : > { %2650 = vrot.lane.b32.xlu0 %v5505_v45, %s3949_s22  ;;  %v5510_v13 = vadd.f32 %v3675_v63, %v5415_v49  ;;  %v2571_v21 = vpop.f32.mrb[43].mxu1 }
 0x353   : > { %v5513_v57 = vadd.f32 %v2571_v21, %v5397_v11 }
 0x354   : > { %6040 = vst [vmem:[#allocation7_spill] sm:$0xff] %v5510_v13 }
 0x355   : > { %6041 = vst [vmem:[#allocation3_spill] sm:$0xff] %v5513_v57 }
 0x357   : > { %v2326_v44 = vpop.f32.mrb[44].mxu0 }
 0x358   : > { %v5515_v22 = vadd.f32 %v2551_v6, %v2326_v44  ;;  %v2328_v26 = vpop.f32.mrb[45].mxu0 }
 0x35a   : > { %v3678_v0 = vpop.f32.mrb[44].mxu1  ;;  %2652 = vrot.lane.b32.xlu1 %v5515_v22, %s3949_s22 }
 0x35b   : > { %v5520_v30 = vadd.f32 %v3678_v0, %v5422_v4  ;;  %v2581_v48 = vpop.f32.mrb[45].mxu1 }
 0x35c   : > { %v5523_v12 = vadd.f32 %v2581_v48, %v5420_v42 }
 0x35d   : > { %6042 = vst [vmem:[#allocation9_spill] sm:$0xff] %v5520_v30 }
 0x35e   : > { %6043 = vst [vmem:[#allocation6_spill] sm:$0xff] %v5523_v12  ;;  %2672 = vrot.lane.b32.xlu1 %v5503_v14, %s3950_s25 }
 0x362   : > { %2676 = vrot.lane.b32.xlu1 %v5513_v57, %s3950_s25 }
 0x363   : > { %v2331_v11 = vpop.f32.mrb[46].mxu0 }
 0x364   : > { %v5529_v49 = vadd.f32 %v3669_v38, %v2331_v11  ;;  %v2333_v3 = vpop.f32.mrb[47].mxu0 }
 0x365   : > { %v3681_v61 = vpop.f32.mrb[46].mxu1 }
 0x366   : > { %2654 = vrot.lane.b32.xlu0 %v5529_v49, %s3949_s22  ;;  %v5534_v4 = vadd.f32 %v3681_v61, %v5426_v60  ;;  %v2591_v42 = vpop.f32.mrb[47].mxu1  ;;  %2680 = vrot.lane.b32.xlu1 %v5523_v12, %s3950_s25 }
 0x367   : > { %v5539_v46 = vadd.f32 %v2591_v42, %v5424_v28  ;;  %v2611_v60 = vpop.permute.xlu0 %2610 }
 0x368   : > { %6044 = vst [vmem:[#allocation8_spill] sm:$0xff] %v5534_v4  ;;  %v2609_v28 = vpop.permute.xlu1 %2608  ;;  %v2697_v52 = vsel %vm1708_vm10, %v5429_v7, %v2611_v60 }
 0x369   : > { %6045 = vst [vmem:[#allocation5_spill] sm:$0xff] %v5539_v46  ;;  %v2696_v17 = vsel %vm1708_vm10, %v5432_v1, %v2609_v28 }
 0x36a   : > { %2674 = vrot.lane.b32.xlu0 %v5500_v55, %s3950_s25  ;;  %2684 = vrot.lane.b32.xlu1 %v5539_v46, %s3950_s25 }
 0x36e   : > { %2678 = vrot.lane.b32.xlu0 %v5510_v13, %s3950_s25  ;;  %2730 = vrot.lane.b32.xlu1 %v5432_v1, %s3950_s25 }
 0x372   : > { %2682 = vrot.lane.b32.xlu0 %v5520_v30, %s3950_s25  ;;  %2734 = vrot.lane.b32.xlu1 %v5437_v58, %s3950_s25  ;;  %v2615_v51 = vpop.permute.xlu0 %2614 }
 0x373   : > { %v2613_v47 = vpop.permute.xlu1 %2612  ;;  %v2699_v19 = vsel %vm1708_vm10, %v5434_v27, %v2615_v51 }
 0x374   : > { %v2698_v38 = vsel %vm1708_vm10, %v5437_v58, %v2613_v47 }
 0x376   : > { %2686 = vrot.lane.b32.xlu0 %v5534_v4, %s3950_s25  ;;  %2738 = vrot.lane.b32.xlu1 %v5441_v53, %s3950_s25 }
 0x37a   : > { %2732 = vrot.lane.b32.xlu0 %v5429_v7, %s3950_s25  ;;  %2742 = vrot.lane.b32.xlu1 %v5445_v41, %s3950_s25 }
 0x37b   : > { %v2619_v31 = vpop.permute.xlu0 %2618 }
 0x37c   : > { %v2617_v32 = vpop.permute.xlu1 %2616  ;;  %v2701_v21 = vsel %vm1708_vm10, %v5439_v9, %v2619_v31 }
 0x37d   : > { %v2700_v62 = vsel %vm1708_vm10, %v5441_v53, %v2617_v32 }
 0x37e   : > { %2736 = vrot.lane.b32.xlu0 %v5434_v27, %s3950_s25  ;;  %2754 = vrot.lane.b32.xlu1 %v5479_v33, %s3946_s11 }
 0x382   : > { %2740 = vrot.lane.b32.xlu0 %v5439_v9, %s3950_s25  ;;  %2758 = vrot.lane.b32.xlu1 %v5487_v59, %s3946_s11 }
 0x386   : > { %2744 = vrot.lane.b32.xlu0 %v5443_v10, %s3950_s25  ;;  %2762 = vrot.lane.b32.xlu1 %v5495_v16, %s3946_s11  ;;  %v2623_v20 = vpop.permute.xlu0 %2622 }
 0x387   : > { %v2621_v24 = vpop.permute.xlu1 %2620 }
 0x388   : > { %v2702_v0 = vsel %vm1708_vm10, %v5445_v41, %v2621_v24 }
 0x38a   : > { %2756 = vrot.lane.b32.xlu0 %v5483_v50, %s3946_s11  ;;  %2766 = vrot.lane.b32.xlu1 %v5515_v22, %s3946_s11 }
 0x38e   : > { %2760 = vrot.lane.b32.xlu0 %v5491_v36, %s3946_s11  ;;  %2778 = vrot.lane.b32.xlu1 %v5503_v14, %s3949_s22 }
 0x392   : > { %2764 = vrot.lane.b32.xlu0 %v5505_v45, %s3946_s11  ;;  %2782 = vrot.lane.b32.xlu1 %v5513_v57, %s3949_s22 }
 0x393   : > { %v2641_v5 = vpop.permute.xlu1 %2640 }
 0x394   : > { %v2705_v34 = vsel %vm2704_vm13, %v2696_v17, %v2641_v5 }
 0x396   : > { %2768 = vrot.lane.b32.xlu0 %v5529_v49, %s3946_s11  ;;  %2786 = vrot.lane.b32.xlu1 %v5523_v12, %s3949_s22 }
 0x397   : > { %v2643_v35 = vpop.permute.xlu0 %2642 }
 0x398   : > { %v2706_v8 = vsel %vm2704_vm13, %v2697_v52, %v2643_v35 }
 0x39a   : > { %2780 = vrot.lane.b32.xlu0 %v5500_v55, %s3949_s22  ;;  %2790 = vrot.lane.b32.xlu1 %v5539_v46, %s3949_s22 }
 0x39e   : > { %2784 = vrot.lane.b32.xlu0 %v5510_v13, %s3949_s22  ;;  %2826 = vrot.lane.b32.xlu1 %v5432_v1, %s3949_s22 }
 0x3a2   : > { %2788 = vrot.lane.b32.xlu0 %v5520_v30, %s3949_s22  ;;  %2830 = vrot.lane.b32.xlu1 %v5437_v58, %s3949_s22 }
 0x3a3   : > { %v2645_v6 = vpop.permute.xlu1 %2644 }
 0x3a4   : > { %v2707_v39 = vsel %vm2704_vm13, %v2698_v38, %v2645_v6 }
 0x3a6   : > { %2792 = vrot.lane.b32.xlu0 %v5534_v4, %s3949_s22  ;;  %2834 = vrot.lane.b32.xlu1 %v5441_v53, %s3949_s22 }
 0x3aa   : > { %2828 = vrot.lane.b32.xlu0 %v5429_v7, %s3949_s22  ;;  %2838 = vrot.lane.b32.xlu1 %v5445_v41, %s3949_s22 }
 0x3ae   : > { %2832 = vrot.lane.b32.xlu0 %v5434_v27, %s3949_s22  ;;  %2850 = vrot.lane.b32.xlu1 %v5449_v15, %s3950_s25 }
 0x3af   : > { %v2647_v40 = vpop.permute.xlu0 %2646 }
 0x3b0   : > { %v2708_v23 = vsel %vm2704_vm13, %v2699_v19, %v2647_v40 }
 0x3b2   : > { %2836 = vrot.lane.b32.xlu0 %v5439_v9, %s3949_s22  ;;  %2854 = vrot.lane.b32.xlu1 %v5457_v18, %s3950_s25 }
 0x3b6   : > { %2840 = vrot.lane.b32.xlu0 %v5443_v10, %s3949_s22  ;;  %2858 = vrot.lane.b32.xlu1 %v5465_v29, %s3950_s25 }
 0x3ba   : > { %2852 = vrot.lane.b32.xlu0 %v5447_v37, %s3950_s25  ;;  %2862 = vrot.lane.b32.xlu1 %v5473_v43, %s3950_s25 }
 0x3bc   : > { %v2649_v56 = vpop.permute.xlu1 %2648 }
 0x3bd   : > { %v2709_v63 = vsel %vm2704_vm13, %v2700_v62, %v2649_v56 }
 0x3be   : > { %2856 = vrot.lane.b32.xlu0 %v5455_v54, %s3950_s25  ;;  %2874 = vrot.lane.b32.xlu1 %v5503_v14, %s3946_s11 }
 0x3c2   : > { %2860 = vrot.lane.b32.xlu0 %v5463_v2, %s3950_s25  ;;  %2878 = vrot.lane.b32.xlu1 %v5513_v57, %s3946_s11 }
 0x3c4   : > { %v2651_v44 = vpop.permute.xlu0 %2650 }
 0x3c5   : > { %v2710_v26 = vsel %vm2704_vm13, %v2701_v21, %v2651_v44 }
 0x3c6   : > { %2864 = vrot.lane.b32.xlu0 %v5471_v25, %s3950_s25  ;;  %2882 = vrot.lane.b32.xlu1 %v5523_v12, %s3946_s11 }
 0x3ca   : > { %2876 = vrot.lane.b32.xlu0 %v5500_v55, %s3946_s11  ;;  %2886 = vrot.lane.b32.xlu1 %v5539_v46, %s3946_s11 }
 0x3cc   : > { %v2653_v48 = vpop.permute.xlu1 %2652 }
 0x3cd   : > { %v2711_v11 = vsel %vm2704_vm13, %v2702_v0, %v2653_v48 }
 0x3ce   : > { %2880 = vrot.lane.b32.xlu0 %v5510_v13, %s3946_s11  ;;  %2922 = vrot.lane.b32.xlu1 %v5432_v1, %s3946_s11  ;;  %v2703_v1 = vsel %vm1708_vm10, %v5443_v10, %v2623_v20 }
 0x3d0   : > { %v2673_v3 = vpop.permute.xlu1 %2672 }
 0x3d1   : > { %v5667_v61 = vsel %vm2713_vm14, %v2705_v34, %v2673_v3 }
 0x3d2   : > { %2884 = vrot.lane.b32.xlu0 %v5520_v30, %s3946_s11  ;;  %2926 = vrot.lane.b32.xlu1 %v5437_v58, %s3946_s11 }
 0x3d4   : > { %v2677_v42 = vpop.permute.xlu1 %2676 }
 0x3d5   : > { %v5674_v28 = vsel %vm2713_vm14, %v2707_v39, %v2677_v42 }
 0x3d6   : > { %2888 = vrot.lane.b32.xlu0 %v5534_v4, %s3946_s11  ;;  %2930 = vrot.lane.b32.xlu1 %v5441_v53, %s3946_s11 }
 0x3d8   : > { %v2655_v60 = vpop.permute.xlu0 %2654  ;;  %v2681_v51 = vpop.permute.xlu1 %2680 }
 0x3d9   : > { %v2712_v47 = vsel %vm2704_vm13, %v2703_v1, %v2655_v60  ;;  %v5684_v32 = vsel %vm2713_vm14, %v2709_v63, %v2681_v51 }
 0x3da   : > { %2924 = vrot.lane.b32.xlu0 %v5429_v7, %s3946_s11  ;;  %2934 = vrot.lane.b32.xlu1 %v5445_v41, %s3946_s11 }
 0x3dc   : > { %v2675_v58 = vpop.permute.xlu0 %2674  ;;  %v2685_v53 = vpop.permute.xlu1 %2684 }
 0x3dd   : > { %v5691_v31 = vsel %vm2713_vm14, %v2706_v8, %v2675_v58  ;;  %v5694_v24 = vsel %vm2713_vm14, %v2711_v11, %v2685_v53 }
 0x3de   : > { %2928 = vrot.lane.b32.xlu0 %v5434_v27, %s3946_s11  ;;  %2946 = vrot.lane.b32.xlu1 %v5449_v15, %s3949_s22 }
 0x3e0   : > { %v2679_v17 = vpop.permute.xlu0 %2678  ;;  %v2731_v20 = vpop.permute.xlu1 %2730 }
 0x3e1   : > { %v5701_v7 = vsel %vm2713_vm14, %v2708_v23, %v2679_v17  ;;  %v2802_v17 = vsel %vm1708_vm10, %v2731_v20, %v5449_v15  ;;  %v3026_v15 = vmul.f32 0.5, %v5667_v61 }
 0x3e2   : > { %2932 = vrot.lane.b32.xlu0 %v5439_v9, %s3946_s11  ;;  %2950 = vrot.lane.b32.xlu1 %v5457_v18, %s3949_s22 }
 0x3e4   : > { %v2683_v41 = vpop.permute.xlu0 %2682  ;;  %v2735_v34 = vpop.permute.xlu1 %2734 }
 0x3e5   : > { %v5708_v5 = vsel %vm2713_vm14, %v2710_v26, %v2683_v41  ;;  %v2804_v13 = vsel %vm1708_vm10, %v2735_v34, %v5457_v18 }
 0x3e6   : > { %2936 = vrot.lane.b32.xlu0 %v5443_v10, %s3946_s11  ;;  %2954 = vrot.lane.b32.xlu1 %v5465_v29, %s3949_s22 }
 0x3e8   : > { %v2687_v27 = vpop.permute.xlu0 %2686  ;;  %v2739_v35 = vpop.permute.xlu1 %2738 }
 0x3e9   : > { %v5715_v52 = vsel %vm2713_vm14, %v2712_v47, %v2687_v27 }
 0x3ea   : > { %2948 = vrot.lane.b32.xlu0 %v5447_v37, %s3949_s22  ;;  %2958 = vrot.lane.b32.xlu1 %v5473_v43, %s3949_s22 }
 0x3ec   : > { %v2733_v9 = vpop.permute.xlu0 %2732  ;;  %v5721_v8 = vpop.permute.xlu1 %2742 }
 0x3ee   : > { %2952 = vrot.lane.b32.xlu0 %v5455_v54, %s3949_s22  ;;  %2970 = vrot.lane.b32.xlu1 %v5479_v33, %s3950_s25 }
 0x3f0   : > { %v5727_v10 = vpop.permute.xlu0 %2736  ;;  %v2755_v38 = vpop.permute.xlu1 %2754 }
 0x3f1   : > { %v2810_v41 = vsel %vm2704_vm13, %v2802_v17, %v2755_v38  ;;  %v2806_v38 = vsel %vm1708_vm10, %v2739_v35, %v5465_v29  ;;  %v3028_v17 = vmul.f32 0.5, %v5674_v28  ;;  %v3032_v29 = vmul.f32 0.5, %v5694_v24 }
 0x3f2   : > { %2956 = vrot.lane.b32.xlu0 %v5463_v2, %s3949_s22  ;;  %2974 = vrot.lane.b32.xlu1 %v5487_v59, %s3950_s25 }
 0x3f4   : > { %v5733_v6 = vpop.permute.xlu0 %2740  ;;  %v2759_v39 = vpop.permute.xlu1 %2758 }
 0x3f5   : > { %v2812_v46 = vsel %vm2704_vm13, %v2804_v13, %v2759_v39  ;;  %v3027_v39 = vmul.f32 0.5, %v5691_v31 }
 0x3f6   : > { %2960 = vrot.lane.b32.xlu0 %v5471_v25, %s3949_s22  ;;  %2978 = vrot.lane.b32.xlu1 %v5495_v16, %s3950_s25 }
 0x3f8   : > { %v5739_v19 = vpop.permute.xlu0 %2744  ;;  %v2763_v40 = vpop.permute.xlu1 %2762 }
 0x3f9   : > { %v2814_v18 = vsel %vm2704_vm13, %v2806_v38, %v2763_v40 }
 0x3fa   : > { %2972 = vrot.lane.b32.xlu0 %v5483_v50, %s3950_s25  ;;  %2982 = vrot.lane.b32.xlu1 %v5515_v22, %s3950_s25 }
 0x3fc   : > { %v2757_v23 = vpop.permute.xlu0 %2756  ;;  %v2767_v62 = vpop.permute.xlu1 %2766 }
 0x3fe   : > { %2976 = vrot.lane.b32.xlu0 %v5491_v36, %s3950_s25 }
 0x400   : > { %v2761_v56 = vpop.permute.xlu0 %2760  ;;  %v2779_v63 = vpop.permute.xlu1 %2778 }
 0x401   : > { %v2818_v27 = vsel %vm2713_vm14, %v2810_v41, %v2779_v63 }
 0x402   : > { %2980 = vrot.lane.b32.xlu0 %v5505_v45, %s3950_s25  ;;  %v3058_v55 = vmul.f32 0.5, %v2818_v27  ;;  %v3031_v27 = vmul.f32 0.5, %v5708_v5 }
 0x404   : > { %v5749_v21 = vpop.permute.xlu0 %2764  ;;  %v2783_v44 = vpop.permute.xlu1 %2782  ;;  %3832 = vtanh.f32 %v3058_v55  ;;  %v2803_v55 = vsel %vm1708_vm10, %v2733_v9, %v5447_v37 }
 0x405   : > { %v2820_v12 = vsel %vm2713_vm14, %v2812_v46, %v2783_v44  ;;  %3834 = vtanh.f32 %v3026_v15  ;;  %v3030_v46 = vmul.f32 0.5, %v5684_v32  ;;  %v2811_v61 = vsel %vm2704_vm13, %v2803_v55, %v2757_v23 }
 0x406   : > { %2984 = vrot.lane.b32.xlu0 %v5529_v49, %s3950_s25  ;;  %v3060_v20 = vmul.f32 0.5, %v2820_v12  ;;  %v2808_v12 = vsel %vm1708_vm10, %v5721_v8, %v5473_v43  ;;  %v2805_v43 = vsel %vm1708_vm10, %v5727_v10, %v5455_v54  ;;  %v2807_v10 = vsel %vm1708_vm10, %v5733_v6, %v5463_v2 }
 0x407   : > { %v2816_v32 = vsel %vm2704_vm13, %v2808_v12, %v2767_v62  ;;  %v2813_v62 = vsel %vm2704_vm13, %v2805_v43, %v2761_v56 }
 0x408   : > { %v5753_v26 = vpop.permute.xlu0 %2768  ;;  %v2787_v0 = vpop.permute.xlu1 %2786  ;;  %3836 = vtanh.f32 %v3060_v20 }
 0x409   : > { %v2822_v34 = vsel %vm2713_vm14, %v2814_v18, %v2787_v0  ;;  %3838 = vtanh.f32 %v3028_v17 }
 0x40a   : > { %v3062_v35 = vmul.f32 0.5, %v2822_v34  ;;  %3840 = vtanh.f32 %v3030_v46 }
 0x40b   : > { %3842 = vtanh.f32 %v3027_v39  ;;  %v3018_v39 = vld [vmem:[%s5829_s6] sm:$0xff] }
 0x40c   : > { %v2781_v48 = vpop.permute.xlu0 %2780  ;;  %v2791_v11 = vpop.permute.xlu1 %2790  ;;  %3844 = vtanh.f32 %v3032_v29 }
 0x40d   : > { %v2819_v40 = vsel %vm2713_vm14, %v2811_v61, %v2781_v48  ;;  %v2824_v37 = vsel %vm2713_vm14, %v2816_v32, %v2791_v11  ;;  %3846 = vtanh.f32 %v3062_v35 }
 0x40e   : > { %v3059_v24 = vmul.f32 0.5, %v2819_v40  ;;  %v3833_v23 = vpop.eup %3832  ;;  %v3064_v44 = vmul.f32 0.5, %v2824_v37  ;;  %v3033_v40 = vmul.f32 0.5, %v5715_v52 }
 0x40f   : > { %v3835_v56 = vpop.eup %3834  ;;  %v3074_v41 = vadd.f32 1.0, %v3833_v23 }
 0x410   : > { %v2785_v3 = vpop.permute.xlu0 %2784  ;;  %v2827_v42 = vpop.permute.xlu1 %2826 }
 0x411   : > { %v2821_v11 = vsel %vm2713_vm14, %v2813_v62, %v2785_v3  ;;  %v3082_v5 = vmul.f32 0.5, %v3074_v41 }
 0x412   : > { %v3837_v3 = vpop.eup %3836 }
 0x413   : > { %v3839_v20 = vpop.eup %3838  ;;  %v3076_v17 = vadd.f32 1.0, %v3837_v3 }
 0x414   : > { %v5755_v1 = vpop.permute.xlu0 %2788  ;;  %v2831_v60 = vpop.permute.xlu1 %2830  ;;  %v3044_v35 = vadd.f32 1.0, %v3839_v20 }
 0x415   : > { %v3841_v38 = vpop.eup %3840 }
 0x416   : > { %v3843_v34 = vpop.eup %3842 }
 0x417   : > { %v3845_v12 = vpop.eup %3844 }
 0x418   : > { %v5757_v47 = vpop.permute.xlu0 %2792  ;;  %v5759_v51 = vpop.permute.xlu1 %2834 }
 0x419   : > { %v3847_v32 = vpop.eup %3846 }
 0x41a   : > { %v3078_v23 = vadd.f32 1.0, %v3847_v32 }
 0x41c   : > { %v5761_v58 = vpop.permute.xlu0 %2828  ;;  %v5763_v53 = vpop.permute.xlu1 %2838  ;;  %v3086_v3 = vmul.f32 0.5, %v3078_v23 }
 0x420   : > { %v5769_v4 = vpop.permute.xlu0 %2832  ;;  %v2851_v30 = vpop.permute.xlu1 %2850 }
 0x421   : > { %v2898_v9 = vsel %vm1708_vm10, %v2827_v42, %v2851_v30  ;;  %v3029_v30 = vmul.f32 0.5, %v5701_v7 }
 0x422   : > { %v2906_v0 = vsel %vm2704_vm13, %v2898_v9, %v5479_v33  ;;  %v2815_v33 = vsel %vm2704_vm13, %v2807_v10, %v5749_v21 }
 0x424   : > { %v5775_v57 = vpop.permute.xlu0 %2836  ;;  %v2855_v14 = vpop.permute.xlu1 %2854 }
 0x425   : > { %v2900_v42 = vsel %vm1708_vm10, %v2831_v60, %v2855_v14  ;;  %v3061_v14 = vmul.f32 0.5, %v2821_v11  ;;  %v2823_v60 = vsel %vm2713_vm14, %v2815_v33, %v5755_v1  ;;  %v3042_v1 = vadd.f32 1.0, %v3835_v56 }
 0x426   : > { %v2908_v2 = vsel %vm2704_vm13, %v2900_v42, %v5487_v59  ;;  %v2809_v59 = vsel %vm1708_vm10, %v5739_v19, %v5471_v25  ;;  %v3063_v18 = vmul.f32 0.5, %v2823_v60 }
 0x428   : > { %v5780_v63 = vpop.permute.xlu0 %2840  ;;  %v2859_v13 = vpop.permute.xlu1 %2858 }
 0x429   : > { %v2902_v21 = vsel %vm1708_vm10, %v5759_v51, %v2859_v13  ;;  %v2817_v51 = vsel %vm2704_vm13, %v2809_v59, %v5753_v26  ;;  %v3050_v26 = vmul.f32 0.5, %v3042_v1 }
 0x42a   : > { %v2910_v55 = vsel %vm2704_vm13, %v2902_v21, %v5495_v16  ;;  %v2825_v25 = vsel %vm2713_vm14, %v2817_v51, %v5757_v47 }
 0x42b   : > { %v3065_v9 = vmul.f32 0.5, %v2825_v25 }
 0x42c   : > { %v2853_v28 = vpop.permute.xlu0 %2852  ;;  %v2863_v31 = vpop.permute.xlu1 %2862 }
 0x42d   : > { %v2899_v13 = vsel %vm1708_vm10, %v5761_v58, %v2853_v28  ;;  %v2904_v19 = vsel %vm1708_vm10, %v5763_v53, %v2863_v31  ;;  %v3090_v58 = vmul.f32 %v3082_v5, %v3018_v39  ;;  %v3084_v28 = vmul.f32 0.5, %v3076_v17  ;;  %v3019_v39 = vld [vmem:[%s5829_s6 + $0x8] sm:$0xff] }
 0x42e   : > { %v2907_v16 = vsel %vm2704_vm13, %v2899_v13, %v5483_v50  ;;  %v2912_v52 = vsel %vm2704_vm13, %v2904_v19, %v5515_v22 }
 0x430   : > { %v5801_v8 = vpop.permute.xlu0 %2856  ;;  %v2875_v48 = vpop.permute.xlu1 %2874 }
 0x431   : > { %v2914_v54 = vsel %vm2713_vm14, %v2906_v0, %v2875_v48  ;;  %v2901_v53 = vsel %vm1708_vm10, %v5769_v4, %v5801_v8  ;;  %v3052_v0 = vmul.f32 0.5, %v3044_v35  ;;  %v3020_v4 = vld [vmem:[%s5829_s6 + $0x10] sm:$0xff]  ;;  %v3046_v48 = vadd.f32 1.0, %v3841_v38 }
 0x432   : > { %3848 = vtanh.f32 %v2914_v54  ;;  %v3092_v33 = vmul.f32 %v3084_v28, %v3020_v4 }
 0x433   : > { %3850 = vtanh.f32 %v3059_v24  ;;  %v3054_v21 = vmul.f32 0.5, %v3046_v48  ;;  %v3023_v48 = vld [vmem:[%s5829_s6 + $0x28] sm:$0xff] }
 0x434   : > { %v5818_v7 = vpop.permute.xlu0 %2860  ;;  %3852 = vtanh.f32 %v3064_v44  ;;  %v2879_v6 = vpop.permute.xlu1 %2878 }
 0x435   : > { %3854 = vtanh.f32 %v3029_v30  ;;  %v2916_v15 = vsel %vm2713_vm14, %v2908_v2, %v2879_v6  ;;  %v2909_v30 = vsel %vm2704_vm13, %v2901_v53, %v5491_v36  ;;  %v2903_v10 = vsel %vm1708_vm10, %v5775_v57, %v5818_v7  ;;  %v3022_v6 = vld [vmem:[%s5829_s6 + $0x20] sm:$0xff] }
 0x436   : > { %3856 = vtanh.f32 %v2916_v15  ;;  %v3043_v36 = vadd.f32 1.0, %v3843_v34  ;;  %v3048_v15 = vadd.f32 1.0, %v3845_v12  ;;  %v2911_v7 = vsel %vm2704_vm13, %v2903_v10, %v5505_v45 }
 0x437   : > { %3858 = vtanh.f32 %v3061_v14  ;;  %v3094_v34 = vmul.f32 %v3086_v3, %v3022_v6 }
 0x438   : > { %v5837_v46 = vpop.permute.xlu0 %2864  ;;  %v2883_v29 = vpop.permute.xlu1 %2882  ;;  %3860 = vtanh.f32 %v3031_v27  ;;  %v3051_v45 = vmul.f32 0.5, %v3043_v36  ;;  %v3056_v25 = vmul.f32 0.5, %v3048_v15 }
 0x439   : > { %v2918_v61 = vsel %vm2713_vm14, %v2910_v55, %v2883_v29  ;;  %v2905_v59 = vsel %vm1708_vm10, %v5780_v63, %v5837_v46  ;;  %v3024_v29 = vld [vmem:[%s5829_s6 + $0x30] sm:$0xff] }
 0x43a   : > { %3862 = vtanh.f32 %v2918_v61  ;;  %v2913_v46 = vsel %vm2704_vm13, %v2905_v59, %v5529_v49  ;;  %v3021_v49 = vld [vmem:[%s5829_s6 + $0x18] sm:$0xff] }
 0x43b   : > { %3864 = vtanh.f32 %v3063_v18 }
 0x43c   : > { %v2877_v47 = vpop.permute.xlu0 %2876  ;;  %v3849_v37 = vpop.eup %3848 }
 0x43d   : > { %v2915_v31 = vsel %vm2713_vm14, %v2907_v16, %v2877_v47  ;;  %v2887_v43 = vpop.permute.xlu1 %2886  ;;  %v3851_v24 = vpop.eup %3850  ;;  %v3106_v62 = vmul.f32 %v3849_v37, %v3050_v26 }
 0x43e   : > { %3866 = vtanh.f32 %v2915_v31  ;;  %v2920_v50 = vsel %vm2713_vm14, %v2912_v52, %v2887_v43  ;;  %v3853_v44 = vpop.eup %3852  ;;  %v3075_v54 = vadd.f32 1.0, %v3851_v24 }
 0x43f   : > { %3868 = vtanh.f32 %v2920_v50  ;;  %v3855_v8 = vpop.eup %3854  ;;  %v5868_v22 = vadd.f32 %v3106_v62, %v3090_v58  ;;  %v3080_v14 = vadd.f32 1.0, %v3853_v44 }
 0x440   : > { %3870 = vtanh.f32 %v3033_v40  ;;  %v2881_v11 = vpop.permute.xlu0 %2880  ;;  %v3857_v42 = vpop.eup %3856  ;;  %v3083_v38 = vmul.f32 0.5, %v3075_v54  ;;  %v3045_v19 = vadd.f32 1.0, %v3855_v8 }
 0x441   : > { %3872 = vtanh.f32 %v3065_v9  ;;  %v2917_v56 = vsel %vm2713_vm14, %v2909_v30, %v2881_v11  ;;  %v5876_v41 = vpop.permute.xlu1 %2922  ;;  %3178 = vst [vmem:[%s5865_s9] sm:$0xff] %v5868_v22  ;;  %v3108_v60 = vmul.f32 %v3857_v42, %v3052_v0  ;;  %v3859_v2 = vpop.eup %3858  ;;  %v3088_v51 = vmul.f32 0.5, %v3080_v14 }
 0x442   : > { %3874 = vtanh.f32 %v2917_v56  ;;  %v3861_v27 = vpop.eup %3860  ;;  %v3077_v13 = vadd.f32 1.0, %v3859_v2  ;;  %v3091_v26 = vmul.f32 %v3083_v38, %v3019_v39  ;;  %v3053_v52 = vmul.f32 0.5, %v3045_v19 }
 0x443   : > { %v5881_v57 = vadd.f32 %v3108_v60, %v3092_v33  ;;  %v3096_v16 = vmul.f32 %v3088_v51, %v3024_v29  ;;  %v3047_v43 = vadd.f32 1.0, %v3861_v27  ;;  %v3025_v60 = vld [vmem:[%s5829_s6 + $0x38] sm:$0xff] }
 0x444   : > { %v2885_v20 = vpop.permute.xlu0 %2884  ;;  %v3863_v1 = vpop.eup %3862  ;;  %v3085_v47 = vmul.f32 0.5, %v3077_v13  ;;  %v6046_v13 = vld [vmem:[#allocation11_spill] sm:$0xff] }
 0x445   : > { %v2919_v5 = vsel %vm2713_vm14, %v2911_v7, %v2885_v20  ;;  %v5889_v17 = vpop.permute.xlu1 %2926  ;;  %v3865_v18 = vpop.eup %3864  ;;  %3180 = vst [vmem:[%s5865_s9 + $0x10] sm:$0xff] %v5881_v57  ;;  %v3110_v55 = vmul.f32 %v3863_v1, %v3054_v21  ;;  %v3055_v30 = vmul.f32 0.5, %v3047_v43 }
 0x446   : > { %3876 = vtanh.f32 %v2919_v5  ;;  %v3079_v37 = vadd.f32 1.0, %v3865_v18  ;;  %v3093_v44 = vmul.f32 %v3085_v47, %v3021_v49 }
 0x447   : > { %v5895_v63 = vadd.f32 %v3110_v55, %v3094_v34 }
 0x448   : > { %v3867_v12 = vpop.eup %3866  ;;  %v2889_v61 = vpop.permute.xlu0 %2888  ;;  %v3087_v0 = vmul.f32 0.5, %v3079_v37 }
 0x449   : > { %v3869_v32 = vpop.eup %3868  ;;  %v3107_v35 = vmul.f32 %v3867_v12, %v3051_v45  ;;  %v2921_v40 = vsel %vm2713_vm14, %v2913_v46, %v2889_v61  ;;  %v5900_v58 = vpop.permute.xlu1 %2930  ;;  %3182 = vst [vmem:[%s5865_s9 + $0x20] sm:$0xff] %v5895_v63  ;;  %v6047_v46 = vld [vmem:[#allocation3_spill] sm:$0xff] }
 0x44a   : > { %v3871_v28 = vpop.eup %3870  ;;  %v3112_v9 = vmul.f32 %v3869_v32, %v3056_v25  ;;  %3878 = vtanh.f32 %v2921_v40  ;;  %v3095_v33 = vmul.f32 %v3087_v0, %v3023_v48  ;;  %v6051_v48 = vld [vmem:[#allocation7_spill] sm:$0xff] }
 0x44b   : > { %v3873_v53 = vpop.eup %3872  ;;  %v5905_v31 = vadd.f32 %v3107_v35, %v3091_v26  ;;  %v3049_v11 = vadd.f32 1.0, %v3871_v28  ;;  %v6048_v28 = vld [vmem:[#allocation6_spill] sm:$0xff] }
 0x44c   : > { %v5907_v24 = vadd.f32 %v3112_v9, %v3096_v16  ;;  %v2925_v23 = vpop.permute.xlu0 %2924  ;;  %v3875_v62 = vpop.eup %3874  ;;  %v3081_v4 = vadd.f32 1.0, %v3873_v53 }
 0x44d   : > { %3179 = vst [vmem:[%s5865_s9 + $0x8] sm:$0xff] %v5905_v31  ;;  %v2935_v50 = vpop.permute.xlu1 %2934  ;;  %v3109_v8 = vmul.f32 %v3875_v62, %v3053_v52  ;;  %v3057_v2 = vmul.f32 0.5, %v3049_v11  ;;  %v6050_v62 = vld [vmem:[#allocation5_spill] sm:$0xff] }
 0x44e   : > { %3184 = vst [vmem:[%s5865_s9 + $0x30] sm:$0xff] %v5907_v24  ;;  %v3089_v3 = vmul.f32 0.5, %v3081_v4 }
 0x44f   : > { %v5914_v42 = vadd.f32 %v3109_v8, %v3093_v44 }
 0x450   : > { %v2929_v54 = vpop.permute.xlu0 %2928  ;;  %v3877_v10 = vpop.eup %3876  ;;  %v3097_v15 = vmul.f32 %v3089_v3, %v3025_v60 }
 0x451   : > { %v2947_v56 = vpop.permute.xlu1 %2946  ;;  %3181 = vst [vmem:[%s5865_s9 + $0x18] sm:$0xff] %v5914_v42  ;;  %v3111_v14 = vmul.f32 %v3877_v10, %v3055_v30 }
 0x452   : > { %v2994_v34 = vsel %vm1708_vm10, %v5876_v41, %v2947_v56 }
 0x453   : > { %v5919_v36 = vadd.f32 %v3111_v14, %v3095_v33 }
 0x454   : > { %v2933_v6 = vpop.permute.xlu0 %2932  ;;  %v3879_v27 = vpop.eup %3878 }
 0x455   : > { %v2951_v21 = vpop.permute.xlu1 %2950  ;;  %3183 = vst [vmem:[%s5865_s9 + $0x28] sm:$0xff] %v5919_v36  ;;  %v3113_v7 = vmul.f32 %v3879_v27, %v3057_v2  ;;  %v6052_v2 = vld [vmem:[#allocation9_spill] sm:$0xff] }
 0x456   : > { %v2996_v12 = vsel %vm1708_vm10, %v5889_v17, %v2951_v21 }
 0x457   : > { %v5923_v20 = vadd.f32 %v3113_v7, %v3097_v15 }
 0x458   : > { %v5925_v1 = vpop.permute.xlu0 %2936 }
 0x459   : > { %v2955_v38 = vpop.permute.xlu1 %2954  ;;  %3185 = vst [vmem:[%s5865_s9 + $0x38] sm:$0xff] %v5923_v20 }
 0x45a   : > { %v2998_v26 = vsel %vm1708_vm10, %v5900_v58, %v2955_v38  ;;  %v6049_v58 = vld [vmem:[#allocation4_spill] sm:$0xff] }
 0x45c   : > { %v2949_v59 = vpop.permute.xlu0 %2948 }
 0x45d   : > { %v2959_v5 = vpop.permute.xlu1 %2958  ;;  %v2995_v16 = vsel %vm1708_vm10, %v2925_v23, %v2949_v59 }
 0x45e   : > { %v3000_v9 = vsel %vm1708_vm10, %v2935_v50, %v2959_v5 }
 0x460   : > { %v2953_v18 = vpop.permute.xlu0 %2952 }
 0x461   : > { %v2971_v39 = vpop.permute.xlu1 %2970 }
 0x462   : > { %v3002_v51 = vsel %vm2704_vm13, %v2994_v34, %v2971_v39  ;;  %v6053_v34 = vld [vmem:[#allocation8_spill] sm:$0xff] }
 0x463   : > { %v3010_v55 = vsel %vm2713_vm14, %v3002_v51, %v6046_v13 }
 0x464   : > { %v3122_v45 = vmul.f32 0.5, %v3010_v55  ;;  %v2957_v29 = vpop.permute.xlu0 %2956 }
 0x465   : > { %v2975_v25 = vpop.permute.xlu1 %2974 }
 0x466   : > { %3880 = vtanh.f32 %v3122_v45  ;;  %v3004_v19 = vsel %vm2704_vm13, %v2996_v12, %v2975_v25 }
 0x467   : > { %v3012_v61 = vsel %vm2713_vm14, %v3004_v19, %v6047_v46  ;;  %3882 = vtanh.f32 %v5868_v22 }
 0x468   : > { %v3124_v32 = vmul.f32 0.5, %v3012_v61  ;;  %v2961_v41 = vpop.permute.xlu0 %2960 }
 0x469   : > { %v2979_v35 = vpop.permute.xlu1 %2978 }
 0x46a   : > { %3884 = vtanh.f32 %v3124_v32  ;;  %v3006_v40 = vsel %vm2704_vm13, %v2998_v26, %v2979_v35 }
 0x46b   : > { %v3014_v17 = vsel %vm2713_vm14, %v3006_v40, %v6048_v28  ;;  %3886 = vtanh.f32 %v5881_v57  ;;  %v2997_v57 = vsel %vm1708_vm10, %v2929_v54, %v2953_v18 }
 0x46c   : > { %v3126_v47 = vmul.f32 0.5, %v3014_v17  ;;  %v2973_v37 = vpop.permute.xlu0 %2972 }
 0x46d   : > { %v3003_v22 = vsel %vm2704_vm13, %v2995_v16, %v2973_v37  ;;  %v2983_v53 = vpop.permute.xlu1 %2982 }
 0x46e   : > { %3888 = vtanh.f32 %v3126_v47  ;;  %v3011_v49 = vsel %vm2713_vm14, %v3003_v22, %v6049_v58  ;;  %v3008_v52 = vsel %vm2704_vm13, %v3000_v9, %v2983_v53 }
 0x46f   : > { %v3123_v43 = vmul.f32 0.5, %v3011_v49  ;;  %v3016_v44 = vsel %vm2713_vm14, %v3008_v52, %v6050_v62  ;;  %3890 = vtanh.f32 %v5895_v63  ;;  %v2999_v63 = vsel %vm1708_vm10, %v2933_v6, %v2957_v29 }
 0x470   : > { %v3881_v23 = vpop.eup %3880  ;;  %v3128_v50 = vmul.f32 0.5, %v3016_v44  ;;  %v2977_v0 = vpop.permute.xlu0 %2976  ;;  %v3001_v6 = vsel %vm1708_vm10, %v5925_v1, %v2961_v41 }
 0x471   : > { %v3138_v4 = vadd.f32 1.0, %v3881_v23  ;;  %3892 = vtanh.f32 %v3123_v43  ;;  %v3005_v8 = vsel %vm2704_vm13, %v2997_v57, %v2977_v0  ;;  %v3883_v11 = vpop.eup %3882 }
 0x472   : > { %3894 = vtanh.f32 %v3128_v50  ;;  %v3013_v30 = vsel %vm2713_vm14, %v3005_v8, %v6051_v48 }
 0x473   : > { %v3146_v10 = vmul.f32 0.5, %v3138_v4  ;;  %v3125_v56 = vmul.f32 0.5, %v3013_v30  ;;  %3896 = vtanh.f32 %v5905_v31 }
 0x474   : > { %v3885_v33 = vpop.eup %3884  ;;  %v2981_v54 = vpop.permute.xlu0 %2980 }
 0x475   : > { %v3162_v3 = vmul.f32 %v3883_v11, %v3146_v10  ;;  %v3140_v14 = vadd.f32 1.0, %v3885_v33  ;;  %3898 = vtanh.f32 %v3125_v56  ;;  %v3007_v60 = vsel %vm2704_vm13, %v2999_v63, %v2981_v54  ;;  %v3887_v31 = vpop.eup %3886 }
 0x476   : > { %3900 = vtanh.f32 %v5907_v24  ;;  %v3015_v27 = vsel %vm2713_vm14, %v3007_v60, %v6052_v2 }
 0x477   : > { %3170 = vst [vmem:[%s5964_s13] sm:$0xff] %v3162_v3  ;;  %v3148_v21 = vmul.f32 0.5, %v3140_v14  ;;  %v3127_v15 = vmul.f32 0.5, %v3015_v27  ;;  %3902 = vtanh.f32 %v5914_v42 }
 0x478   : > { %v3889_v7 = vpop.eup %3888  ;;  %v2985_v38 = vpop.permute.xlu0 %2984 }
 0x479   : > { %v3164_v59 = vmul.f32 %v3887_v31, %v3148_v21  ;;  %v3142_v5 = vadd.f32 1.0, %v3889_v7  ;;  %3904 = vtanh.f32 %v3127_v15  ;;  %v3009_v24 = vsel %vm2704_vm13, %v3001_v6, %v2985_v38  ;;  %v3891_v18 = vpop.eup %3890 }
 0x47a   : > { %v3017_v39 = vsel %vm2713_vm14, %v3009_v24, %v6053_v34  ;;  %3906 = vtanh.f32 %v5919_v36 }
 0x47b   : > { %v3893_v51 = vpop.eup %3892  ;;  %3172 = vst [vmem:[%s5964_s13 + $0x10] sm:$0xff] %v3164_v59  ;;  %v3150_v13 = vmul.f32 0.5, %v3142_v5  ;;  %v3129_v55 = vmul.f32 0.5, %v3017_v39 }
 0x47c   : > { %v3895_v45 = vpop.eup %3894  ;;  %v3139_v42 = vadd.f32 1.0, %v3893_v51 }
 0x47d   : > { %v3166_v1 = vmul.f32 %v3891_v18, %v3150_v13  ;;  %v3144_v29 = vadd.f32 1.0, %v3895_v45  ;;  %3908 = vtanh.f32 %v3129_v55  ;;  %v3897_v12 = vpop.eup %3896 }
 0x47e   : > { %v3147_v25 = vmul.f32 0.5, %v3139_v42  ;;  %3910 = vtanh.f32 %v5923_v20 }
 0x47f   : > { %v3899_v19 = vpop.eup %3898  ;;  %3174 = vst [vmem:[%s5964_s13 + $0x20] sm:$0xff] %v3166_v1  ;;  %v3152_v46 = vmul.f32 0.5, %v3144_v29 }
 0x480   : > { %v3901_v61 = vpop.eup %3900  ;;  %v3163_v32 = vmul.f32 %v3897_v12, %v3147_v25  ;;  %v3141_v41 = vadd.f32 1.0, %v3899_v19 }
 0x481   : > { %v3168_v26 = vmul.f32 %v3901_v61, %v3152_v46  ;;  %v3903_v36 = vpop.eup %3902 }
 0x482   : > { %3171 = vst [vmem:[%s5964_s13 + $0x8] sm:$0xff] %v3163_v32  ;;  %v3149_v35 = vmul.f32 0.5, %v3141_v41 }
 0x483   : > { %v3905_v40 = vpop.eup %3904  ;;  %3176 = vst [vmem:[%s5964_s13 + $0x30] sm:$0xff] %v3168_v26 }
 0x484   : > { %v3165_v28 = vmul.f32 %v3903_v36, %v3149_v35  ;;  %v3143_v17 = vadd.f32 1.0, %v3905_v40  ;;  %v3907_v16 = vpop.eup %3906 }
 0x486   : > { %3173 = vst [vmem:[%s5964_s13 + $0x18] sm:$0xff] %v3165_v28  ;;  %v3151_v47 = vmul.f32 0.5, %v3143_v17 }
 0x487   : > { %v3909_v37 = vpop.eup %3908 }
 0x488   : > { %v3167_v9 = vmul.f32 %v3907_v16, %v3151_v47  ;;  %v3145_v22 = vadd.f32 1.0, %v3909_v37  ;;  %v3911_v58 = vpop.eup %3910 }
 0x48a   : > { %3175 = vst [vmem:[%s5964_s13 + $0x28] sm:$0xff] %v3167_v9  ;;  %v3153_v53 = vmul.f32 0.5, %v3145_v22 }
 0x48c   : > { %v3169_v49 = vmul.f32 %v3911_v58, %v3153_v53 }
 0x48e   : > { %3177 = vst [vmem:[%s5964_s13 + $0x38] sm:$0xff] %v3169_v49 }
 0x48f PF: > { %s15_s17 = sadd.s32 1, %s3936_s17   ;;  %s6054_s15 = smov %s3932_s16 }
 0x490   : > { %p12_p5 = scmp.ge.s32.totalorder %s15_s17, 4   ;;  %s6055_s16 = smov %s6057_s18 }
 0x492   :  { %14 = sbr.rel (!%p12_p5) target bundleno = 2 (0x2), region = 80 }

</bundles_post_ra>
